<compile_context>
chip_gen: v7x
topology: tpu7x:2x2x1
jax: 0.10.0
libtpu: 0.0.40
codegen_flags: <defaults>
</compile_context>

<pallas_src>
import functools

import jax
import jax.numpy as jnp
from jax.experimental import pallas as pl
from jax.experimental.pallas import tpu as pltpu

LANE = 128   # lane width / MXU output tile
SUB = 8      # sublanes per vreg

# Layer configuration of CNNMnist_Compare4
CONV_CFG = [(1, 20), (20, 40), (40, 80), (80, 160)]   # (Cin, Cout), 2x2 kernel, stride 1
FC_CFG = [(160, 80), (80, 40), (40, 20), (20, 10)]    # (in, out)
N_CLASSES = 10


def _rup(n, m):
    return ((n + m - 1) // m) * m


# ---------------------------------------------------------------------------
# Pallas kernels
# ---------------------------------------------------------------------------
def conv_relu_pool_kernel(x0_ref, x1_ref, x2_ref, x3_ref, w_ref, b_ref, o_ref):
    """Fused conv(2x2, s=1) + bias + relu + maxpool(2x2, s=2).

    x{p}_ref : (Mp, Kp) bf16   im2col patches for pool-window position p
    w_ref    : (Kp, Np) bf16   conv weights reshaped to (4*Cin_pad, Cout_pad)
    b_ref    : (1,  Np) f32
    o_ref    : (Mp, Np) f32    pooled activations (channels last, lane-dense)
    """
    w = w_ref[...]
    b = b_ref[...]

    def branch(x_ref):
        acc = jnp.dot(x_ref[...], w, preferred_element_type=jnp.float32)
        return jnp.maximum(acc + b, 0.0)

    o_ref[...] = jnp.maximum(jnp.maximum(branch(x0_ref), branch(x1_ref)),
                             jnp.maximum(branch(x2_ref), branch(x3_ref)))


def head_kernel(x_ref, w4_ref, b4_ref, wf1_ref, bf1_ref, wf2_ref, bf2_ref,
                wf3_ref, bf3_ref, wf4_ref, bf4_ref, o_ref, *, n_classes):
    """conv4 (1x1 output -> plain matmul) + relu, fc1..fc3 + relu, fc4,
    then log_softmax with the padded logit columns masked out."""

    def mm(a, w_r, b_r, relu):
        y = jnp.dot(a.astype(jnp.bfloat16), w_r[...],
                    preferred_element_type=jnp.float32) + b_r[...]
        return jnp.maximum(y, 0.0) if relu else y

    h = jnp.dot(x_ref[...], w4_ref[...],
                preferred_element_type=jnp.float32) + b4_ref[...]
    h = jnp.maximum(h, 0.0)                       # conv4 + relu  -> (Mp, 256)
    h = mm(h, wf1_ref, bf1_ref, True)             # fc1 + relu    -> (Mp, 128)
    h = mm(h, wf2_ref, bf2_ref, True)             # fc2 + relu
    h = mm(h, wf3_ref, bf3_ref, True)             # fc3 + relu
    logits = mm(h, wf4_ref, bf4_ref, False)       # fc4           -> (Mp, 128)

    # Mask padded columns to a huge negative so they vanish from the LSE.
    col = jax.lax.broadcasted_iota(jnp.int32, logits.shape, 1)
    logits = jnp.where(col < n_classes, logits, jnp.float32(-1e30))

    m = jnp.max(logits, axis=-1, keepdims=True)
    s = logits - m
    lse = jnp.log(jnp.sum(jnp.exp(s), axis=-1, keepdims=True))
    o_ref[...] = s - lse


# ---------------------------------------------------------------------------
# pallas_call wrappers (gridless: the whole problem is VMEM resident)
# ---------------------------------------------------------------------------
def _vmem_spec():
    return pl.BlockSpec(memory_space=pltpu.MemorySpace.VMEM)


def conv_relu_pool(mats, w, b):
    mp, kp = mats[0].shape
    np_ = w.shape[1]
    cost = pl.CostEstimate(
        flops=4 * 2 * mp * kp * np_ + 8 * mp * np_,
        transcendentals=0,
        bytes_accessed=4 * mats[0].size * 2 + w.size * 2 + b.size * 4 + mp * np_ * 4)
    return pl.pallas_call(
        conv_relu_pool_kernel,
        out_shape=jax.ShapeDtypeStruct((mp, np_), jnp.float32),
        in_specs=[_vmem_spec() for _ in range(6)],
        out_specs=_vmem_spec(),
        cost_estimate=cost,
    )(*mats, w, b)


def head(x4, head_params):
    mp = x4.shape[0]
    np_ = head_params[-2].shape[1]
    flops = 0
    byts = x4.size * 2 + mp * np_ * 4
    for wp, bp in zip(head_params[0::2], head_params[1::2]):
        flops += 2 * mp * wp.shape[0] * wp.shape[1]
        byts += wp.size * 2 + bp.size * 4
    cost = pl.CostEstimate(flops=flops, transcendentals=mp * np_ + mp,
                           bytes_accessed=byts)
    kern = functools.partial(head_kernel, n_classes=N_CLASSES)
    return pl.pallas_call(
        kern,
        out_shape=jax.ShapeDtypeStruct((mp, np_), jnp.float32),
        in_specs=[_vmem_spec() for _ in range(1 + len(head_params))],
        out_specs=_vmem_spec(),
        cost_estimate=cost,
    )(x4, *head_params)


# ---------------------------------------------------------------------------
# Wrapper-side geometry (pure layout plumbing; kept OUT of the kernels)
# ---------------------------------------------------------------------------
def _pooled_conv_im2col(x):
    """x: (B, H, W, Cp) f32.  Returns Hp, Wp and 4 bf16 im2col matrices of
    shape (rup(B*Hp*Wp, 8), 4*Cp), one per 2x2 pool-window position."""
    b, h, w, cp = x.shape
    hp, wp = (h - 1) // 2, (w - 1) // 2          # conv (H-1) then floor-pool /2
    m = b * hp * wp
    mp = _rup(m, SUB)
    mats = []
    for pi in (0, 1):
        for pj in (0, 1):
            taps = [x[:, pi + dh: pi + dh + 2 * hp: 2,
                      pj + dw: pj + dw + 2 * wp: 2, :]
                    for dh in (0, 1) for dw in (0, 1)]
            mat = jnp.concatenate(taps, axis=-1).reshape(m, 4 * cp)
            mat = jnp.pad(mat, ((0, mp - m), (0, 0))).astype(jnp.bfloat16)
            mats.append(mat)
    return hp, wp, mats


def cnn_forward(x_nchw, padded):
    """x_nchw: (B, 1, 28, 28) f32.  Returns (B, 10) log-probabilities."""
    b = x_nchw.shape[0]
    x = jnp.transpose(x_nchw, (0, 2, 3, 1))                       # NHWC
    x = jnp.pad(x, ((0, 0), (0, 0), (0, 0), (0, SUB - x.shape[-1])))

    for w2d, bias in padded["convs"]:                             # conv1..conv3
        hp, wp, mats = _pooled_conv_im2col(x)
        out = conv_relu_pool(mats, w2d, bias)                     # (Mp, 128) f32
        x = out[: b * hp * wp].reshape(b, hp, wp, w2d.shape[1])

    # conv4 has a 1x1 output: its im2col is the row-major flatten of the
    # (B, 2, 2, 128) activation ((dh, dw, c) order matches the weight reshape).
    x4 = x.reshape(b, -1)
    mp = _rup(b, SUB)
    x4 = jnp.pad(x4, ((0, mp - b), (0, 0))).astype(jnp.bfloat16)
    logp = head(x4, padded["head"])                               # (Mp, 128)
    return logp[:b, :N_CLASSES]


# ---------------------------------------------------------------------------
# Parameters
# ---------------------------------------------------------------------------
def init_params(key):
    convs, fcs = [], []
    for cin, cout in CONV_CFG:
        key, kw, kb = jax.random.split(key, 3)
        bound = 1.0 / (cin * 2 * 2) ** 0.5
        convs.append((jax.random.uniform(kw, (2, 2, cin, cout), jnp.float32, -bound, bound),
                      jax.random.uniform(kb, (cout,), jnp.float32, -bound, bound)))
    for fin, fout in FC_CFG:
        key, kw, kb = jax.random.split(key, 3)
        bound = 1.0 / fin ** 0.5
        fcs.append((jax.random.uniform(kw, (fin, fout), jnp.float32, -bound, bound),
                    jax.random.uniform(kb, (fout,), jnp.float32, -bound, bound)))
    return {"convs": convs, "fcs": fcs}


def pad_params(params):
    """Zero-pad channel/feature dims to lane multiples, reshape conv weights to
    im2col (4*Cin_pad, Cout_pad) matrices, cast matmul operands to bf16."""
    def pad_conv(wb, cin_p, cout_p):
        w, b = wb
        wp = jnp.pad(w, ((0, 0), (0, 0),
                         (0, cin_p - w.shape[2]), (0, cout_p - w.shape[3])))
        wp = wp.reshape(4 * cin_p, cout_p).astype(jnp.bfloat16)
        bp = jnp.pad(b, (0, cout_p - b.shape[0])).reshape(1, cout_p)
        return wp, bp

    def pad_fc(wb, kin_p, kout_p):
        w, b = wb
        wp = jnp.pad(w, ((0, kin_p - w.shape[0]), (0, kout_p - w.shape[1])))
        bp = jnp.pad(b, (0, kout_p - b.shape[0])).reshape(1, kout_p)
        return wp.astype(jnp.bfloat16), bp

    cin_pads = [SUB, LANE, LANE, LANE]                  # 1->8, 20/40/80 -> 128
    cout_pads = [LANE, LANE, LANE, _rup(160, LANE)]     # 20/40/80 -> 128, 160 -> 256
    convs = [pad_conv(wb, ci, co)
             for wb, ci, co in zip(params["convs"], cin_pads, cout_pads)]

    fc_in_pads = [_rup(160, LANE), LANE, LANE, LANE]    # fc1 sees conv4's 256 lanes
    fcs = [pad_fc(wb, ki, LANE)
           for wb, ki in zip(params["fcs"], fc_in_pads)]

    head_flat = tuple(a for pair in ([convs[3]] + fcs) for a in pair)
    return {"convs": convs[:3], "head": head_flat}


# ---------------------------------------------------------------------------
# Pure-JAX reference mirroring the PyTorch module
# ---------------------------------------------------------------------------
def reference_forward(x_nchw, params, matmul_dtype):
    """`matmul_dtype` sets the conv/matmul operand precision (f32 accumulation
    either way) so the kernel's bf16-operand MXU path can be checked exactly."""
    def cast(a):
        return a.astype(matmul_dtype)

    x = jnp.transpose(x_nchw, (0, 2, 3, 1))               # NHWC
    for li, (w, b) in enumerate(params["convs"]):
        y = jax.lax.conv_general_dilated(
            cast(x), cast(w), window_strides=(1, 1), padding="VALID",
            dimension_numbers=("NHWC", "HWIO", "NHWC"),
            preferred_element_type=jnp.float32) + b
        x = jnp.maximum(y, 0.0)
        if li < 3:
            x = jax.lax.reduce_window(x, -jnp.inf, jax.lax.max,
                                      (1, 2, 2, 1), (1, 2, 2, 1), "VALID")
    h = x.reshape(x.shape[0], -1)                         # == torch .view(-1, 160)
    for li, (w, b) in enumerate(params["fcs"]):
        h = jax.lax.dot(cast(h), cast(w), preferred_element_type=jnp.float32) + b
        if li < 3:
            h = jnp.maximum(h, 0.0)
    return jax.nn.log_softmax(h, axis=1)


if __name__ == "__main__":
    B = 2
    key = jax.random.PRNGKey(0)
    key, kx = jax.random.split(key)
    # MNIST-shaped input: 28x28 single channel (required so .view(-1, 160) holds)
    x = jax.random.normal(kx, (B, 1, 28, 28), jnp.float32)

    params = init_params(key)
    padded = pad_params(params)

    fwd = jax.jit(cnn_forward)
    out = jax.block_until_ready(fwd(x, padded))
    assert out.shape == (B, N_CLASSES)

    # Exact-structure check: reference with the same bf16-operand / f32-accum matmuls.
    ref_bf16 = reference_forward(x, params, jnp.bfloat16)
    assert jnp.allclose(out, ref_bf16, atol=5e-3, rtol=5e-3), \
        "mismatch vs bf16-operand reference"

    # Loose sanity check against the full-f32 reference (bf16 rounding only).
    ref_f32 = reference_forward(x, params, jnp.float32)
    assert jnp.allclose(out, ref_f32, atol=1e-1, rtol=1e-1), \
        "mismatch vs f32 reference"

    # Log-probabilities of the 10 real classes must normalise.
    assert jnp.allclose(jnp.sum(jnp.exp(out), axis=1), 1.0, atol=1e-3)

    print("KERNEL_OK")
</pallas_src>

<mosaic_0001>
module attributes {stable_mosaic.version = 11 : i64} {
  func.func @conv_relu_pool_kernel(%arg0: memref<344x32xbf16, #tpu.memory_space<vmem>>, %arg1: memref<344x32xbf16, #tpu.memory_space<vmem>>, %arg2: memref<344x32xbf16, #tpu.memory_space<vmem>>, %arg3: memref<344x32xbf16, #tpu.memory_space<vmem>>, %arg4: memref<32x128xbf16, #tpu.memory_space<vmem>>, %arg5: memref<1x128xf32, #tpu.memory_space<vmem>>, %arg6: memref<344x128xf32, #tpu.memory_space<vmem>>) attributes {dimension_semantics = [], scalar_prefetch = 0 : i64, scratch_operands = 0 : i64, tpu.core_type = #tpu.core_type<tc>} {
    %c0 = arith.constant 0 : index
    %c0_0 = arith.constant 0 : index
    %0 = vector.load %arg4[%c0, %c0_0] : memref<32x128xbf16, #tpu.memory_space<vmem>>, vector<32x128xbf16>
    %c0_1 = arith.constant 0 : index
    %c0_2 = arith.constant 0 : index
    %1 = vector.load %arg5[%c0_1, %c0_2] : memref<1x128xf32, #tpu.memory_space<vmem>>, vector<1x128xf32>
    %c0_3 = arith.constant 0 : index
    %c0_4 = arith.constant 0 : index
    %2 = vector.load %arg0[%c0_3, %c0_4] : memref<344x32xbf16, #tpu.memory_space<vmem>>, vector<344x32xbf16>
    %cst = arith.constant dense<0.000000e+00> : vector<344x128xf32>
    %3 = tpu.matmul %2, %0, %cst {dimension_numbers = #tpu.dot_dimension_numbers<[1], [0], [0], [1], [0, 0, 1, 1], [], []>} : vector<344x32xbf16>, vector<32x128xbf16>, vector<344x128xf32> -> vector<344x128xf32>
    %4 = vector.broadcast %1 : vector<1x128xf32> to vector<344x128xf32>
    %5 = arith.addf %3, %4 : vector<344x128xf32>
    %cst_5 = arith.constant 0.000000e+00 : f32
    %6 = vector.broadcast %cst_5 : f32 to vector<344x128xf32>
    %7 = arith.maximumf %5, %6 : vector<344x128xf32>
    %c0_6 = arith.constant 0 : index
    %c0_7 = arith.constant 0 : index
    %8 = vector.load %arg1[%c0_6, %c0_7] : memref<344x32xbf16, #tpu.memory_space<vmem>>, vector<344x32xbf16>
    %cst_8 = arith.constant dense<0.000000e+00> : vector<344x128xf32>
    %9 = tpu.matmul %8, %0, %cst_8 {dimension_numbers = #tpu.dot_dimension_numbers<[1], [0], [0], [1], [0, 0, 1, 1], [], []>} : vector<344x32xbf16>, vector<32x128xbf16>, vector<344x128xf32> -> vector<344x128xf32>
    %10 = vector.broadcast %1 : vector<1x128xf32> to vector<344x128xf32>
    %11 = arith.addf %9, %10 : vector<344x128xf32>
    %cst_9 = arith.constant 0.000000e+00 : f32
    %12 = vector.broadcast %cst_9 : f32 to vector<344x128xf32>
    %13 = arith.maximumf %11, %12 : vector<344x128xf32>
    %14 = arith.maximumf %7, %13 : vector<344x128xf32>
    %c0_10 = arith.constant 0 : index
    %c0_11 = arith.constant 0 : index
    %15 = vector.load %arg2[%c0_10, %c0_11] : memref<344x32xbf16, #tpu.memory_space<vmem>>, vector<344x32xbf16>
    %cst_12 = arith.constant dense<0.000000e+00> : vector<344x128xf32>
    %16 = tpu.matmul %15, %0, %cst_12 {dimension_numbers = #tpu.dot_dimension_numbers<[1], [0], [0], [1], [0, 0, 1, 1], [], []>} : vector<344x32xbf16>, vector<32x128xbf16>, vector<344x128xf32> -> vector<344x128xf32>
    %17 = vector.broadcast %1 : vector<1x128xf32> to vector<344x128xf32>
    %18 = arith.addf %16, %17 : vector<344x128xf32>
    %cst_13 = arith.constant 0.000000e+00 : f32
    %19 = vector.broadcast %cst_13 : f32 to vector<344x128xf32>
    %20 = arith.maximumf %18, %19 : vector<344x128xf32>
    %c0_14 = arith.constant 0 : index
    %c0_15 = arith.constant 0 : index
    %21 = vector.load %arg3[%c0_14, %c0_15] : memref<344x32xbf16, #tpu.memory_space<vmem>>, vector<344x32xbf16>
    %cst_16 = arith.constant dense<0.000000e+00> : vector<344x128xf32>
    %22 = tpu.matmul %21, %0, %cst_16 {dimension_numbers = #tpu.dot_dimension_numbers<[1], [0], [0], [1], [0, 0, 1, 1], [], []>} : vector<344x32xbf16>, vector<32x128xbf16>, vector<344x128xf32> -> vector<344x128xf32>
    %23 = vector.broadcast %1 : vector<1x128xf32> to vector<344x128xf32>
    %24 = arith.addf %22, %23 : vector<344x128xf32>
    %cst_17 = arith.constant 0.000000e+00 : f32
    %25 = vector.broadcast %cst_17 : f32 to vector<344x128xf32>
    %26 = arith.maximumf %24, %25 : vector<344x128xf32>
    %27 = arith.maximumf %20, %26 : vector<344x128xf32>
    %28 = arith.maximumf %14, %27 : vector<344x128xf32>
    %c0_18 = arith.constant 0 : index
    %c0_19 = arith.constant 0 : index
    %29 = vector.load %arg6[%c0_18, %c0_19] : memref<344x128xf32, #tpu.memory_space<vmem>>, vector<344x128xf32>
    tpu.vector_store %arg6[%c0_18, %c0_19], %28 {strides = array<i32>} : memref<344x128xf32, #tpu.memory_space<vmem>>, vector<344x128xf32>,
    return
  }
}

module attributes {stable_mosaic.version = 11 : i64} {
  func.func @conv_relu_pool_kernel(%arg0: memref<72x512xbf16, #tpu.memory_space<vmem>>, %arg1: memref<72x512xbf16, #tpu.memory_space<vmem>>, %arg2: memref<72x512xbf16, #tpu.memory_space<vmem>>, %arg3: memref<72x512xbf16, #tpu.memory_space<vmem>>, %arg4: memref<512x128xbf16, #tpu.memory_space<vmem>>, %arg5: memref<1x128xf32, #tpu.memory_space<vmem>>, %arg6: memref<72x128xf32, #tpu.memory_space<vmem>>) attributes {dimension_semantics = [], scalar_prefetch = 0 : i64, scratch_operands = 0 : i64, tpu.core_type = #tpu.core_type<tc>} {
    %c0 = arith.constant 0 : index
    %c0_0 = arith.constant 0 : index
    %0 = vector.load %arg4[%c0, %c0_0] : memref<512x128xbf16, #tpu.memory_space<vmem>>, vector<512x128xbf16>
    %c0_1 = arith.constant 0 : index
    %c0_2 = arith.constant 0 : index
    %1 = vector.load %arg5[%c0_1, %c0_2] : memref<1x128xf32, #tpu.memory_space<vmem>>, vector<1x128xf32>
    %c0_3 = arith.constant 0 : index
    %c0_4 = arith.constant 0 : index
    %2 = vector.load %arg0[%c0_3, %c0_4] : memref<72x512xbf16, #tpu.memory_space<vmem>>, vector<72x512xbf16>
    %cst = arith.constant dense<0.000000e+00> : vector<72x128xf32>
    %3 = tpu.matmul %2, %0, %cst {dimension_numbers = #tpu.dot_dimension_numbers<[1], [0], [0], [1], [0, 0, 1, 1], [], []>} : vector<72x512xbf16>, vector<512x128xbf16>, vector<72x128xf32> -> vector<72x128xf32>
    %4 = vector.broadcast %1 : vector<1x128xf32> to vector<72x128xf32>
    %5 = arith.addf %3, %4 : vector<72x128xf32>
    %cst_5 = arith.constant 0.000000e+00 : f32
    %6 = vector.broadcast %cst_5 : f32 to vector<72x128xf32>
    %7 = arith.maximumf %5, %6 : vector<72x128xf32>
    %c0_6 = arith.constant 0 : index
    %c0_7 = arith.constant 0 : index
    %8 = vector.load %arg1[%c0_6, %c0_7] : memref<72x512xbf16, #tpu.memory_space<vmem>>, vector<72x512xbf16>
    %cst_8 = arith.constant dense<0.000000e+00> : vector<72x128xf32>
    %9 = tpu.matmul %8, %0, %cst_8 {dimension_numbers = #tpu.dot_dimension_numbers<[1], [0], [0], [1], [0, 0, 1, 1], [], []>} : vector<72x512xbf16>, vector<512x128xbf16>, vector<72x128xf32> -> vector<72x128xf32>
    %10 = vector.broadcast %1 : vector<1x128xf32> to vector<72x128xf32>
    %11 = arith.addf %9, %10 : vector<72x128xf32>
    %cst_9 = arith.constant 0.000000e+00 : f32
    %12 = vector.broadcast %cst_9 : f32 to vector<72x128xf32>
    %13 = arith.maximumf %11, %12 : vector<72x128xf32>
    %14 = arith.maximumf %7, %13 : vector<72x128xf32>
    %c0_10 = arith.constant 0 : index
    %c0_11 = arith.constant 0 : index
    %15 = vector.load %arg2[%c0_10, %c0_11] : memref<72x512xbf16, #tpu.memory_space<vmem>>, vector<72x512xbf16>
    %cst_12 = arith.constant dense<0.000000e+00> : vector<72x128xf32>
    %16 = tpu.matmul %15, %0, %cst_12 {dimension_numbers = #tpu.dot_dimension_numbers<[1], [0], [0], [1], [0, 0, 1, 1], [], []>} : vector<72x512xbf16>, vector<512x128xbf16>, vector<72x128xf32> -> vector<72x128xf32>
    %17 = vector.broadcast %1 : vector<1x128xf32> to vector<72x128xf32>
    %18 = arith.addf %16, %17 : vector<72x128xf32>
    %cst_13 = arith.constant 0.000000e+00 : f32
    %19 = vector.broadcast %cst_13 : f32 to vector<72x128xf32>
    %20 = arith.maximumf %18, %19 : vector<72x128xf32>
    %c0_14 = arith.constant 0 : index
    %c0_15 = arith.constant 0 : index
    %21 = vector.load %arg3[%c0_14, %c0_15] : memref<72x512xbf16, #tpu.memory_space<vmem>>, vector<72x512xbf16>
    %cst_16 = arith.constant dense<0.000000e+00> : vector<72x128xf32>
    %22 = tpu.matmul %21, %0, %cst_16 {dimension_numbers = #tpu.dot_dimension_numbers<[1], [0], [0], [1], [0, 0, 1, 1], [], []>} : vector<72x512xbf16>, vector<512x128xbf16>, vector<72x128xf32> -> vector<72x128xf32>
    %23 = vector.broadcast %1 : vector<1x128xf32> to vector<72x128xf32>
    %24 = arith.addf %22, %23 : vector<72x128xf32>
    %cst_17 = arith.constant 0.000000e+00 : f32
    %25 = vector.broadcast %cst_17 : f32 to vector<72x128xf32>
    %26 = arith.maximumf %24, %25 : vector<72x128xf32>
    %27 = arith.maximumf %20, %26 : vector<72x128xf32>
    %28 = arith.maximumf %14, %27 : vector<72x128xf32>
    %c0_18 = arith.constant 0 : index
    %c0_19 = arith.constant 0 : index
    %29 = vector.load %arg6[%c0_18, %c0_19] : memref<72x128xf32, #tpu.memory_space<vmem>>, vector<72x128xf32>
    tpu.vector_store %arg6[%c0_18, %c0_19], %28 {strides = array<i32>} : memref<72x128xf32, #tpu.memory_space<vmem>>, vector<72x128xf32>,
    return
  }
}

module attributes {stable_mosaic.version = 11 : i64} {
  func.func @conv_relu_pool_kernel(%arg0: memref<8x512xbf16, #tpu.memory_space<vmem>>, %arg1: memref<8x512xbf16, #tpu.memory_space<vmem>>, %arg2: memref<8x512xbf16, #tpu.memory_space<vmem>>, %arg3: memref<8x512xbf16, #tpu.memory_space<vmem>>, %arg4: memref<512x128xbf16, #tpu.memory_space<vmem>>, %arg5: memref<1x128xf32, #tpu.memory_space<vmem>>, %arg6: memref<8x128xf32, #tpu.memory_space<vmem>>) attributes {dimension_semantics = [], scalar_prefetch = 0 : i64, scratch_operands = 0 : i64, tpu.core_type = #tpu.core_type<tc>} {
    %c0 = arith.constant 0 : index
    %c0_0 = arith.constant 0 : index
    %0 = vector.load %arg4[%c0, %c0_0] : memref<512x128xbf16, #tpu.memory_space<vmem>>, vector<512x128xbf16>
    %c0_1 = arith.constant 0 : index
    %c0_2 = arith.constant 0 : index
    %1 = vector.load %arg5[%c0_1, %c0_2] : memref<1x128xf32, #tpu.memory_space<vmem>>, vector<1x128xf32>
    %c0_3 = arith.constant 0 : index
    %c0_4 = arith.constant 0 : index
    %2 = vector.load %arg0[%c0_3, %c0_4] : memref<8x512xbf16, #tpu.memory_space<vmem>>, vector<8x512xbf16>
    %cst = arith.constant dense<0.000000e+00> : vector<8x128xf32>
    %3 = tpu.matmul %2, %0, %cst {dimension_numbers = #tpu.dot_dimension_numbers<[1], [0], [0], [1], [0, 0, 1, 1], [], []>} : vector<8x512xbf16>, vector<512x128xbf16>, vector<8x128xf32> -> vector<8x128xf32>
    %4 = vector.broadcast %1 : vector<1x128xf32> to vector<8x128xf32>
    %5 = arith.addf %3, %4 : vector<8x128xf32>
    %cst_5 = arith.constant 0.000000e+00 : f32
    %6 = vector.broadcast %cst_5 : f32 to vector<8x128xf32>
    %7 = arith.maximumf %5, %6 : vector<8x128xf32>
    %c0_6 = arith.constant 0 : index
    %c0_7 = arith.constant 0 : index
    %8 = vector.load %arg1[%c0_6, %c0_7] : memref<8x512xbf16, #tpu.memory_space<vmem>>, vector<8x512xbf16>
    %cst_8 = arith.constant dense<0.000000e+00> : vector<8x128xf32>
    %9 = tpu.matmul %8, %0, %cst_8 {dimension_numbers = #tpu.dot_dimension_numbers<[1], [0], [0], [1], [0, 0, 1, 1], [], []>} : vector<8x512xbf16>, vector<512x128xbf16>, vector<8x128xf32> -> vector<8x128xf32>
    %10 = vector.broadcast %1 : vector<1x128xf32> to vector<8x128xf32>
    %11 = arith.addf %9, %10 : vector<8x128xf32>
    %cst_9 = arith.constant 0.000000e+00 : f32
    %12 = vector.broadcast %cst_9 : f32 to vector<8x128xf32>
    %13 = arith.maximumf %11, %12 : vector<8x128xf32>
    %14 = arith.maximumf %7, %13 : vector<8x128xf32>
    %c0_10 = arith.constant 0 : index
    %c0_11 = arith.constant 0 : index
    %15 = vector.load %arg2[%c0_10, %c0_11] : memref<8x512xbf16, #tpu.memory_space<vmem>>, vector<8x512xbf16>
    %cst_12 = arith.constant dense<0.000000e+00> : vector<8x128xf32>
    %16 = tpu.matmul %15, %0, %cst_12 {dimension_numbers = #tpu.dot_dimension_numbers<[1], [0], [0], [1], [0, 0, 1, 1], [], []>} : vector<8x512xbf16>, vector<512x128xbf16>, vector<8x128xf32> -> vector<8x128xf32>
    %17 = vector.broadcast %1 : vector<1x128xf32> to vector<8x128xf32>
    %18 = arith.addf %16, %17 : vector<8x128xf32>
    %cst_13 = arith.constant 0.000000e+00 : f32
    %19 = vector.broadcast %cst_13 : f32 to vector<8x128xf32>
    %20 = arith.maximumf %18, %19 : vector<8x128xf32>
    %c0_14 = arith.constant 0 : index
    %c0_15 = arith.constant 0 : index
    %21 = vector.load %arg3[%c0_14, %c0_15] : memref<8x512xbf16, #tpu.memory_space<vmem>>, vector<8x512xbf16>
    %cst_16 = arith.constant dense<0.000000e+00> : vector<8x128xf32>
    %22 = tpu.matmul %21, %0, %cst_16 {dimension_numbers = #tpu.dot_dimension_numbers<[1], [0], [0], [1], [0, 0, 1, 1], [], []>} : vector<8x512xbf16>, vector<512x128xbf16>, vector<8x128xf32> -> vector<8x128xf32>
    %23 = vector.broadcast %1 : vector<1x128xf32> to vector<8x128xf32>
    %24 = arith.addf %22, %23 : vector<8x128xf32>
    %cst_17 = arith.constant 0.000000e+00 : f32
    %25 = vector.broadcast %cst_17 : f32 to vector<8x128xf32>
    %26 = arith.maximumf %24, %25 : vector<8x128xf32>
    %27 = arith.maximumf %20, %26 : vector<8x128xf32>
    %28 = arith.maximumf %14, %27 : vector<8x128xf32>
    %c0_18 = arith.constant 0 : index
    %c0_19 = arith.constant 0 : index
    %29 = vector.load %arg6[%c0_18, %c0_19] : memref<8x128xf32, #tpu.memory_space<vmem>>, vector<8x128xf32>
    tpu.vector_store %arg6[%c0_18, %c0_19], %28 {strides = array<i32>} : memref<8x128xf32, #tpu.memory_space<vmem>>, vector<8x128xf32>,
    return
  }
}

module attributes {stable_mosaic.version = 11 : i64} {
  func.func @head_kernel(%arg0: memref<8x512xbf16, #tpu.memory_space<vmem>>, %arg1: memref<512x256xbf16, #tpu.memory_space<vmem>>, %arg2: memref<1x256xf32, #tpu.memory_space<vmem>>, %arg3: memref<256x128xbf16, #tpu.memory_space<vmem>>, %arg4: memref<1x128xf32, #tpu.memory_space<vmem>>, %arg5: memref<128x128xbf16, #tpu.memory_space<vmem>>, %arg6: memref<1x128xf32, #tpu.memory_space<vmem>>, %arg7: memref<128x128xbf16, #tpu.memory_space<vmem>>, %arg8: memref<1x128xf32, #tpu.memory_space<vmem>>, %arg9: memref<128x128xbf16, #tpu.memory_space<vmem>>, %arg10: memref<1x128xf32, #tpu.memory_space<vmem>>, %arg11: memref<8x128xf32, #tpu.memory_space<vmem>>) attributes {dimension_semantics = [], scalar_prefetch = 0 : i64, scratch_operands = 0 : i64, tpu.core_type = #tpu.core_type<tc>} {
    %c0 = arith.constant 0 : index
    %c0_0 = arith.constant 0 : index
    %0 = vector.load %arg0[%c0, %c0_0] : memref<8x512xbf16, #tpu.memory_space<vmem>>, vector<8x512xbf16>
    %c0_1 = arith.constant 0 : index
    %c0_2 = arith.constant 0 : index
    %1 = vector.load %arg1[%c0_1, %c0_2] : memref<512x256xbf16, #tpu.memory_space<vmem>>, vector<512x256xbf16>
    %cst = arith.constant dense<0.000000e+00> : vector<8x256xf32>
    %2 = tpu.matmul %0, %1, %cst {dimension_numbers = #tpu.dot_dimension_numbers<[1], [0], [0], [1], [0, 0, 1, 1], [], []>} : vector<8x512xbf16>, vector<512x256xbf16>, vector<8x256xf32> -> vector<8x256xf32>
    %c0_3 = arith.constant 0 : index
    %c0_4 = arith.constant 0 : index
    %3 = vector.load %arg2[%c0_3, %c0_4] : memref<1x256xf32, #tpu.memory_space<vmem>>, vector<1x256xf32>
    %4 = vector.broadcast %3 : vector<1x256xf32> to vector<8x256xf32>
    %5 = arith.addf %2, %4 : vector<8x256xf32>
    %cst_5 = arith.constant 0.000000e+00 : f32
    %6 = vector.broadcast %cst_5 : f32 to vector<8x256xf32>
    %7 = arith.maximumf %5, %6 : vector<8x256xf32>
    %8 = arith.truncf %7 : vector<8x256xf32> to vector<8x256xbf16>
    %c0_6 = arith.constant 0 : index
    %c0_7 = arith.constant 0 : index
    %9 = vector.load %arg3[%c0_6, %c0_7] : memref<256x128xbf16, #tpu.memory_space<vmem>>, vector<256x128xbf16>
    %cst_8 = arith.constant dense<0.000000e+00> : vector<8x128xf32>
    %10 = tpu.matmul %8, %9, %cst_8 {dimension_numbers = #tpu.dot_dimension_numbers<[1], [0], [0], [1], [0, 0, 1, 1], [], []>} : vector<8x256xbf16>, vector<256x128xbf16>, vector<8x128xf32> -> vector<8x128xf32>
    %c0_9 = arith.constant 0 : index
    %c0_10 = arith.constant 0 : index
    %11 = vector.load %arg4[%c0_9, %c0_10] : memref<1x128xf32, #tpu.memory_space<vmem>>, vector<1x128xf32>
    %12 = vector.broadcast %11 : vector<1x128xf32> to vector<8x128xf32>
    %13 = arith.addf %10, %12 : vector<8x128xf32>
    %cst_11 = arith.constant 0.000000e+00 : f32
    %14 = vector.broadcast %cst_11 : f32 to vector<8x128xf32>
    %15 = arith.maximumf %13, %14 : vector<8x128xf32>
    %16 = arith.truncf %15 : vector<8x128xf32> to vector<8x128xbf16>
    %c0_12 = arith.constant 0 : index
    %c0_13 = arith.constant 0 : index
    %17 = vector.load %arg5[%c0_12, %c0_13] : memref<128x128xbf16, #tpu.memory_space<vmem>>, vector<128x128xbf16>
    %cst_14 = arith.constant dense<0.000000e+00> : vector<8x128xf32>
    %18 = tpu.matmul %16, %17, %cst_14 {dimension_numbers = #tpu.dot_dimension_numbers<[1], [0], [0], [1], [0, 0, 1, 1], [], []>} : vector<8x128xbf16>, vector<128x128xbf16>, vector<8x128xf32> -> vector<8x128xf32>
    %c0_15 = arith.constant 0 : index
    %c0_16 = arith.constant 0 : index
    %19 = vector.load %arg6[%c0_15, %c0_16] : memref<1x128xf32, #tpu.memory_space<vmem>>, vector<1x128xf32>
    %20 = vector.broadcast %19 : vector<1x128xf32> to vector<8x128xf32>
    %21 = arith.addf %18, %20 : vector<8x128xf32>
    %cst_17 = arith.constant 0.000000e+00 : f32
    %22 = vector.broadcast %cst_17 : f32 to vector<8x128xf32>
    %23 = arith.maximumf %21, %22 : vector<8x128xf32>
    %24 = arith.truncf %23 : vector<8x128xf32> to vector<8x128xbf16>
    %c0_18 = arith.constant 0 : index
    %c0_19 = arith.constant 0 : index
    %25 = vector.load %arg7[%c0_18, %c0_19] : memref<128x128xbf16, #tpu.memory_space<vmem>>, vector<128x128xbf16>
    %cst_20 = arith.constant dense<0.000000e+00> : vector<8x128xf32>
    %26 = tpu.matmul %24, %25, %cst_20 {dimension_numbers = #tpu.dot_dimension_numbers<[1], [0], [0], [1], [0, 0, 1, 1], [], []>} : vector<8x128xbf16>, vector<128x128xbf16>, vector<8x128xf32> -> vector<8x128xf32>
    %c0_21 = arith.constant 0 : index
    %c0_22 = arith.constant 0 : index
    %27 = vector.load %arg8[%c0_21, %c0_22] : memref<1x128xf32, #tpu.memory_space<vmem>>, vector<1x128xf32>
    %28 = vector.broadcast %27 : vector<1x128xf32> to vector<8x128xf32>
    %29 = arith.addf %26, %28 : vector<8x128xf32>
    %cst_23 = arith.constant 0.000000e+00 : f32
    %30 = vector.broadcast %cst_23 : f32 to vector<8x128xf32>
    %31 = arith.maximumf %29, %30 : vector<8x128xf32>
    %32 = arith.truncf %31 : vector<8x128xf32> to vector<8x128xbf16>
    %c0_24 = arith.constant 0 : index
    %c0_25 = arith.constant 0 : index
    %33 = vector.load %arg9[%c0_24, %c0_25] : memref<128x128xbf16, #tpu.memory_space<vmem>>, vector<128x128xbf16>
    %cst_26 = arith.constant dense<0.000000e+00> : vector<8x128xf32>
    %34 = tpu.matmul %32, %33, %cst_26 {dimension_numbers = #tpu.dot_dimension_numbers<[1], [0], [0], [1], [0, 0, 1, 1], [], []>} : vector<8x128xbf16>, vector<128x128xbf16>, vector<8x128xf32> -> vector<8x128xf32>
    %c0_27 = arith.constant 0 : index
    %c0_28 = arith.constant 0 : index
    %35 = vector.load %arg10[%c0_27, %c0_28] : memref<1x128xf32, #tpu.memory_space<vmem>>, vector<1x128xf32>
    %36 = vector.broadcast %35 : vector<1x128xf32> to vector<8x128xf32>
    %37 = arith.addf %34, %36 : vector<8x128xf32>
    %38 = tpu.iota {dimensions = array<i32: 1>} : vector<8x128xi32>
    %c10_i32 = arith.constant 10 : i32
    %39 = vector.broadcast %c10_i32 : i32 to vector<8x128xi32>
    %40 = arith.cmpi slt, %38, %39 : vector<8x128xi32>
    %cst_29 = arith.constant -1.000000e+30 : f32
    %41 = vector.broadcast %cst_29 : f32 to vector<8x128xf32>
    %42 = arith.select %40, %37, %41 : vector<8x128xi1>, vector<8x128xf32>
    %cst_30 = arith.constant dense<0xFF800000> : vector<8xf32>
    %43 = vector.multi_reduction <maximumf>, %42, %cst_30 [1] : vector<8x128xf32> to vector<8xf32>
    %44 = vector.shape_cast %43 : vector<8xf32> to vector<8x1xf32>
    %45 = vector.broadcast %44 : vector<8x1xf32> to vector<8x128xf32>
    %46 = arith.subf %42, %45 : vector<8x128xf32>
    %47 = math.exp %46 : vector<8x128xf32>
    %cst_31 = arith.constant dense<0.000000e+00> : vector<8xf32>
    %48 = vector.multi_reduction <add>, %47, %cst_31 [1] : vector<8x128xf32> to vector<8xf32>
    %49 = vector.shape_cast %48 : vector<8xf32> to vector<8x1xf32>
    %50 = math.log %49 : vector<8x1xf32>
    %51 = vector.broadcast %50 : vector<8x1xf32> to vector<8x128xf32>
    %52 = arith.subf %46, %51 : vector<8x128xf32>
    %c0_32 = arith.constant 0 : index
    %c0_33 = arith.constant 0 : index
    %53 = vector.load %arg11[%c0_32, %c0_33] : memref<8x128xf32, #tpu.memory_space<vmem>>, vector<8x128xf32>
    tpu.vector_store %arg11[%c0_32, %c0_33], %52 {strides = array<i32>} : memref<8x128xf32, #tpu.memory_space<vmem>>, vector<8x128xf32>,
    return
  }
}

</mosaic_0001>

<bundles_post_ra>
// kernel: cnn_forward.4
= control target key start
LH: loop header
LB: loop body
LE: loop exit
PB: predicated region body
PF: predicated region fallthrough
CT: control target
= control target key end

     0   :  { %vm198_vm0 = vcmask 261120   ;;  %s3487_s4 = inlined_call_operand.vmem [shape: bf16[32,128], index: 4, kind: input, shape index: {}]   ;;  %s3488_s0 = inlined_call_operand.vmem [shape: bf16[344,32], index: 0, kind: input, shape index: {}]   ;;  %s3489_s1 = inlined_call_operand.vmem [shape: bf16[344,32], index: 1, kind: input, shape index: {}]   ;;  %s3490_s2 = inlined_call_operand.vmem [shape: bf16[344,32], index: 2, kind: input, shape index: {}]   ;;  %s3491_s3 = inlined_call_operand.vmem [shape: bf16[344,32], index: 3, kind: input, shape index: {}]   ;;  %s3492_s5 = inlined_call_operand.vmem [shape: f32[1,128], index: 5, kind: input, shape index: {}]   ;;  %s3493_s6 = inlined_call_operand.vmem [shape: f32[344,128], index: 6, kind: output, shape index: {}]  }
   0x1   :  { %v2563_v0 = vld [vmem:[%s3487_s4] sm:$0xff]   ;;  %v2564_v1 = vld [vmem:[%s3487_s4 + $0x8] sm:$0xff]   ;;  %v2569_v6 = vld [vmem:[%s3488_s0 + $0x10] sm:$0xff]  }
   0x2   :  { %2371 = vmatprep.subr.bf16.mxu0 %v2563_v0  ;;  %2419 = vmatprep.subr.bf16.mxu1 %v2563_v0  ;;  %v2565_v2 = vld [vmem:[%s3488_s0] sm:$0xff]   ;;  %v2567_v4 = vld [vmem:[%s3488_s0 + $0x8] sm:$0xff]   ;;  %v2570_v7 = vld [vmem:[%s3489_s1 + $0x10] sm:$0xff]  }
   0x3   :  { %2372 = vmatpush3.bf16.msra.mxu0 %v2563_v0  ;;  %2420 = vmatpush3.bf16.msra.mxu1 %v2563_v0  ;;  %v2566_v3 = vld [vmem:[%s3489_s1] sm:$0xff]   ;;  %v2568_v5 = vld [vmem:[%s3489_s1 + $0x8] sm:$0xff]   ;;  %v2571_v8 = vld [vmem:[%s3488_s0 + $0x18] sm:$0xff]  }
   0x4   :  { %2373 = vmatprep.subr.bf16.mxu0 %v2564_v1  ;;  %2421 = vmatprep.subr.bf16.mxu1 %v2564_v1  ;;  %v2572_v9 = vld [vmem:[%s3489_s1 + $0x18] sm:$0xff]   ;;  %v2573_v10 = vld [vmem:[%s3488_s0 + $0x20] sm:$0xff]   ;;  %v2575_v12 = vld [vmem:[%s3488_s0 + $0x28] sm:$0xff]  }
   0x5   :  { %2375 = vmatprep.mubr.msk.bf16.mxu0 %vm198_vm0, %v2565_v2  ;;  %2423 = vmatprep.mubr.msk.bf16.mxu1 %vm198_vm0, %v2566_v3  ;;  %v2574_v11 = vld [vmem:[%s3489_s1 + $0x20] sm:$0xff]   ;;  %v2576_v13 = vld [vmem:[%s3489_s1 + $0x28] sm:$0xff]   ;;  %v2577_v14 = vld [vmem:[%s3488_s0 + $0x30] sm:$0xff]  }
   0x6   :  { %v2578_v15 = vld [vmem:[%s3489_s1 + $0x30] sm:$0xff]   ;;  %v2579_v16 = vld [vmem:[%s3488_s0 + $0x38] sm:$0xff]   ;;  %v2581_v18 = vld [vmem:[%s3488_s0 + $0x40] sm:$0xff]  }
   0x7   :  { %2374 = vmatpush3.bf16.msra.mxu0 %v2564_v1  ;;  %2422 = vmatpush3.bf16.msra.mxu1 %v2564_v1  ;;  %v2580_v17 = vld [vmem:[%s3489_s1 + $0x38] sm:$0xff]   ;;  %v2582_v19 = vld [vmem:[%s3489_s1 + $0x40] sm:$0xff]   ;;  %v2583_v20 = vld [vmem:[%s3488_s0 + $0x48] sm:$0xff]  }
   0x8   :  { %2467 = vmatprep.subr.bf16.mxu0 %v2563_v0  ;;  %2515 = vmatprep.subr.bf16.mxu1 %v2563_v0  ;;  %v2584_v21 = vld [vmem:[%s3489_s1 + $0x48] sm:$0xff]   ;;  %v2585_v22 = vld [vmem:[%s3488_s0 + $0x50] sm:$0xff]   ;;  %v2587_v24 = vld [vmem:[%s3488_s0 + $0x58] sm:$0xff]  }
   0x9   :  { %v2586_v23 = vld [vmem:[%s3489_s1 + $0x50] sm:$0xff]   ;;  %v2588_v25 = vld [vmem:[%s3489_s1 + $0x58] sm:$0xff]   ;;  %v2589_v26 = vld [vmem:[%s3488_s0 + $0x60] sm:$0xff]  }
   0xa   :  { %2376 = vmatmul.mubr.msk.bf16.vlgmr.msra.gmra.mrb[0].mxu0 %vm198_vm0, %v2567_v4  ;;  %2424 = vmatmul.mubr.msk.bf16.vlgmr.msra.gmra.mrb[0].mxu1 %vm198_vm0, %v2568_v5  ;;  %v2590_v27 = vld [vmem:[%s3489_s1 + $0x60] sm:$0xff]   ;;  %v2591_v28 = vld [vmem:[%s3488_s0 + $0x68] sm:$0xff]   ;;  %v2593_v30 = vld [vmem:[%s3488_s0 + $0x70] sm:$0xff]  }
   0xb   :  { %2468 = vmatpush3.bf16.msra.mxu0 %v2563_v0  ;;  %2516 = vmatpush3.bf16.msra.mxu1 %v2563_v0  ;;  %v2592_v29 = vld [vmem:[%s3489_s1 + $0x68] sm:$0xff]   ;;  %v2594_v31 = vld [vmem:[%s3489_s1 + $0x70] sm:$0xff]   ;;  %v2595_v32 = vld [vmem:[%s3488_s0 + $0x78] sm:$0xff]  }
   0xc   :  { %2379 = vmatprep.mubr.msk.bf16.mxu0 %vm198_vm0, %v2569_v6  ;;  %2427 = vmatprep.mubr.msk.bf16.mxu1 %vm198_vm0, %v2570_v7  ;;  %v2596_v33 = vld [vmem:[%s3489_s1 + $0x78] sm:$0xff]   ;;  %v2597_v34 = vld [vmem:[%s3488_s0 + $0x80] sm:$0xff]   ;;  %v2599_v36 = vld [vmem:[%s3488_s0 + $0x88] sm:$0xff]  }
   0xd   :  { %2469 = vmatprep.subr.bf16.mxu0 %v2564_v1  ;;  %2517 = vmatprep.subr.bf16.mxu1 %v2564_v1  ;;  %v2598_v35 = vld [vmem:[%s3489_s1 + $0x80] sm:$0xff]   ;;  %v2600_v37 = vld [vmem:[%s3489_s1 + $0x88] sm:$0xff]   ;;  %v2601_v38 = vld [vmem:[%s3488_s0 + $0x90] sm:$0xff]  }
   0xe   :  { %v2602_v39 = vld [vmem:[%s3489_s1 + $0x90] sm:$0xff]   ;;  %v2603_v40 = vld [vmem:[%s3488_s0 + $0x98] sm:$0xff]   ;;  %v2605_v42 = vld [vmem:[%s3488_s0 + $0xa0] sm:$0xff]  }
   0xf   :  { %2470 = vmatpush3.bf16.msra.mxu0 %v2564_v1  ;;  %2518 = vmatpush3.bf16.msra.mxu1 %v2564_v1  ;;  %v2604_v41 = vld [vmem:[%s3489_s1 + $0x98] sm:$0xff]   ;;  %v2606_v43 = vld [vmem:[%s3489_s1 + $0xa0] sm:$0xff]   ;;  %v2607_v44 = vld [vmem:[%s3488_s0 + $0xa8] ss:$0 sps:$4 sm:$0xff]  }
  0x10   :  { %v2608_v45 = vld [vmem:[%s3489_s1 + $0xa8] ss:$0 sps:$4 sm:$0xff]   ;;  %v2609_v46 = vld [vmem:[%s3490_s2] sm:$0xff]   ;;  %v2613_v50 = vld [vmem:[%s3490_s2 + $0x10] sm:$0xff]  }
  0x11   :  { %v2610_v47 = vld [vmem:[%s3491_s3] sm:$0xff]   ;;  %v2611_v48 = vld [vmem:[%s3490_s2 + $0x8] sm:$0xff]   ;;  %v2614_v51 = vld [vmem:[%s3491_s3 + $0x10] sm:$0xff]  }
  0x12   :  { %2380 = vmatmul.mubr.msk.bf16.gmra.mrb[4].mxu0 %vm198_vm0, %v2571_v8  ;;  %2428 = vmatmul.mubr.msk.bf16.gmra.mrb[4].mxu1 %vm198_vm0, %v2572_v9  ;;  %v2612_v49 = vld [vmem:[%s3491_s3 + $0x8] sm:$0xff]   ;;  %v2615_v52 = vld [vmem:[%s3490_s2 + $0x18] sm:$0xff]   ;;  %v2617_v54 = vld [vmem:[%s3490_s2 + $0x20] sm:$0xff]  }
  0x13   :  { %2383 = vmatprep.mubr.msk.bf16.mxu0 %vm198_vm0, %v2573_v10  ;;  %2431 = vmatprep.mubr.msk.bf16.mxu1 %vm198_vm0, %v2574_v11  ;;  %v2616_v53 = vld [vmem:[%s3491_s3 + $0x18] sm:$0xff]   ;;  %v2618_v55 = vld [vmem:[%s3491_s3 + $0x20] sm:$0xff]   ;;  %v2619_v56 = vld [vmem:[%s3490_s2 + $0x28] sm:$0xff]  }
  0x14   :  { %v2620_v57 = vld [vmem:[%s3491_s3 + $0x28] sm:$0xff]   ;;  %v2621_v58 = vld [vmem:[%s3490_s2 + $0x30] sm:$0xff]   ;;  %v2623_v60 = vld [vmem:[%s3490_s2 + $0x38] sm:$0xff]  }
  0x15   :  { %v2622_v59 = vld [vmem:[%s3491_s3 + $0x30] sm:$0xff]   ;;  %v2624_v61 = vld [vmem:[%s3491_s3 + $0x38] sm:$0xff]   ;;  %v2625_v62 = vld [vmem:[%s3490_s2 + $0x40] sm:$0xff]  }
  0x16   :  { %v2626_v63 = vld [vmem:[%s3491_s3 + $0x40] sm:$0xff]   ;;  %v2627_v0 = vld [vmem:[%s3490_s2 + $0x48] sm:$0xff]   ;;  %v2629_v2 = vld [vmem:[%s3490_s2 + $0x50] sm:$0xff]  }
  0x17   :  { %v2628_v1 = vld [vmem:[%s3491_s3 + $0x48] sm:$0xff]   ;;  %v2630_v3 = vld [vmem:[%s3491_s3 + $0x50] sm:$0xff]   ;;  %v2631_v4 = vld [vmem:[%s3490_s2 + $0x58] sm:$0xff]  }
  0x18   :  { %v2632_v5 = vld [vmem:[%s3491_s3 + $0x58] sm:$0xff]   ;;  %v2633_v6 = vld [vmem:[%s3490_s2 + $0x60] sm:$0xff]   ;;  %v2635_v8 = vld [vmem:[%s3490_s2 + $0x68] sm:$0xff]  }
  0x19   :  { %v2634_v7 = vld [vmem:[%s3491_s3 + $0x60] sm:$0xff]   ;;  %v2636_v9 = vld [vmem:[%s3491_s3 + $0x68] sm:$0xff]   ;;  %v2637_v10 = vld [vmem:[%s3490_s2 + $0x70] sm:$0xff]  }
  0x1a   :  { %2384 = vmatmul.mubr.msk.bf16.gmra.mrb[8].mxu0 %vm198_vm0, %v2575_v12  ;;  %2432 = vmatmul.mubr.msk.bf16.gmra.mrb[8].mxu1 %vm198_vm0, %v2576_v13  ;;  %v2638_v11 = vld [vmem:[%s3491_s3 + $0x70] sm:$0xff]   ;;  %v2639_v12 = vld [vmem:[%s3490_s2 + $0x78] sm:$0xff]  }
  0x1b   :  { %2387 = vmatprep.mubr.msk.bf16.mxu0 %vm198_vm0, %v2577_v14  ;;  %2435 = vmatprep.mubr.msk.bf16.mxu1 %vm198_vm0, %v2578_v15  ;;  %v2640_v13 = vld [vmem:[%s3491_s3 + $0x78] sm:$0xff]   ;;  %v2641_v14 = vld [vmem:[%s3490_s2 + $0x80] sm:$0xff]  }
  0x1c   :  { %v2642_v15 = vld [vmem:[%s3491_s3 + $0x80] sm:$0xff]  }
  0x22   :  { %2388 = vmatmul.mubr.msk.bf16.gmra.mrb[12].mxu0 %vm198_vm0, %v2579_v16  ;;  %2436 = vmatmul.mubr.msk.bf16.gmra.mrb[12].mxu1 %vm198_vm0, %v2580_v17  ;;  %v2643_v16 = vld [vmem:[%s3490_s2 + $0x88] sm:$0xff]  }
  0x23   :  { %2391 = vmatprep.mubr.msk.bf16.mxu0 %vm198_vm0, %v2581_v18  ;;  %2439 = vmatprep.mubr.msk.bf16.mxu1 %vm198_vm0, %v2582_v19  ;;  %v2644_v17 = vld [vmem:[%s3491_s3 + $0x88] sm:$0xff]   ;;  %v2645_v18 = vld [vmem:[%s3490_s2 + $0x90] sm:$0xff]  }
  0x24   :  { %v2646_v19 = vld [vmem:[%s3491_s3 + $0x90] sm:$0xff]  }
  0x2a   :  { %2392 = vmatmul.mubr.msk.bf16.gmra.mrb[16].mxu0 %vm198_vm0, %v2583_v20  ;;  %2440 = vmatmul.mubr.msk.bf16.gmra.mrb[16].mxu1 %vm198_vm0, %v2584_v21  ;;  %v2647_v20 = vld [vmem:[%s3490_s2 + $0x98] sm:$0xff]  }
  0x2b   :  { %2395 = vmatprep.mubr.msk.bf16.mxu0 %vm198_vm0, %v2585_v22  ;;  %2443 = vmatprep.mubr.msk.bf16.mxu1 %vm198_vm0, %v2586_v23  ;;  %v2648_v21 = vld [vmem:[%s3491_s3 + $0x98] sm:$0xff]   ;;  %v2649_v22 = vld [vmem:[%s3490_s2 + $0xa0] sm:$0xff]  }
  0x2c   :  { %v2650_v23 = vld [vmem:[%s3491_s3 + $0xa0] sm:$0xff]  }
  0x32   :  { %2396 = vmatmul.mubr.msk.bf16.gmra.mrb[20].mxu0 %vm198_vm0, %v2587_v24  ;;  %2444 = vmatmul.mubr.msk.bf16.gmra.mrb[20].mxu1 %vm198_vm0, %v2588_v25  ;;  %v2651_v24 = vld [vmem:[%s3490_s2 + $0xa8] ss:$0 sps:$4 sm:$0xff]  }
  0x33   :  { %2399 = vmatprep.mubr.msk.bf16.mxu0 %vm198_vm0, %v2589_v26  ;;  %2447 = vmatprep.mubr.msk.bf16.mxu1 %vm198_vm0, %v2590_v27  ;;  %v2652_v25 = vld [vmem:[%s3491_s3 + $0xa8] ss:$0 sps:$4 sm:$0xff]   ;;  %v3050_v26 = vld [vmem:[%s3492_s5] ss:$0 sm:$0xff] }
  0x3a   :  { %2400 = vmatmul.mubr.msk.bf16.gmra.mrb[24].mxu0 %vm198_vm0, %v2591_v28  ;;  %2448 = vmatmul.mubr.msk.bf16.gmra.mrb[24].mxu1 %vm198_vm0, %v2592_v29 }
  0x3b   :  { %2403 = vmatprep.mubr.msk.bf16.mxu0 %vm198_vm0, %v2593_v30  ;;  %2451 = vmatprep.mubr.msk.bf16.mxu1 %vm198_vm0, %v2594_v31 }
  0x42   :  { %2404 = vmatmul.mubr.msk.bf16.gmra.mrb[28].mxu0 %vm198_vm0, %v2595_v32  ;;  %2452 = vmatmul.mubr.msk.bf16.gmra.mrb[28].mxu1 %vm198_vm0, %v2596_v33 }
  0x43   :  { %2407 = vmatprep.mubr.msk.bf16.mxu0 %vm198_vm0, %v2597_v34  ;;  %2455 = vmatprep.mubr.msk.bf16.mxu1 %vm198_vm0, %v2598_v35 }
  0x4a   :  { %2408 = vmatmul.mubr.msk.bf16.gmra.mrb[32].mxu0 %vm198_vm0, %v2599_v36  ;;  %2456 = vmatmul.mubr.msk.bf16.gmra.mrb[32].mxu1 %vm198_vm0, %v2600_v37 }
  0x4b   :  { %2411 = vmatprep.mubr.msk.bf16.mxu0 %vm198_vm0, %v2601_v38  ;;  %2459 = vmatprep.mubr.msk.bf16.mxu1 %vm198_vm0, %v2602_v39 }
  0x52   :  { %2412 = vmatmul.mubr.msk.bf16.gmra.mrb[36].mxu0 %vm198_vm0, %v2603_v40  ;;  %2460 = vmatmul.mubr.msk.bf16.gmra.mrb[36].mxu1 %vm198_vm0, %v2604_v41 }
  0x53   :  { %2415 = vmatprep.mubr.msk.bf16.mxu0 %vm198_vm0, %v2605_v42  ;;  %2463 = vmatprep.mubr.msk.bf16.mxu1 %vm198_vm0, %v2606_v43 }
  0x5a   :  { %2416 = vmatmul.mubr.msk.bf16.gmra.mrb[40].mxu0 %vm198_vm0, %v2607_v44  ;;  %2464 = vmatmul.mubr.msk.bf16.gmra.mrb[40].mxu1 %vm198_vm0, %v2608_v45 }
  0x5b   :  { %2471 = vmatprep.mubr.msk.bf16.mxu0 %vm198_vm0, %v2609_v46  ;;  %2519 = vmatprep.mubr.msk.bf16.mxu1 %vm198_vm0, %v2610_v47 }
  0x62   :  { %2472 = vmatmul.mubr.msk.bf16.vlgmr.msra.gmra.mrb[44].mxu0 %vm198_vm0, %v2611_v48  ;;  %2520 = vmatmul.mubr.msk.bf16.vlgmr.msra.gmra.mrb[44].mxu1 %vm198_vm0, %v2612_v49 }
  0x63   :  { %2475 = vmatprep.mubr.msk.bf16.mxu0 %vm198_vm0, %v2613_v50  ;;  %2523 = vmatprep.mubr.msk.bf16.mxu1 %vm198_vm0, %v2614_v51 }
  0x6a   :  { %2476 = vmatmul.mubr.msk.bf16.gmra.mrb[48].mxu0 %vm198_vm0, %v2615_v52  ;;  %2524 = vmatmul.mubr.msk.bf16.gmra.mrb[48].mxu1 %vm198_vm0, %v2616_v53 }
  0x6b   :  { %2479 = vmatprep.mubr.msk.bf16.mxu0 %vm198_vm0, %v2617_v54  ;;  %2527 = vmatprep.mubr.msk.bf16.mxu1 %vm198_vm0, %v2618_v55 }
  0x72   :  { %2480 = vmatmul.mubr.msk.bf16.gmra.mrb[52].mxu0 %vm198_vm0, %v2619_v56  ;;  %2528 = vmatmul.mubr.msk.bf16.gmra.mrb[52].mxu1 %vm198_vm0, %v2620_v57 }
  0x73   :  { %2483 = vmatprep.mubr.msk.bf16.mxu0 %vm198_vm0, %v2621_v58  ;;  %2531 = vmatprep.mubr.msk.bf16.mxu1 %vm198_vm0, %v2622_v59 }
  0x7a   :  { %2484 = vmatmul.mubr.msk.bf16.gmra.mrb[56].mxu0 %vm198_vm0, %v2623_v60  ;;  %2532 = vmatmul.mubr.msk.bf16.gmra.mrb[56].mxu1 %vm198_vm0, %v2624_v61 }
  0x7b   :  { %2487 = vmatprep.mubr.msk.bf16.mxu0 %vm198_vm0, %v2625_v62  ;;  %2535 = vmatprep.mubr.msk.bf16.mxu1 %vm198_vm0, %v2626_v63 }
  0x82   :  { %2488 = vmatmul.mubr.msk.bf16.gmra.mrb[60].mxu0 %vm198_vm0, %v2627_v0  ;;  %2536 = vmatmul.mubr.msk.bf16.gmra.mrb[60].mxu1 %vm198_vm0, %v2628_v1 }
  0x83   :  { %2491 = vmatprep.mubr.msk.bf16.mxu0 %vm198_vm0, %v2629_v2  ;;  %2539 = vmatprep.mubr.msk.bf16.mxu1 %vm198_vm0, %v2630_v3 }
  0x8a   :  { %2492 = vmatmul.mubr.msk.bf16.gmra.mrb[64].mxu0 %vm198_vm0, %v2631_v4  ;;  %2540 = vmatmul.mubr.msk.bf16.gmra.mrb[64].mxu1 %vm198_vm0, %v2632_v5 }
  0x8b   :  { %2495 = vmatprep.mubr.msk.bf16.mxu0 %vm198_vm0, %v2633_v6  ;;  %2543 = vmatprep.mubr.msk.bf16.mxu1 %vm198_vm0, %v2634_v7 }
  0x92   :  { %2496 = vmatmul.mubr.msk.bf16.gmra.mrb[68].mxu0 %vm198_vm0, %v2635_v8  ;;  %2544 = vmatmul.mubr.msk.bf16.gmra.mrb[68].mxu1 %vm198_vm0, %v2636_v9 }
  0x93   :  { %2499 = vmatprep.mubr.msk.bf16.mxu0 %vm198_vm0, %v2637_v10  ;;  %2547 = vmatprep.mubr.msk.bf16.mxu1 %vm198_vm0, %v2638_v11 }
  0x9a   :  { %2500 = vmatmul.mubr.msk.bf16.gmra.mrb[72].mxu0 %vm198_vm0, %v2639_v12  ;;  %2548 = vmatmul.mubr.msk.bf16.gmra.mrb[72].mxu1 %vm198_vm0, %v2640_v13 }
  0x9b   :  { %2503 = vmatprep.mubr.msk.bf16.mxu0 %vm198_vm0, %v2641_v14  ;;  %2551 = vmatprep.mubr.msk.bf16.mxu1 %vm198_vm0, %v2642_v15 }
  0xa2   :  { %2504 = vmatmul.mubr.msk.bf16.gmra.mrb[76].mxu0 %vm198_vm0, %v2643_v16  ;;  %2552 = vmatmul.mubr.msk.bf16.gmra.mrb[76].mxu1 %vm198_vm0, %v2644_v17 }
  0xa3   :  { %2507 = vmatprep.mubr.msk.bf16.mxu0 %vm198_vm0, %v2645_v18  ;;  %2555 = vmatprep.mubr.msk.bf16.mxu1 %vm198_vm0, %v2646_v19 }
  0xaa   :  { %2508 = vmatmul.mubr.msk.bf16.gmra.mrb[80].mxu0 %vm198_vm0, %v2647_v20  ;;  %2556 = vmatmul.mubr.msk.bf16.gmra.mrb[80].mxu1 %vm198_vm0, %v2648_v21 }
  0xab   :  { %2511 = vmatprep.mubr.msk.bf16.mxu0 %vm198_vm0, %v2649_v22  ;;  %2559 = vmatprep.mubr.msk.bf16.mxu1 %vm198_vm0, %v2650_v23 }
  0xb2   :  { %2512 = vmatmul.mubr.msk.bf16.gmra.mrb[84].mxu0 %vm198_vm0, %v2651_v24  ;;  %2560 = vmatmul.mubr.msk.bf16.gmra.mrb[84].mxu1 %vm198_vm0, %v2652_v25 }
  0xdd   :  { %v2377_v27 = vpop.f32.mrb[0].mxu0  ;;  %v2425_v28 = vpop.f32.mrb[0].mxu1 }
  0xde   :  { %v308_v29 = vadd.f32 %v2377_v27, %v3050_v26  ;;  %v776_v30 = vadd.f32 %v2425_v28, %v3050_v26  ;;  %v299_v31 = vpop.f32.mrb[1].mxu0  ;;  %v767_v32 = vpop.f32.mrb[1].mxu1 }
  0xdf   :  { %v300_v33 = vadd.f32 %v3050_v26, %v299_v31  ;;  %v768_v34 = vadd.f32 %v3050_v26, %v767_v32  ;;  %v2378_v35 = vpop.f32.mrb[2].mxu0  ;;  %v2426_v36 = vpop.f32.mrb[2].mxu1 }
  0xe0   :  { %v475_v37 = vmax.f32 %v308_v29, 0.0  ;;  %v943_v38 = vmax.f32 %v776_v30, 0.0  ;;  %v311_v39 = vadd.f32 %v2378_v35, %v3050_v26  ;;  %v779_v40 = vadd.f32 %v2426_v36, %v3050_v26  ;;  %v302_v41 = vpop.f32.mrb[3].mxu0  ;;  %v770_v42 = vpop.f32.mrb[3].mxu1 }
  0xe1   :  { %v473_v43 = vmax.f32 %v300_v33, 0.0  ;;  %v941_v44 = vmax.f32 %v768_v34, 0.0  ;;  %v303_v45 = vadd.f32 %v3050_v26, %v302_v41  ;;  %v771_v46 = vadd.f32 %v3050_v26, %v770_v42 }
  0xe2   :  { %v3060_v47 = vmax.f32 %v475_v37, %v943_v38  ;;  %v476_v48 = vmax.f32 %v311_v39, 0.0  ;;  %v944_v49 = vmax.f32 %v779_v40, 0.0 }
  0xe3   :  { %v3062_v50 = vmax.f32 %v473_v43, %v941_v44  ;;  %v474_v51 = vmax.f32 %v303_v45, 0.0  ;;  %v942_v52 = vmax.f32 %v771_v46, 0.0 }
  0xe4   :  { %v3064_v53 = vmax.f32 %v476_v48, %v944_v49 }
  0xe5   :  { %v3066_v54 = vmax.f32 %v474_v51, %v942_v52  ;;  %v2381_v55 = vpop.f32.mrb[4].mxu0  ;;  %v2429_v56 = vpop.f32.mrb[4].mxu1 }
  0xe6   :  { %v324_v57 = vadd.f32 %v2381_v55, %v3050_v26  ;;  %v792_v58 = vadd.f32 %v2429_v56, %v3050_v26  ;;  %v315_v59 = vpop.f32.mrb[5].mxu0  ;;  %v783_v60 = vpop.f32.mrb[5].mxu1 }
  0xe7   :  { %v316_v61 = vadd.f32 %v3050_v26, %v315_v59  ;;  %v784_v62 = vadd.f32 %v3050_v26, %v783_v60  ;;  %v2382_v63 = vpop.f32.mrb[6].mxu0  ;;  %v2430_v0 = vpop.f32.mrb[6].mxu1 }
  0xe8   :  { %v479_v1 = vmax.f32 %v324_v57, 0.0  ;;  %v947_v2 = vmax.f32 %v792_v58, 0.0  ;;  %v327_v3 = vadd.f32 %v2382_v63, %v3050_v26  ;;  %v795_v4 = vadd.f32 %v2430_v0, %v3050_v26  ;;  %v318_v5 = vpop.f32.mrb[7].mxu0  ;;  %v786_v6 = vpop.f32.mrb[7].mxu1 }
  0xe9   :  { %v477_v7 = vmax.f32 %v316_v61, 0.0  ;;  %v945_v8 = vmax.f32 %v784_v62, 0.0  ;;  %v319_v9 = vadd.f32 %v3050_v26, %v318_v5  ;;  %v787_v10 = vadd.f32 %v3050_v26, %v786_v6 }
  0xea   :  { %v3076_v11 = vmax.f32 %v479_v1, %v947_v2  ;;  %v480_v12 = vmax.f32 %v327_v3, 0.0  ;;  %v948_v13 = vmax.f32 %v795_v4, 0.0 }
  0xeb   :  { %v3078_v14 = vmax.f32 %v477_v7, %v945_v8  ;;  %v478_v15 = vmax.f32 %v319_v9, 0.0  ;;  %v946_v16 = vmax.f32 %v787_v10, 0.0 }
  0xec   :  { %v3080_v17 = vmax.f32 %v480_v12, %v948_v13 }
  0xed   :  { %v3082_v18 = vmax.f32 %v478_v15, %v946_v16  ;;  %v2385_v19 = vpop.f32.mrb[8].mxu0  ;;  %v2433_v20 = vpop.f32.mrb[8].mxu1 }
  0xee   :  { %v340_v21 = vadd.f32 %v2385_v19, %v3050_v26  ;;  %v808_v22 = vadd.f32 %v2433_v20, %v3050_v26  ;;  %v331_v23 = vpop.f32.mrb[9].mxu0  ;;  %v799_v24 = vpop.f32.mrb[9].mxu1 }
  0xef   :  { %v332_v25 = vadd.f32 %v3050_v26, %v331_v23  ;;  %v800_v27 = vadd.f32 %v3050_v26, %v799_v24  ;;  %v2386_v28 = vpop.f32.mrb[10].mxu0  ;;  %v2434_v29 = vpop.f32.mrb[10].mxu1 }
  0xf0   :  { %v483_v30 = vmax.f32 %v340_v21, 0.0  ;;  %v951_v31 = vmax.f32 %v808_v22, 0.0  ;;  %v343_v32 = vadd.f32 %v2386_v28, %v3050_v26  ;;  %v811_v33 = vadd.f32 %v2434_v29, %v3050_v26  ;;  %v334_v34 = vpop.f32.mrb[11].mxu0  ;;  %v802_v35 = vpop.f32.mrb[11].mxu1 }
  0xf1   :  { %v481_v36 = vmax.f32 %v332_v25, 0.0  ;;  %v949_v37 = vmax.f32 %v800_v27, 0.0  ;;  %v335_v38 = vadd.f32 %v3050_v26, %v334_v34  ;;  %v803_v39 = vadd.f32 %v3050_v26, %v802_v35 }
  0xf2   :  { %v3092_v40 = vmax.f32 %v483_v30, %v951_v31  ;;  %v484_v41 = vmax.f32 %v343_v32, 0.0  ;;  %v952_v42 = vmax.f32 %v811_v33, 0.0 }
  0xf3   :  { %v3094_v43 = vmax.f32 %v481_v36, %v949_v37  ;;  %v482_v44 = vmax.f32 %v335_v38, 0.0  ;;  %v950_v45 = vmax.f32 %v803_v39, 0.0 }
  0xf4   :  { %v3096_v46 = vmax.f32 %v484_v41, %v952_v42 }
  0xf5   :  { %v3098_v48 = vmax.f32 %v482_v44, %v950_v45  ;;  %v2389_v49 = vpop.f32.mrb[12].mxu0  ;;  %v2437_v51 = vpop.f32.mrb[12].mxu1 }
  0xf6   :  { %v356_v52 = vadd.f32 %v2389_v49, %v3050_v26  ;;  %v824_v55 = vadd.f32 %v2437_v51, %v3050_v26  ;;  %v347_v56 = vpop.f32.mrb[13].mxu0  ;;  %v815_v57 = vpop.f32.mrb[13].mxu1 }
  0xf7   :  { %v348_v58 = vadd.f32 %v3050_v26, %v347_v56  ;;  %v816_v59 = vadd.f32 %v3050_v26, %v815_v57  ;;  %v2390_v60 = vpop.f32.mrb[14].mxu0  ;;  %v2438_v61 = vpop.f32.mrb[14].mxu1 }
  0xf8   :  { %v487_v62 = vmax.f32 %v356_v52, 0.0  ;;  %v955_v63 = vmax.f32 %v824_v55, 0.0  ;;  %v359_v0 = vadd.f32 %v2390_v60, %v3050_v26  ;;  %v827_v1 = vadd.f32 %v2438_v61, %v3050_v26  ;;  %v350_v2 = vpop.f32.mrb[15].mxu0  ;;  %v818_v3 = vpop.f32.mrb[15].mxu1 }
  0xf9   :  { %v485_v4 = vmax.f32 %v348_v58, 0.0  ;;  %v953_v5 = vmax.f32 %v816_v59, 0.0  ;;  %v351_v6 = vadd.f32 %v3050_v26, %v350_v2  ;;  %v819_v7 = vadd.f32 %v3050_v26, %v818_v3 }
  0xfa   :  { %v3108_v8 = vmax.f32 %v487_v62, %v955_v63  ;;  %v488_v9 = vmax.f32 %v359_v0, 0.0  ;;  %v956_v10 = vmax.f32 %v827_v1, 0.0 }
  0xfb   :  { %v3110_v12 = vmax.f32 %v485_v4, %v953_v5  ;;  %v486_v13 = vmax.f32 %v351_v6, 0.0  ;;  %v954_v15 = vmax.f32 %v819_v7, 0.0 }
  0xfc   :  { %v3112_v16 = vmax.f32 %v488_v9, %v956_v10 }
  0xfd   :  { %v3114_v19 = vmax.f32 %v486_v13, %v954_v15  ;;  %v2393_v20 = vpop.f32.mrb[16].mxu0  ;;  %v2441_v21 = vpop.f32.mrb[16].mxu1 }
  0xfe   :  { %v372_v22 = vadd.f32 %v2393_v20, %v3050_v26  ;;  %v840_v23 = vadd.f32 %v2441_v21, %v3050_v26  ;;  %v363_v24 = vpop.f32.mrb[17].mxu0  ;;  %v831_v25 = vpop.f32.mrb[17].mxu1 }
  0xff   :  { %v364_v27 = vadd.f32 %v3050_v26, %v363_v24  ;;  %v832_v28 = vadd.f32 %v3050_v26, %v831_v25  ;;  %v2394_v29 = vpop.f32.mrb[18].mxu0  ;;  %v2442_v30 = vpop.f32.mrb[18].mxu1 }
 0x100   :  { %v491_v31 = vmax.f32 %v372_v22, 0.0  ;;  %v959_v32 = vmax.f32 %v840_v23, 0.0  ;;  %v375_v33 = vadd.f32 %v2394_v29, %v3050_v26  ;;  %v843_v34 = vadd.f32 %v2442_v30, %v3050_v26  ;;  %v366_v35 = vpop.f32.mrb[19].mxu0  ;;  %v834_v36 = vpop.f32.mrb[19].mxu1 }
 0x101   :  { %v489_v37 = vmax.f32 %v364_v27, 0.0  ;;  %v957_v38 = vmax.f32 %v832_v28, 0.0  ;;  %v367_v39 = vadd.f32 %v3050_v26, %v366_v35  ;;  %v835_v41 = vadd.f32 %v3050_v26, %v834_v36 }
 0x102   :  { %v3124_v42 = vmax.f32 %v491_v31, %v959_v32  ;;  %v492_v44 = vmax.f32 %v375_v33, 0.0  ;;  %v960_v45 = vmax.f32 %v843_v34, 0.0 }
 0x103   :  { %v3126_v49 = vmax.f32 %v489_v37, %v957_v38  ;;  %v490_v51 = vmax.f32 %v367_v39, 0.0  ;;  %v958_v52 = vmax.f32 %v835_v41, 0.0 }
 0x104   :  { %v3128_v55 = vmax.f32 %v492_v44, %v960_v45 }
 0x105   :  { %v3130_v56 = vmax.f32 %v490_v51, %v958_v52  ;;  %v2397_v57 = vpop.f32.mrb[20].mxu0  ;;  %v2445_v58 = vpop.f32.mrb[20].mxu1 }
 0x106   :  { %v388_v59 = vadd.f32 %v2397_v57, %v3050_v26  ;;  %v856_v60 = vadd.f32 %v2445_v58, %v3050_v26  ;;  %v379_v61 = vpop.f32.mrb[21].mxu0  ;;  %v847_v62 = vpop.f32.mrb[21].mxu1 }
 0x107   :  { %v380_v63 = vadd.f32 %v3050_v26, %v379_v61  ;;  %v848_v0 = vadd.f32 %v3050_v26, %v847_v62  ;;  %v2398_v1 = vpop.f32.mrb[22].mxu0  ;;  %v2446_v2 = vpop.f32.mrb[22].mxu1 }
 0x108   :  { %v495_v3 = vmax.f32 %v388_v59, 0.0  ;;  %v963_v4 = vmax.f32 %v856_v60, 0.0  ;;  %v391_v5 = vadd.f32 %v2398_v1, %v3050_v26  ;;  %v859_v6 = vadd.f32 %v2446_v2, %v3050_v26  ;;  %v382_v7 = vpop.f32.mrb[23].mxu0  ;;  %v850_v9 = vpop.f32.mrb[23].mxu1 }
 0x109   :  { %v493_v10 = vmax.f32 %v380_v63, 0.0  ;;  %v961_v13 = vmax.f32 %v848_v0, 0.0  ;;  %v383_v15 = vadd.f32 %v3050_v26, %v382_v7  ;;  %v851_v20 = vadd.f32 %v3050_v26, %v850_v9 }
 0x10a   :  { %v3140_v21 = vmax.f32 %v495_v3, %v963_v4  ;;  %v496_v22 = vmax.f32 %v391_v5, 0.0  ;;  %v964_v23 = vmax.f32 %v859_v6, 0.0 }
 0x10b   :  { %v3142_v24 = vmax.f32 %v493_v10, %v961_v13  ;;  %v494_v25 = vmax.f32 %v383_v15, 0.0  ;;  %v962_v27 = vmax.f32 %v851_v20, 0.0 }
 0x10c   :  { %v3144_v28 = vmax.f32 %v496_v22, %v964_v23 }
 0x10d   :  { %v3146_v29 = vmax.f32 %v494_v25, %v962_v27  ;;  %v2401_v30 = vpop.f32.mrb[24].mxu0  ;;  %v2449_v31 = vpop.f32.mrb[24].mxu1 }
 0x10e   :  { %v404_v32 = vadd.f32 %v2401_v30, %v3050_v26  ;;  %v872_v33 = vadd.f32 %v2449_v31, %v3050_v26  ;;  %v395_v34 = vpop.f32.mrb[25].mxu0  ;;  %v863_v35 = vpop.f32.mrb[25].mxu1 }
 0x10f   :  { %v396_v36 = vadd.f32 %v3050_v26, %v395_v34  ;;  %v864_v37 = vadd.f32 %v3050_v26, %v863_v35  ;;  %v2402_v38 = vpop.f32.mrb[26].mxu0  ;;  %v2450_v39 = vpop.f32.mrb[26].mxu1 }
 0x110   :  { %v499_v41 = vmax.f32 %v404_v32, 0.0  ;;  %v967_v44 = vmax.f32 %v872_v33, 0.0  ;;  %v407_v45 = vadd.f32 %v2402_v38, %v3050_v26  ;;  %v875_v51 = vadd.f32 %v2450_v39, %v3050_v26  ;;  %v398_v52 = vpop.f32.mrb[27].mxu0  ;;  %v866_v57 = vpop.f32.mrb[27].mxu1 }
 0x111   :  { %v497_v58 = vmax.f32 %v396_v36, 0.0  ;;  %v965_v59 = vmax.f32 %v864_v37, 0.0  ;;  %v399_v60 = vadd.f32 %v3050_v26, %v398_v52  ;;  %v867_v61 = vadd.f32 %v3050_v26, %v866_v57 }
 0x112   :  { %v3156_v62 = vmax.f32 %v499_v41, %v967_v44  ;;  %v500_v63 = vmax.f32 %v407_v45, 0.0  ;;  %v968_v0 = vmax.f32 %v875_v51, 0.0 }
 0x113   :  { %v3158_v1 = vmax.f32 %v497_v58, %v965_v59  ;;  %v498_v2 = vmax.f32 %v399_v60, 0.0  ;;  %v966_v3 = vmax.f32 %v867_v61, 0.0 }
 0x114   :  { %v3160_v4 = vmax.f32 %v500_v63, %v968_v0 }
 0x115   :  { %v3162_v5 = vmax.f32 %v498_v2, %v966_v3  ;;  %v2405_v6 = vpop.f32.mrb[28].mxu0  ;;  %v2453_v7 = vpop.f32.mrb[28].mxu1 }
 0x116   :  { %v420_v9 = vadd.f32 %v2405_v6, %v3050_v26  ;;  %v888_v10 = vadd.f32 %v2453_v7, %v3050_v26  ;;  %v411_v13 = vpop.f32.mrb[29].mxu0  ;;  %v879_v15 = vpop.f32.mrb[29].mxu1 }
 0x117   :  { %v412_v20 = vadd.f32 %v3050_v26, %v411_v13  ;;  %v880_v22 = vadd.f32 %v3050_v26, %v879_v15  ;;  %v2406_v23 = vpop.f32.mrb[30].mxu0  ;;  %v2454_v25 = vpop.f32.mrb[30].mxu1 }
 0x118   :  { %v503_v27 = vmax.f32 %v420_v9, 0.0  ;;  %v971_v30 = vmax.f32 %v888_v10, 0.0  ;;  %v423_v31 = vadd.f32 %v2406_v23, %v3050_v26  ;;  %v891_v32 = vadd.f32 %v2454_v25, %v3050_v26  ;;  %v414_v33 = vpop.f32.mrb[31].mxu0  ;;  %v882_v34 = vpop.f32.mrb[31].mxu1 }
 0x119   :  { %v501_v35 = vmax.f32 %v412_v20, 0.0  ;;  %v969_v36 = vmax.f32 %v880_v22, 0.0  ;;  %v415_v37 = vadd.f32 %v3050_v26, %v414_v33  ;;  %v883_v38 = vadd.f32 %v3050_v26, %v882_v34 }
 0x11a   :  { %v3172_v39 = vmax.f32 %v503_v27, %v971_v30  ;;  %v504_v41 = vmax.f32 %v423_v31, 0.0  ;;  %v972_v44 = vmax.f32 %v891_v32, 0.0 }
 0x11b   :  { %v3174_v45 = vmax.f32 %v501_v35, %v969_v36  ;;  %v502_v51 = vmax.f32 %v415_v37, 0.0  ;;  %v970_v52 = vmax.f32 %v883_v38, 0.0 }
 0x11c   :  { %v3176_v57 = vmax.f32 %v504_v41, %v972_v44 }
 0x11d   :  { %v3178_v58 = vmax.f32 %v502_v51, %v970_v52  ;;  %v2409_v59 = vpop.f32.mrb[32].mxu0  ;;  %v2457_v60 = vpop.f32.mrb[32].mxu1 }
 0x11e   :  { %v436_v61 = vadd.f32 %v2409_v59, %v3050_v26  ;;  %v904_v63 = vadd.f32 %v2457_v60, %v3050_v26  ;;  %v427_v0 = vpop.f32.mrb[33].mxu0  ;;  %v895_v2 = vpop.f32.mrb[33].mxu1 }
 0x11f   :  { %v428_v3 = vadd.f32 %v3050_v26, %v427_v0  ;;  %v896_v6 = vadd.f32 %v3050_v26, %v895_v2  ;;  %v2410_v7 = vpop.f32.mrb[34].mxu0  ;;  %v2458_v9 = vpop.f32.mrb[34].mxu1 }
 0x120   :  { %v507_v10 = vmax.f32 %v436_v61, 0.0  ;;  %v975_v13 = vmax.f32 %v904_v63, 0.0  ;;  %v439_v15 = vadd.f32 %v2410_v7, %v3050_v26  ;;  %v907_v20 = vadd.f32 %v2458_v9, %v3050_v26  ;;  %v430_v22 = vpop.f32.mrb[35].mxu0  ;;  %v898_v23 = vpop.f32.mrb[35].mxu1 }
 0x121   :  { %v505_v25 = vmax.f32 %v428_v3, 0.0  ;;  %v973_v27 = vmax.f32 %v896_v6, 0.0  ;;  %v431_v30 = vadd.f32 %v3050_v26, %v430_v22  ;;  %v899_v31 = vadd.f32 %v3050_v26, %v898_v23 }
 0x122   :  { %v3188_v32 = vmax.f32 %v507_v10, %v975_v13  ;;  %v508_v33 = vmax.f32 %v439_v15, 0.0  ;;  %v976_v34 = vmax.f32 %v907_v20, 0.0 }
 0x123   :  { %v3190_v35 = vmax.f32 %v505_v25, %v973_v27  ;;  %v506_v36 = vmax.f32 %v431_v30, 0.0  ;;  %v974_v37 = vmax.f32 %v899_v31, 0.0 }
 0x124   :  { %v3192_v38 = vmax.f32 %v508_v33, %v976_v34 }
 0x125   :  { %v3194_v41 = vmax.f32 %v506_v36, %v974_v37  ;;  %v2413_v44 = vpop.f32.mrb[36].mxu0  ;;  %v2461_v51 = vpop.f32.mrb[36].mxu1 }
 0x126   :  { %v452_v52 = vadd.f32 %v2413_v44, %v3050_v26  ;;  %v920_v59 = vadd.f32 %v2461_v51, %v3050_v26  ;;  %v443_v60 = vpop.f32.mrb[37].mxu0  ;;  %v911_v61 = vpop.f32.mrb[37].mxu1 }
 0x127   :  { %v444_v63 = vadd.f32 %v3050_v26, %v443_v60  ;;  %v912_v0 = vadd.f32 %v3050_v26, %v911_v61  ;;  %v2414_v2 = vpop.f32.mrb[38].mxu0  ;;  %v2462_v3 = vpop.f32.mrb[38].mxu1 }
 0x128   :  { %v511_v6 = vmax.f32 %v452_v52, 0.0  ;;  %v979_v7 = vmax.f32 %v920_v59, 0.0  ;;  %v455_v9 = vadd.f32 %v2414_v2, %v3050_v26  ;;  %v923_v10 = vadd.f32 %v2462_v3, %v3050_v26  ;;  %v446_v13 = vpop.f32.mrb[39].mxu0  ;;  %v914_v15 = vpop.f32.mrb[39].mxu1 }
 0x129   :  { %v509_v20 = vmax.f32 %v444_v63, 0.0  ;;  %v977_v22 = vmax.f32 %v912_v0, 0.0  ;;  %v447_v23 = vadd.f32 %v3050_v26, %v446_v13  ;;  %v915_v25 = vadd.f32 %v3050_v26, %v914_v15 }
 0x12a   :  { %v3204_v27 = vmax.f32 %v511_v6, %v979_v7  ;;  %v512_v30 = vmax.f32 %v455_v9, 0.0  ;;  %v980_v31 = vmax.f32 %v923_v10, 0.0 }
 0x12b   :  { %v3206_v33 = vmax.f32 %v509_v20, %v977_v22  ;;  %v510_v34 = vmax.f32 %v447_v23, 0.0  ;;  %v978_v36 = vmax.f32 %v915_v25, 0.0 }
 0x12c   :  { %v3208_v37 = vmax.f32 %v512_v30, %v980_v31 }
 0x12d   :  { %v3210_v44 = vmax.f32 %v510_v34, %v978_v36  ;;  %v2417_v51 = vpop.f32.mrb[40].mxu0  ;;  %v2465_v52 = vpop.f32.mrb[40].mxu1 }
 0x12e   :  { %v468_v59 = vadd.f32 %v2417_v51, %v3050_v26  ;;  %v936_v60 = vadd.f32 %v2465_v52, %v3050_v26  ;;  %v459_v61 = vpop.f32.mrb[41].mxu0  ;;  %v927_v63 = vpop.f32.mrb[41].mxu1 }
 0x12f   :  { %3494 = vst [vmem:[#allocation2_spill] sm:$0xff] %v3210_v44  ;;  %v460_v0 = vadd.f32 %v3050_v26, %v459_v61  ;;  %v928_v2 = vadd.f32 %v3050_v26, %v927_v63  ;;  %v2418_v3 = vpop.f32.mrb[42].mxu0  ;;  %v2466_v6 = vpop.f32.mrb[42].mxu1 }
 0x130   :  { %v515_v7 = vmax.f32 %v468_v59, 0.0  ;;  %v983_v9 = vmax.f32 %v936_v60, 0.0  ;;  %v462_v10 = vpop.f32.mrb[43].mxu0  ;;  %v930_v13 = vpop.f32.mrb[43].mxu1 }
 0x131   :  { %v513_v15 = vmax.f32 %v460_v0, 0.0  ;;  %v981_v20 = vmax.f32 %v928_v2, 0.0  ;;  %v463_v22 = vadd.f32 %v3050_v26, %v462_v10  ;;  %v931_v23 = vadd.f32 %v3050_v26, %v930_v13 }
 0x132   :  { %v3218_v25 = vmax.f32 %v515_v7, %v983_v9 }
 0x133   :  { %v3220_v30 = vmax.f32 %v513_v15, %v981_v20  ;;  %v514_v31 = vmax.f32 %v463_v22, 0.0  ;;  %v982_v34 = vmax.f32 %v931_v23, 0.0 }
 0x134   :  { %3495 = vst [vmem:[#allocation3_spill] sm:$0xff] %v3218_v25 }
 0x135   :  { %3496 = vst [vmem:[#allocation4_spill] sm:$0xff] %v3220_v30  ;;  %v3222_v36 = vmax.f32 %v514_v31, %v982_v34  ;;  %v2473_v51 = vpop.f32.mrb[44].mxu0  ;;  %v2521_v52 = vpop.f32.mrb[44].mxu1 }
 0x136   :  { %v1287_v59 = vadd.f32 %v2473_v51, %v3050_v26  ;;  %v1755_v60 = vadd.f32 %v2521_v52, %v3050_v26  ;;  %v1278_v61 = vpop.f32.mrb[45].mxu0  ;;  %v1746_v63 = vpop.f32.mrb[45].mxu1 }
 0x137   :  { %3497 = vst [vmem:[#allocation5_spill] sm:$0xff] %v3222_v36  ;;  %v1279_v0 = vadd.f32 %v3050_v26, %v1278_v61  ;;  %v1747_v2 = vadd.f32 %v3050_v26, %v1746_v63  ;;  %v2474_v3 = vpop.f32.mrb[46].mxu0  ;;  %v2522_v6 = vpop.f32.mrb[46].mxu1 }
 0x138   :  { %v1454_v7 = vmax.f32 %v1287_v59, 0.0  ;;  %v1922_v9 = vmax.f32 %v1755_v60, 0.0  ;;  %v1290_v10 = vadd.f32 %v2474_v3, %v3050_v26  ;;  %v1758_v13 = vadd.f32 %v2522_v6, %v3050_v26  ;;  %v1281_v15 = vpop.f32.mrb[47].mxu0  ;;  %v1749_v20 = vpop.f32.mrb[47].mxu1 }
 0x139   :  { %v1452_v22 = vmax.f32 %v1279_v0, 0.0  ;;  %v1920_v23 = vmax.f32 %v1747_v2, 0.0  ;;  %v1282_v31 = vadd.f32 %v3050_v26, %v1281_v15  ;;  %v1750_v34 = vadd.f32 %v3050_v26, %v1749_v20 }
 0x13a   :  { %v1965_v51 = vmax.f32 %v1454_v7, %v1922_v9  ;;  %v1455_v52 = vmax.f32 %v1290_v10, 0.0  ;;  %v1923_v61 = vmax.f32 %v1758_v13, 0.0 }
 0x13b   :  { %v1963_v63 = vmax.f32 %v1452_v22, %v1920_v23  ;;  %v1453_v36 = vmax.f32 %v1282_v31, 0.0  ;;  %v1921_v30 = vmax.f32 %v1750_v34, 0.0 }
 0x13c   :  { %v2008_v59 = vmax.f32 %v3060_v47, %v1965_v51  ;;  %v1966_v60 = vmax.f32 %v1455_v52, %v1923_v61 }
 0x13d   :  { %v2006_v3 = vmax.f32 %v3062_v50, %v1963_v63  ;;  %v1964_v6 = vmax.f32 %v1453_v36, %v1921_v30  ;;  %v2477_v25 = vpop.f32.mrb[48].mxu0  ;;  %v2525_v44 = vpop.f32.mrb[48].mxu1 }
 0x13e   :  { %2051 = vst [vmem:[%s3493_s6 + $0x10] sm:$0xff] %v2008_v59  ;;  %v2009_v0 = vmax.f32 %v3064_v53, %v1966_v60  ;;  %v1303_v2 = vadd.f32 %v2477_v25, %v3050_v26  ;;  %v1771_v7 = vadd.f32 %v2525_v44, %v3050_v26  ;;  %v1294_v9 = vpop.f32.mrb[49].mxu0  ;;  %v1762_v10 = vpop.f32.mrb[49].mxu1 }
 0x13f   :  { %2049 = vst [vmem:[%s3493_s6] sm:$0xff] %v2006_v3  ;;  %v2007_v47 = vmax.f32 %v3066_v54, %v1964_v6  ;;  %v1295_v50 = vadd.f32 %v3050_v26, %v1294_v9  ;;  %v1763_v30 = vadd.f32 %v3050_v26, %v1762_v10  ;;  %v2478_v36 = vpop.f32.mrb[50].mxu0  ;;  %v2526_v13 = vpop.f32.mrb[50].mxu1 }
 0x140   :  { %2052 = vst [vmem:[%s3493_s6 + $0x18] sm:$0xff] %v2009_v0  ;;  %v1458_v53 = vmax.f32 %v1303_v2, 0.0  ;;  %v1926_v44 = vmax.f32 %v1771_v7, 0.0  ;;  %v1306_v25 = vadd.f32 %v2478_v36, %v3050_v26  ;;  %v1774_v15 = vadd.f32 %v2526_v13, %v3050_v26  ;;  %v1297_v20 = vpop.f32.mrb[51].mxu0  ;;  %v1765_v22 = vpop.f32.mrb[51].mxu1 }
 0x141   :  { %2050 = vst [vmem:[%s3493_s6 + $0x8] sm:$0xff] %v2007_v47  ;;  %v1456_v54 = vmax.f32 %v1295_v50, 0.0  ;;  %v1924_v23 = vmax.f32 %v1763_v30, 0.0  ;;  %v1298_v31 = vadd.f32 %v3050_v26, %v1297_v20  ;;  %v1766_v34 = vadd.f32 %v3050_v26, %v1765_v22 }
 0x142   :  { %v1969_v51 = vmax.f32 %v1458_v53, %v1926_v44  ;;  %v1459_v52 = vmax.f32 %v1306_v25, 0.0  ;;  %v1927_v61 = vmax.f32 %v1774_v15, 0.0 }
 0x143   :  { %v1967_v63 = vmax.f32 %v1456_v54, %v1924_v23  ;;  %v1457_v59 = vmax.f32 %v1298_v31, 0.0  ;;  %v1925_v60 = vmax.f32 %v1766_v34, 0.0 }
 0x144   :  { %v2012_v3 = vmax.f32 %v3076_v11, %v1969_v51  ;;  %v1970_v6 = vmax.f32 %v1459_v52, %v1927_v61 }
 0x145   :  { %v2010_v0 = vmax.f32 %v3078_v14, %v1967_v63  ;;  %v1968_v2 = vmax.f32 %v1457_v59, %v1925_v60  ;;  %v2481_v7 = vpop.f32.mrb[52].mxu0  ;;  %v2529_v9 = vpop.f32.mrb[52].mxu1 }
 0x146   :  { %2055 = vst [vmem:[%s3493_s6 + $0x30] sm:$0xff] %v2012_v3  ;;  %v2013_v10 = vmax.f32 %v3080_v17, %v1970_v6  ;;  %v1319_v47 = vadd.f32 %v2481_v7, %v3050_v26  ;;  %v1787_v50 = vadd.f32 %v2529_v9, %v3050_v26  ;;  %v1310_v30 = vpop.f32.mrb[53].mxu0  ;;  %v1778_v36 = vpop.f32.mrb[53].mxu1 }
 0x147   :  { %2053 = vst [vmem:[%s3493_s6 + $0x20] sm:$0xff] %v2010_v0  ;;  %v2011_v11 = vmax.f32 %v3082_v18, %v1968_v2  ;;  %v1311_v14 = vadd.f32 %v3050_v26, %v1310_v30  ;;  %v1779_v13 = vadd.f32 %v3050_v26, %v1778_v36  ;;  %v2482_v53 = vpop.f32.mrb[54].mxu0  ;;  %v2530_v44 = vpop.f32.mrb[54].mxu1 }
 0x148   :  { %2056 = vst [vmem:[%s3493_s6 + $0x38] sm:$0xff] %v2013_v10  ;;  %v1462_v17 = vmax.f32 %v1319_v47, 0.0  ;;  %v1930_v25 = vmax.f32 %v1787_v50, 0.0  ;;  %v1322_v15 = vadd.f32 %v2482_v53, %v3050_v26  ;;  %v1790_v20 = vadd.f32 %v2530_v44, %v3050_v26  ;;  %v1313_v22 = vpop.f32.mrb[55].mxu0  ;;  %v1781_v54 = vpop.f32.mrb[55].mxu1 }
 0x149   :  { %2054 = vst [vmem:[%s3493_s6 + $0x28] sm:$0xff] %v2011_v11  ;;  %v1460_v18 = vmax.f32 %v1311_v14, 0.0  ;;  %v1928_v23 = vmax.f32 %v1779_v13, 0.0  ;;  %v1314_v31 = vadd.f32 %v3050_v26, %v1313_v22  ;;  %v1782_v34 = vadd.f32 %v3050_v26, %v1781_v54 }
 0x14a   :  { %v1973_v51 = vmax.f32 %v1462_v17, %v1930_v25  ;;  %v1463_v52 = vmax.f32 %v1322_v15, 0.0  ;;  %v1931_v61 = vmax.f32 %v1790_v20, 0.0 }
 0x14b   :  { %v1971_v63 = vmax.f32 %v1460_v18, %v1928_v23  ;;  %v1461_v59 = vmax.f32 %v1314_v31, 0.0  ;;  %v1929_v60 = vmax.f32 %v1782_v34, 0.0 }
 0x14c   :  { %v2016_v3 = vmax.f32 %v3092_v40, %v1973_v51  ;;  %v1974_v6 = vmax.f32 %v1463_v52, %v1931_v61 }
 0x14d   :  { %v2014_v0 = vmax.f32 %v3094_v43, %v1971_v63  ;;  %v1972_v2 = vmax.f32 %v1461_v59, %v1929_v60  ;;  %v2485_v7 = vpop.f32.mrb[56].mxu0  ;;  %v2533_v9 = vpop.f32.mrb[56].mxu1 }
 0x14e   :  { %2059 = vst [vmem:[%s3493_s6 + $0x50] sm:$0xff] %v2016_v3  ;;  %v2017_v10 = vmax.f32 %v3096_v46, %v1974_v6  ;;  %v1335_v47 = vadd.f32 %v2485_v7, %v3050_v26  ;;  %v1803_v50 = vadd.f32 %v2533_v9, %v3050_v26  ;;  %v1326_v30 = vpop.f32.mrb[57].mxu0  ;;  %v1794_v36 = vpop.f32.mrb[57].mxu1 }
 0x14f   :  { %2057 = vst [vmem:[%s3493_s6 + $0x40] sm:$0xff] %v2014_v0  ;;  %v2015_v40 = vmax.f32 %v3098_v48, %v1972_v2  ;;  %v1327_v43 = vadd.f32 %v3050_v26, %v1326_v30  ;;  %v1795_v11 = vadd.f32 %v3050_v26, %v1794_v36  ;;  %v2486_v14 = vpop.f32.mrb[58].mxu0  ;;  %v2534_v13 = vpop.f32.mrb[58].mxu1 }
 0x150   :  { %2060 = vst [vmem:[%s3493_s6 + $0x58] sm:$0xff] %v2017_v10  ;;  %v1466_v46 = vmax.f32 %v1335_v47, 0.0  ;;  %v1934_v53 = vmax.f32 %v1803_v50, 0.0  ;;  %v1338_v44 = vadd.f32 %v2486_v14, %v3050_v26  ;;  %v1806_v17 = vadd.f32 %v2534_v13, %v3050_v26  ;;  %v1329_v25 = vpop.f32.mrb[59].mxu0  ;;  %v1797_v15 = vpop.f32.mrb[59].mxu1 }
 0x151   :  { %2058 = vst [vmem:[%s3493_s6 + $0x48] sm:$0xff] %v2015_v40  ;;  %v1464_v48 = vmax.f32 %v1327_v43, 0.0  ;;  %v1932_v20 = vmax.f32 %v1795_v11, 0.0  ;;  %v1330_v22 = vadd.f32 %v3050_v26, %v1329_v25  ;;  %v1798_v54 = vadd.f32 %v3050_v26, %v1797_v15 }
 0x152   :  { %v1977_v18 = vmax.f32 %v1466_v46, %v1934_v53  ;;  %v1467_v23 = vmax.f32 %v1338_v44, 0.0  ;;  %v1935_v31 = vmax.f32 %v1806_v17, 0.0 }
 0x153   :  { %v1975_v34 = vmax.f32 %v1464_v48, %v1932_v20  ;;  %v1465_v51 = vmax.f32 %v1330_v22, 0.0  ;;  %v1933_v52 = vmax.f32 %v1798_v54, 0.0 }
 0x154   :  { %v2020_v61 = vmax.f32 %v3108_v8, %v1977_v18  ;;  %v1978_v63 = vmax.f32 %v1467_v23, %v1935_v31 }
 0x155   :  { %v2018_v59 = vmax.f32 %v3110_v12, %v1975_v34  ;;  %v1976_v60 = vmax.f32 %v1465_v51, %v1933_v52  ;;  %v2489_v3 = vpop.f32.mrb[60].mxu0  ;;  %v2537_v6 = vpop.f32.mrb[60].mxu1 }
 0x156   :  { %2063 = vst [vmem:[%s3493_s6 + $0x70] sm:$0xff] %v2020_v61  ;;  %v2021_v0 = vmax.f32 %v3112_v16, %v1978_v63  ;;  %v1351_v2 = vadd.f32 %v2489_v3, %v3050_v26  ;;  %v1819_v7 = vadd.f32 %v2537_v6, %v3050_v26  ;;  %v1342_v9 = vpop.f32.mrb[61].mxu0  ;;  %v1810_v10 = vpop.f32.mrb[61].mxu1 }
 0x157   :  { %2061 = vst [vmem:[%s3493_s6 + $0x60] sm:$0xff] %v2018_v59  ;;  %v2019_v8 = vmax.f32 %v3114_v19, %v1976_v60  ;;  %v1343_v12 = vadd.f32 %v3050_v26, %v1342_v9  ;;  %v1811_v47 = vadd.f32 %v3050_v26, %v1810_v10  ;;  %v2490_v50 = vpop.f32.mrb[62].mxu0  ;;  %v2538_v30 = vpop.f32.mrb[62].mxu1 }
 0x158   :  { %2064 = vst [vmem:[%s3493_s6 + $0x78] sm:$0xff] %v2021_v0  ;;  %v1470_v16 = vmax.f32 %v1351_v2, 0.0  ;;  %v1938_v36 = vmax.f32 %v1819_v7, 0.0  ;;  %v1354_v40 = vadd.f32 %v2490_v50, %v3050_v26  ;;  %v1822_v43 = vadd.f32 %v2538_v30, %v3050_v26  ;;  %v1345_v11 = vpop.f32.mrb[63].mxu0  ;;  %v1813_v14 = vpop.f32.mrb[63].mxu1 }
 0x159   :  { %2062 = vst [vmem:[%s3493_s6 + $0x68] sm:$0xff] %v2019_v8  ;;  %v1468_v19 = vmax.f32 %v1343_v12, 0.0  ;;  %v1936_v13 = vmax.f32 %v1811_v47, 0.0  ;;  %v1346_v46 = vadd.f32 %v3050_v26, %v1345_v11  ;;  %v1814_v53 = vadd.f32 %v3050_v26, %v1813_v14 }
 0x15a   :  { %v1981_v44 = vmax.f32 %v1470_v16, %v1938_v36  ;;  %v1471_v17 = vmax.f32 %v1354_v40, 0.0  ;;  %v1939_v25 = vmax.f32 %v1822_v43, 0.0 }
 0x15b   :  { %v1979_v15 = vmax.f32 %v1468_v19, %v1936_v13  ;;  %v1469_v48 = vmax.f32 %v1346_v46, 0.0  ;;  %v1937_v20 = vmax.f32 %v1814_v53, 0.0 }
 0x15c   :  { %v2024_v22 = vmax.f32 %v3124_v42, %v1981_v44  ;;  %v1982_v54 = vmax.f32 %v1471_v17, %v1939_v25  ;;  %v3361_v44 = vld [vmem:[%s3492_s5] ss:$0 sm:$0xff] }
 0x15d   :  { %v2022_v18 = vmax.f32 %v3126_v49, %v1979_v15  ;;  %v1980_v23 = vmax.f32 %v1469_v48, %v1937_v20  ;;  %v2493_v31 = vpop.f32.mrb[64].mxu0  ;;  %v2541_v34 = vpop.f32.mrb[64].mxu1 }
 0x15e   :  { %2067 = vst [vmem:[%s3493_s6 + $0x90] sm:$0xff] %v2024_v22  ;;  %v2025_v51 = vmax.f32 %v3128_v55, %v1982_v54  ;;  %v1367_v52 = vadd.f32 %v2493_v31, %v3050_v26  ;;  %v1835_v61 = vadd.f32 %v2541_v34, %v3050_v26  ;;  %v1358_v63 = vpop.f32.mrb[65].mxu0  ;;  %v1826_v59 = vpop.f32.mrb[65].mxu1 }
 0x15f   :  { %2065 = vst [vmem:[%s3493_s6 + $0x80] sm:$0xff] %v2022_v18  ;;  %v2023_v42 = vmax.f32 %v3130_v56, %v1980_v23  ;;  %v1359_v49 = vadd.f32 %v3050_v26, %v1358_v63  ;;  %v1827_v60 = vadd.f32 %v3050_v26, %v1826_v59  ;;  %v2494_v3 = vpop.f32.mrb[66].mxu0  ;;  %v2542_v6 = vpop.f32.mrb[66].mxu1 }
 0x160   :  { %2068 = vst [vmem:[%s3493_s6 + $0x98] sm:$0xff] %v2025_v51  ;;  %v1474_v55 = vmax.f32 %v1367_v52, 0.0  ;;  %v1942_v0 = vmax.f32 %v1835_v61, 0.0  ;;  %v1370_v2 = vadd.f32 %v2494_v3, %v3050_v26  ;;  %v1838_v7 = vadd.f32 %v2542_v6, %v3050_v26  ;;  %v1361_v9 = vpop.f32.mrb[67].mxu0  ;;  %v1829_v10 = vpop.f32.mrb[67].mxu1 }
 0x161   :  { %2066 = vst [vmem:[%s3493_s6 + $0x88] sm:$0xff] %v2023_v42  ;;  %v1472_v56 = vmax.f32 %v1359_v49, 0.0  ;;  %v1940_v8 = vmax.f32 %v1827_v60, 0.0  ;;  %v1362_v12 = vadd.f32 %v3050_v26, %v1361_v9  ;;  %v1830_v47 = vadd.f32 %v3050_v26, %v1829_v10 }
 0x162   :  { %v1985_v50 = vmax.f32 %v1474_v55, %v1942_v0  ;;  %v1475_v30 = vmax.f32 %v1370_v2, 0.0  ;;  %v1943_v16 = vmax.f32 %v1838_v7, 0.0 }
 0x163   :  { %v1983_v36 = vmax.f32 %v1472_v56, %v1940_v8  ;;  %v1473_v40 = vmax.f32 %v1362_v12, 0.0  ;;  %v1941_v43 = vmax.f32 %v1830_v47, 0.0 }
 0x164   :  { %v2028_v11 = vmax.f32 %v3140_v21, %v1985_v50  ;;  %v1986_v14 = vmax.f32 %v1475_v30, %v1943_v16 }
 0x165   :  { %v2026_v19 = vmax.f32 %v3142_v24, %v1983_v36  ;;  %v1984_v13 = vmax.f32 %v1473_v40, %v1941_v43  ;;  %v2497_v46 = vpop.f32.mrb[68].mxu0  ;;  %v2545_v53 = vpop.f32.mrb[68].mxu1 }
 0x166   :  { %2071 = vst [vmem:[%s3493_s6 + $0xb0] sm:$0xff] %v2028_v11  ;;  %v2029_v26 = vmax.f32 %v3144_v28, %v1986_v14  ;;  %v1383_v17 = vadd.f32 %v3361_v44, %v2497_v46  ;;  %v1851_v21 = vadd.f32 %v3361_v44, %v2545_v53  ;;  %v1374_v25 = vpop.f32.mrb[69].mxu0  ;;  %v1842_v24 = vpop.f32.mrb[69].mxu1 }
 0x167   :  { %2069 = vst [vmem:[%s3493_s6 + $0xa0] sm:$0xff] %v2026_v19  ;;  %v2027_v15 = vmax.f32 %v3146_v29, %v1984_v13  ;;  %v1375_v48 = vadd.f32 %v3361_v44, %v1374_v25  ;;  %v1843_v28 = vadd.f32 %v3361_v44, %v1842_v24  ;;  %v2498_v20 = vpop.f32.mrb[70].mxu0  ;;  %v2546_v22 = vpop.f32.mrb[70].mxu1 }
 0x168   :  { %2072 = vst [vmem:[%s3493_s6 + $0xb8] sm:$0xff] %v2029_v26  ;;  %v1478_v54 = vmax.f32 %v1383_v17, 0.0  ;;  %v1946_v18 = vmax.f32 %v1851_v21, 0.0  ;;  %v1386_v23 = vadd.f32 %v3361_v44, %v2498_v20  ;;  %v1854_v31 = vadd.f32 %v3361_v44, %v2546_v22  ;;  %v1377_v34 = vpop.f32.mrb[71].mxu0  ;;  %v1845_v51 = vpop.f32.mrb[71].mxu1 }
 0x169   :  { %2070 = vst [vmem:[%s3493_s6 + $0xa8] sm:$0xff] %v2027_v15  ;;  %v1476_v29 = vmax.f32 %v1375_v48, 0.0  ;;  %v1944_v52 = vmax.f32 %v1843_v28, 0.0  ;;  %v1378_v61 = vadd.f32 %v3361_v44, %v1377_v34  ;;  %v1846_v63 = vadd.f32 %v3361_v44, %v1845_v51 }
 0x16a   :  { %v1989_v59 = vmax.f32 %v1478_v54, %v1946_v18  ;;  %v1479_v42 = vmax.f32 %v1386_v23, 0.0  ;;  %v1947_v49 = vmax.f32 %v1854_v31, 0.0 }
 0x16b   :  { %v1987_v60 = vmax.f32 %v1476_v29, %v1944_v52  ;;  %v1477_v3 = vmax.f32 %v1378_v61, 0.0  ;;  %v1945_v6 = vmax.f32 %v1846_v63, 0.0 }
 0x16c   :  { %v2032_v55 = vmax.f32 %v3156_v62, %v1989_v59  ;;  %v1990_v0 = vmax.f32 %v1479_v42, %v1947_v49 }
 0x16d   :  { %v2030_v2 = vmax.f32 %v3158_v1, %v1987_v60  ;;  %v1988_v7 = vmax.f32 %v1477_v3, %v1945_v6  ;;  %v2501_v9 = vpop.f32.mrb[72].mxu0  ;;  %v2549_v10 = vpop.f32.mrb[72].mxu1 }
 0x16e   :  { %2075 = vst [vmem:[%s3493_s6 + $0xd0] sm:$0xff] %v2032_v55  ;;  %v2033_v56 = vmax.f32 %v3160_v4, %v1990_v0  ;;  %v1399_v8 = vadd.f32 %v3361_v44, %v2501_v9  ;;  %v1867_v12 = vadd.f32 %v3361_v44, %v2549_v10  ;;  %v1390_v47 = vpop.f32.mrb[73].mxu0  ;;  %v1858_v50 = vpop.f32.mrb[73].mxu1 }
 0x16f   :  { %2073 = vst [vmem:[%s3493_s6 + $0xc0] sm:$0xff] %v2030_v2  ;;  %v2031_v62 = vmax.f32 %v3162_v5, %v1988_v7  ;;  %v1391_v1 = vadd.f32 %v3361_v44, %v1390_v47  ;;  %v1859_v30 = vadd.f32 %v3361_v44, %v1858_v50  ;;  %v2502_v16 = vpop.f32.mrb[74].mxu0  ;;  %v2550_v36 = vpop.f32.mrb[74].mxu1 }
 0x170   :  { %2076 = vst [vmem:[%s3493_s6 + $0xd8] sm:$0xff] %v2033_v56  ;;  %v1482_v4 = vmax.f32 %v1399_v8, 0.0  ;;  %v1950_v40 = vmax.f32 %v1867_v12, 0.0  ;;  %v1402_v43 = vadd.f32 %v3361_v44, %v2502_v16  ;;  %v1870_v11 = vadd.f32 %v3361_v44, %v2550_v36  ;;  %v1393_v14 = vpop.f32.mrb[75].mxu0  ;;  %v1861_v19 = vpop.f32.mrb[75].mxu1 }
 0x171   :  { %2074 = vst [vmem:[%s3493_s6 + $0xc8] sm:$0xff] %v2031_v62  ;;  %v1480_v5 = vmax.f32 %v1391_v1, 0.0  ;;  %v1948_v13 = vmax.f32 %v1859_v30, 0.0  ;;  %v1394_v46 = vadd.f32 %v3361_v44, %v1393_v14  ;;  %v1862_v53 = vadd.f32 %v3361_v44, %v1861_v19 }
 0x172   :  { %v1993_v26 = vmax.f32 %v1482_v4, %v1950_v40  ;;  %v1483_v17 = vmax.f32 %v1402_v43, 0.0  ;;  %v1951_v21 = vmax.f32 %v1870_v11, 0.0 }
 0x173   :  { %v1991_v25 = vmax.f32 %v1480_v5, %v1948_v13  ;;  %v1481_v24 = vmax.f32 %v1394_v46, 0.0  ;;  %v1949_v15 = vmax.f32 %v1862_v53, 0.0 }
 0x174   :  { %v2036_v48 = vmax.f32 %v3172_v39, %v1993_v26  ;;  %v1994_v28 = vmax.f32 %v1483_v17, %v1951_v21 }
 0x175   :  { %v2034_v20 = vmax.f32 %v3174_v45, %v1991_v25  ;;  %v1992_v22 = vmax.f32 %v1481_v24, %v1949_v15  ;;  %v2505_v54 = vpop.f32.mrb[76].mxu0  ;;  %v2553_v18 = vpop.f32.mrb[76].mxu1 }
 0x176   :  { %2079 = vst [vmem:[%s3493_s6 + $0xf0] sm:$0xff] %v2036_v48  ;;  %v2037_v23 = vmax.f32 %v3176_v57, %v1994_v28  ;;  %v1415_v31 = vadd.f32 %v3361_v44, %v2505_v54  ;;  %v1883_v34 = vadd.f32 %v3361_v44, %v2553_v18  ;;  %v1406_v51 = vpop.f32.mrb[77].mxu0  ;;  %v1874_v29 = vpop.f32.mrb[77].mxu1 }
 0x177   :  { %2077 = vst [vmem:[%s3493_s6 + $0xe0] sm:$0xff] %v2034_v20  ;;  %v2035_v39 = vmax.f32 %v3178_v58, %v1992_v22  ;;  %v1407_v45 = vadd.f32 %v3361_v44, %v1406_v51  ;;  %v1875_v52 = vadd.f32 %v3361_v44, %v1874_v29  ;;  %v2506_v61 = vpop.f32.mrb[78].mxu0  ;;  %v2554_v63 = vpop.f32.mrb[78].mxu1 }
 0x178   :  { %2080 = vst [vmem:[%s3493_s6 + $0xf8] sm:$0xff] %v2037_v23  ;;  %v1486_v57 = vmax.f32 %v1415_v31, 0.0  ;;  %v1954_v59 = vmax.f32 %v1883_v34, 0.0  ;;  %v1418_v42 = vadd.f32 %v3361_v44, %v2506_v61  ;;  %v1886_v49 = vadd.f32 %v3361_v44, %v2554_v63  ;;  %v1409_v60 = vpop.f32.mrb[79].mxu0  ;;  %v1877_v3 = vpop.f32.mrb[79].mxu1 }
 0x179   :  { %2078 = vst [vmem:[%s3493_s6 + $0xe8] sm:$0xff] %v2035_v39  ;;  %v1484_v58 = vmax.f32 %v1407_v45, 0.0  ;;  %v1952_v6 = vmax.f32 %v1875_v52, 0.0  ;;  %v1410_v55 = vadd.f32 %v3361_v44, %v1409_v60  ;;  %v1878_v0 = vadd.f32 %v3361_v44, %v1877_v3 }
 0x17a   :  { %v1997_v2 = vmax.f32 %v1486_v57, %v1954_v59  ;;  %v1487_v7 = vmax.f32 %v1418_v42, 0.0  ;;  %v1955_v9 = vmax.f32 %v1886_v49, 0.0 }
 0x17b   :  { %v1995_v10 = vmax.f32 %v1484_v58, %v1952_v6  ;;  %v1485_v56 = vmax.f32 %v1410_v55, 0.0  ;;  %v1953_v8 = vmax.f32 %v1878_v0, 0.0 }
 0x17c   :  { %v2040_v12 = vmax.f32 %v3188_v32, %v1997_v2  ;;  %v1998_v47 = vmax.f32 %v1487_v7, %v1955_v9 }
 0x17d   :  { %v2038_v50 = vmax.f32 %v3190_v35, %v1995_v10  ;;  %v1996_v62 = vmax.f32 %v1485_v56, %v1953_v8  ;;  %v2509_v1 = vpop.f32.mrb[80].mxu0  ;;  %v2557_v30 = vpop.f32.mrb[80].mxu1  ;;  %v3499_v56 = vld [vmem:[#allocation3_spill] sm:$0xff] }
 0x17e   :  { %2083 = vst [vmem:[%s3493_s6 + $0x110] sm:$0xff] %v2040_v12  ;;  %v2041_v16 = vmax.f32 %v3192_v38, %v1998_v47  ;;  %v1431_v36 = vadd.f32 %v3361_v44, %v2509_v1  ;;  %v1899_v4 = vadd.f32 %v3361_v44, %v2557_v30  ;;  %v1422_v40 = vpop.f32.mrb[81].mxu0  ;;  %v1890_v43 = vpop.f32.mrb[81].mxu1  ;;  %v3500_v12 = vld [vmem:[#allocation4_spill] sm:$0xff] }
 0x17f   :  { %2081 = vst [vmem:[%s3493_s6 + $0x100] sm:$0xff] %v2038_v50  ;;  %v2039_v32 = vmax.f32 %v3194_v41, %v1996_v62  ;;  %v1423_v35 = vadd.f32 %v3361_v44, %v1422_v40  ;;  %v1891_v11 = vadd.f32 %v3361_v44, %v1890_v43  ;;  %v2510_v14 = vpop.f32.mrb[82].mxu0  ;;  %v2558_v19 = vpop.f32.mrb[82].mxu1  ;;  %v3501_v62 = vld [vmem:[#allocation5_spill] sm:$0xff] }
 0x180   :  { %2084 = vst [vmem:[%s3493_s6 + $0x118] sm:$0xff] %v2041_v16  ;;  %v1490_v38 = vmax.f32 %v1431_v36, 0.0  ;;  %v1958_v5 = vmax.f32 %v1899_v4, 0.0  ;;  %v1434_v13 = vadd.f32 %v3361_v44, %v2510_v14  ;;  %v1902_v46 = vadd.f32 %v3361_v44, %v2558_v19  ;;  %v1425_v53 = vpop.f32.mrb[83].mxu0  ;;  %v1893_v26 = vpop.f32.mrb[83].mxu1 }
 0x181   :  { %2082 = vst [vmem:[%s3493_s6 + $0x108] sm:$0xff] %v2039_v32  ;;  %v1488_v41 = vmax.f32 %v1423_v35, 0.0  ;;  %v1956_v17 = vmax.f32 %v1891_v11, 0.0  ;;  %v1426_v21 = vadd.f32 %v3361_v44, %v1425_v53  ;;  %v1894_v25 = vadd.f32 %v3361_v44, %v1893_v26 }
 0x182   :  { %v2001_v24 = vmax.f32 %v1490_v38, %v1958_v5  ;;  %v1491_v15 = vmax.f32 %v1434_v13, 0.0  ;;  %v1959_v48 = vmax.f32 %v1902_v46, 0.0 }
 0x183   :  { %v1999_v28 = vmax.f32 %v1488_v41, %v1956_v17  ;;  %v1489_v20 = vmax.f32 %v1426_v21, 0.0  ;;  %v1957_v22 = vmax.f32 %v1894_v25, 0.0 }
 0x184   :  { %v2044_v54 = vmax.f32 %v3204_v27, %v2001_v24  ;;  %v2002_v18 = vmax.f32 %v1491_v15, %v1959_v48  ;;  %v3498_v27 = vld [vmem:[#allocation2_spill] sm:$0xff] }
 0x185   :  { %v2042_v23 = vmax.f32 %v3206_v33, %v1999_v28  ;;  %v2000_v31 = vmax.f32 %v1489_v20, %v1957_v22  ;;  %v2513_v34 = vpop.f32.mrb[84].mxu0  ;;  %v2561_v51 = vpop.f32.mrb[84].mxu1 }
 0x186   :  { %2087 = vst [vmem:[%s3493_s6 + $0x130] sm:$0xff] %v2044_v54  ;;  %v2045_v29 = vmax.f32 %v3208_v37, %v2002_v18  ;;  %v1447_v39 = vadd.f32 %v3361_v44, %v2513_v34  ;;  %v1915_v45 = vadd.f32 %v3361_v44, %v2561_v51  ;;  %v1438_v52 = vpop.f32.mrb[85].mxu0  ;;  %v1906_v61 = vpop.f32.mrb[85].mxu1 }
 0x187   :  { %2085 = vst [vmem:[%s3493_s6 + $0x120] sm:$0xff] %v2042_v23  ;;  %v2043_v33 = vmax.f32 %v3498_v27, %v2000_v31  ;;  %v1439_v63 = vadd.f32 %v3361_v44, %v1438_v52  ;;  %v1907_v57 = vadd.f32 %v3361_v44, %v1906_v61  ;;  %v2514_v59 = vpop.f32.mrb[86].mxu0  ;;  %v2562_v42 = vpop.f32.mrb[86].mxu1 }
 0x188   :  { %2088 = vst [vmem:[%s3493_s6 + $0x138] sm:$0xff] %v2045_v29  ;;  %v1494_v37 = vmax.f32 %v1447_v39, 0.0  ;;  %v1962_v49 = vmax.f32 %v1915_v45, 0.0  ;;  %v1441_v60 = vpop.f32.mrb[87].mxu0  ;;  %v1909_v3 = vpop.f32.mrb[87].mxu1 }
 0x189   :  { %2086 = vst [vmem:[%s3493_s6 + $0x128] sm:$0xff] %v2043_v33  ;;  %v1492_v58 = vmax.f32 %v1439_v63, 0.0  ;;  %v1960_v6 = vmax.f32 %v1907_v57, 0.0  ;;  %v1442_v55 = vadd.f32 %v3361_v44, %v1441_v60  ;;  %v1910_v0 = vadd.f32 %v3361_v44, %v1909_v3 }
 0x18a   :  { %v2005_v2 = vmax.f32 %v1494_v37, %v1962_v49 }
 0x18b   :  { %v2003_v7 = vmax.f32 %v1492_v58, %v1960_v6  ;;  %v1493_v9 = vmax.f32 %v1442_v55, 0.0  ;;  %v1961_v10 = vmax.f32 %v1910_v0, 0.0 }
 0x18c   :  { %v2048_v8 = vmax.f32 %v3499_v56, %v2005_v2 }
 0x18d   :  { %v2046_v47 = vmax.f32 %v3500_v12, %v2003_v7  ;;  %v2004_v50 = vmax.f32 %v1493_v9, %v1961_v10 }
 0x18e   :  { %2091 = vst [vmem:[%s3493_s6 + $0x150] sm:$0xff] %v2048_v8 }
 0x18f   :  { %2089 = vst [vmem:[%s3493_s6 + $0x140] sm:$0xff] %v2046_v47  ;;  %v2047_v1 = vmax.f32 %v3501_v62, %v2004_v50 }
 0x191   :  { %2090 = vst [vmem:[%s3493_s6 + $0x148] sm:$0xff] %v2047_v1 }

// kernel: cnn_forward.5
= control target key start
LH: loop header
LB: loop body
LE: loop exit
PB: predicated region body
PF: predicated region fallthrough
CT: control target
= control target key end

     0   :  { %s2700_s4 = inlined_call_operand.vmem [shape: bf16[512,128], index: 4, kind: input, shape index: {}]   ;;  %s2701_s0 = inlined_call_operand.vmem [shape: bf16[72,512], index: 0, kind: input, shape index: {}]   ;;  %s2702_s1 = inlined_call_operand.vmem [shape: bf16[72,512], index: 1, kind: input, shape index: {}]   ;;  %s2703_s2 = inlined_call_operand.vmem [shape: bf16[72,512], index: 2, kind: input, shape index: {}]   ;;  %s2704_s3 = inlined_call_operand.vmem [shape: bf16[72,512], index: 3, kind: input, shape index: {}]   ;;  %s2705_s5 = inlined_call_operand.vmem [shape: f32[1,128], index: 5, kind: input, shape index: {}]   ;;  %s2706_s6 = inlined_call_operand.vmem [shape: f32[72,128], index: 6, kind: output, shape index: {}]  }
   0x1   :  { %v2050_v0 = vld [vmem:[%s2700_s4 + $0x40] sm:$0xff]   ;;  %v2073_v4 = vld [vmem:[%s2700_s4 + $0x48] sm:$0xff]   ;;  %v2097_v8 = vld [vmem:[%s2700_s4 + $0x50] sm:$0xff]  }
   0x2   :  { %v2055_v1 = vld [vmem:[%s2700_s4 + $0xc0] sm:$0xff]   ;;  %1500 = vmatprep.subr.bf16.mxu0 %v2050_v0  ;;  %v2079_v5 = vld [vmem:[%s2700_s4 + $0xc8] sm:$0xff]   ;;  %v2103_v9 = vld [vmem:[%s2700_s4 + $0xd0] sm:$0xff]  }
   0x3   :  { %v2061_v2 = vld [vmem:[%s2700_s4] sm:$0xff]   ;;  %1546 = vmatprep.subr.bf16.mxu1 %v2055_v1  ;;  %v2085_v6 = vld [vmem:[%s2700_s4 + $0x8] sm:$0xff]   ;;  %v2109_v10 = vld [vmem:[%s2700_s4 + $0x10] sm:$0xff]  }
   0x4   :  { %v2067_v3 = vld [vmem:[%s2700_s4 + $0x80] sm:$0xff]   ;;  %1501 = vmatpush3.bf16.msra.mxu0 %v2061_v2  ;;  %v2091_v7 = vld [vmem:[%s2700_s4 + $0x88] sm:$0xff]   ;;  %v2115_v11 = vld [vmem:[%s2700_s4 + $0x90] sm:$0xff]  }
   0x5   :  { %1547 = vmatpush3.bf16.msra.mxu1 %v2067_v3  ;;  %1502 = vmatprep.subr.bf16.mxu0 %v2073_v4  ;;  %v2121_v12 = vld [vmem:[%s2700_s4 + $0x58] sm:$0xff]   ;;  %v2145_v16 = vld [vmem:[%s2700_s4 + $0x60] sm:$0xff]   ;;  %v2169_v20 = vld [vmem:[%s2700_s4 + $0x68] sm:$0xff]  }
   0x6   :  { %1548 = vmatprep.subr.bf16.mxu1 %v2079_v5  ;;  %v2127_v13 = vld [vmem:[%s2700_s4 + $0xd8] sm:$0xff]   ;;  %v2151_v17 = vld [vmem:[%s2700_s4 + $0xe0] sm:$0xff]   ;;  %v2175_v21 = vld [vmem:[%s2700_s4 + $0xe8] sm:$0xff]  }
   0x7   :  { %v2133_v14 = vld [vmem:[%s2700_s4 + $0x18] sm:$0xff]   ;;  %v2157_v18 = vld [vmem:[%s2700_s4 + $0x20] sm:$0xff]   ;;  %v2181_v22 = vld [vmem:[%s2700_s4 + $0x28] sm:$0xff]  }
   0x8   :  { %1503 = vmatpush3.bf16.msra.mxu0 %v2085_v6  ;;  %v2139_v15 = vld [vmem:[%s2700_s4 + $0x98] sm:$0xff]   ;;  %v2163_v19 = vld [vmem:[%s2700_s4 + $0xa0] sm:$0xff]   ;;  %v2187_v23 = vld [vmem:[%s2700_s4 + $0xa8] sm:$0xff]  }
   0x9   :  { %1549 = vmatpush3.bf16.msra.mxu1 %v2091_v7  ;;  %1504 = vmatprep.subr.bf16.mxu0 %v2097_v8  ;;  %v2193_v24 = vld [vmem:[%s2700_s4 + $0x70] sm:$0xff]   ;;  %v2217_v28 = vld [vmem:[%s2700_s4 + $0x78] sm:$0xff]   ;;  %v105_v46 = vld [vmem:[%s2701_s0 + $0x80] sm:$0xff] }
   0xa   :  { %1550 = vmatprep.subr.bf16.mxu1 %v2103_v9  ;;  %v2199_v25 = vld [vmem:[%s2700_s4 + $0xf0] sm:$0xff]   ;;  %v2223_v29 = vld [vmem:[%s2700_s4 + $0xf8] sm:$0xff]   ;;  %v106_v47 = vld [vmem:[%s2701_s0 + $0x88] sm:$0xff]  ;;  %v1405_v50 = vcombine.high %v105_v46, %v105_v46  ;;  %v1404_v52 = vcombine.low %v105_v46, %v105_v46 }
   0xb   :  { %v2205_v26 = vld [vmem:[%s2700_s4 + $0x30] sm:$0xff]   ;;  %v2229_v30 = vld [vmem:[%s2700_s4 + $0x38] sm:$0xff]   ;;  %v1407_v51 = vcombine.high %v106_v47, %v106_v47  ;;  %v1406_v53 = vcombine.low %v106_v47, %v106_v47 }
   0xc   :  { %1505 = vmatpush3.bf16.msra.mxu0 %v2109_v10  ;;  %v2211_v27 = vld [vmem:[%s2700_s4 + $0xb0] sm:$0xff]   ;;  %v2235_v31 = vld [vmem:[%s2700_s4 + $0xb8] sm:$0xff]  }
   0xd   :  { %1551 = vmatpush3.bf16.msra.mxu1 %v2115_v11  ;;  %1506 = vmatprep.subr.bf16.mxu0 %v2121_v12  ;;  %v1900_v32 = vld [vmem:[%s2701_s0] ss:$16 sps:$4 sm:$0xff]   ;;  %v1902_v33 = vld [vmem:[%s2701_s0 + $0x4] ss:$16 sps:$4 sm:$0xff]   ;;  %v1903_v34 = vld [vmem:[%s2701_s0 + $0x8] ss:$16 sps:$4 sm:$0xff]  }
   0xe   :  { %1552 = vmatprep.subr.bf16.mxu1 %v2127_v13  ;;  %v1905_v35 = vld [vmem:[%s2701_s0 + $0xc] ss:$16 sps:$4 sm:$0xff]   ;;  %431 = vmatprep.mubr.bf16.mxu0 %v1902_v33  ;;  %v1906_v36 = vld [vmem:[%s2701_s0 + $0x24] ss:$16 sps:$4 sm:$0xff]   ;;  %v1910_v38 = vld [vmem:[%s2701_s0 + $0x20] ss:$16 sps:$4 sm:$0xff]  }
   0xf   :  { %503 = vmatprep.mubr.bf16.mxu1 %v1905_v35  ;;  %v1908_v37 = vld [vmem:[%s2701_s0 + $0x2c] ss:$16 sps:$4 sm:$0xff]   ;;  %v1911_v39 = vld [vmem:[%s2701_s0 + $0x28] ss:$16 sps:$4 sm:$0xff]   ;;  %v1912_v40 = vld [vmem:[%s2701_s0 + $0x44] ss:$16 sps:$4 sm:$0xff]  }
  0x10   :  { %1507 = vmatpush3.bf16.msra.mxu0 %v2133_v14  ;;  %v1914_v41 = vld [vmem:[%s2701_s0 + $0x4c] ss:$16 sps:$4 sm:$0xff]   ;;  %v1916_v42 = vld [vmem:[%s2701_s0 + $0x40] ss:$16 sps:$4 sm:$0xff]   ;;  %v1917_v43 = vld [vmem:[%s2701_s0 + $0x48] ss:$16 sps:$4 sm:$0xff]  }
  0x11   :  { %1553 = vmatpush3.bf16.msra.mxu1 %v2139_v15  ;;  %1508 = vmatprep.subr.bf16.mxu0 %v2145_v16  ;;  %v1918_v44 = vld [vmem:[%s2701_s0 + $0x64] ss:$16 sps:$4 sm:$0xff]   ;;  %v1920_v45 = vld [vmem:[%s2701_s0 + $0x6c] ss:$16 sps:$4 sm:$0xff]   ;;  %v1922_v48 = vld [vmem:[%s2701_s0 + $0x60] ss:$16 sps:$4 sm:$0xff]  }
  0x12   :  { %1554 = vmatprep.subr.bf16.mxu1 %v2151_v17  ;;  %v1923_v49 = vld [vmem:[%s2701_s0 + $0x68] ss:$16 sps:$4 sm:$0xff]   ;;  %v1930_v54 = vld [vmem:[%s2702_s1 + $0x4] ss:$16 sps:$4 sm:$0xff]   ;;  %v1933_v55 = vld [vmem:[%s2702_s1 + $0xc] ss:$16 sps:$4 sm:$0xff]  }
  0x13   :  { %v1928_v56 = vld [vmem:[%s2702_s1] ss:$16 sps:$4 sm:$0xff]   ;;  %v1931_v57 = vld [vmem:[%s2702_s1 + $0x8] ss:$16 sps:$4 sm:$0xff]   ;;  %v1934_v58 = vld [vmem:[%s2702_s1 + $0x24] ss:$16 sps:$4 sm:$0xff]  }
  0x14   :  { %1509 = vmatpush3.bf16.msra.mxu0 %v2157_v18  ;;  %v1936_v59 = vld [vmem:[%s2702_s1 + $0x2c] ss:$16 sps:$4 sm:$0xff]   ;;  %v1938_v60 = vld [vmem:[%s2702_s1 + $0x20] ss:$16 sps:$4 sm:$0xff]   ;;  %v1939_v61 = vld [vmem:[%s2702_s1 + $0x28] ss:$16 sps:$4 sm:$0xff]  }
  0x15   :  { %1555 = vmatpush3.bf16.msra.mxu1 %v2163_v19  ;;  %1510 = vmatprep.subr.bf16.mxu0 %v2169_v20  ;;  %v1940_v62 = vld [vmem:[%s2702_s1 + $0x44] ss:$16 sps:$4 sm:$0xff]   ;;  %v1942_v63 = vld [vmem:[%s2702_s1 + $0x4c] ss:$16 sps:$4 sm:$0xff]   ;;  %v1945_v33 = vld [vmem:[%s2702_s1 + $0x48] ss:$16 sps:$4 sm:$0xff]  }
  0x16   :  { %1556 = vmatprep.subr.bf16.mxu1 %v2175_v21  ;;  %v1948_v35 = vld [vmem:[%s2702_s1 + $0x6c] ss:$16 sps:$4 sm:$0xff]   ;;  %v1956_v46 = vld [vmem:[%s2703_s2] ss:$16 sps:$4 sm:$0xff]   ;;  %v1959_v47 = vld [vmem:[%s2703_s2 + $0x8] ss:$16 sps:$4 sm:$0xff]  }
  0x18   :  { %1511 = vmatpush3.bf16.msra.mxu0 %v2181_v22 }
  0x19   :  { %1557 = vmatpush3.bf16.msra.mxu1 %v2187_v23  ;;  %1512 = vmatprep.subr.bf16.mxu0 %v2193_v24 }
  0x1a   :  { %1558 = vmatprep.subr.bf16.mxu1 %v2199_v25 }
  0x1c   :  { %1513 = vmatpush3.bf16.msra.mxu0 %v2205_v26 }
  0x1d   :  { %1559 = vmatpush3.bf16.msra.mxu1 %v2211_v27  ;;  %1514 = vmatprep.subr.bf16.mxu0 %v2217_v28 }
  0x1e   :  { %1560 = vmatprep.subr.bf16.mxu1 %v2223_v29 }
  0x20   :  { %1515 = vmatpush3.bf16.msra.mxu0 %v2229_v30 }
  0x21   :  { %1561 = vmatpush3.bf16.msra.mxu1 %v2235_v31  ;;  %1592 = vmatprep.subr.bf16.mxu0 %v2050_v0 }
  0x22   :  { %1638 = vmatprep.subr.bf16.mxu1 %v2055_v1 }
  0x23   :  { %432 = vmatmul.mubr.bf16.vlgmr.msra.gmra.mrb[0].mxu0 %v1900_v32  ;;  %v1944_v32 = vld [vmem:[%s2702_s1 + $0x40] ss:$16 sps:$4 sm:$0xff]  }
  0x24   :  { %504 = vmatmul.mubr.bf16.vlgmr.msra.gmra.mrb[0].mxu1 %v1903_v34  ;;  %1593 = vmatpush3.bf16.msra.mxu0 %v2061_v2  ;;  %v1946_v34 = vld [vmem:[%s2702_s1 + $0x64] ss:$16 sps:$4 sm:$0xff]  }
  0x25   :  { %1639 = vmatpush3.bf16.msra.mxu1 %v2067_v3  ;;  %1594 = vmatprep.subr.bf16.mxu0 %v2073_v4 }
  0x26   :  { %439 = vmatprep.mubr.bf16.mxu0 %v1906_v36  ;;  %511 = vmatprep.mubr.bf16.mxu1 %v1908_v37  ;;  %v568_v36 = vld [vmem:[%s2702_s1 + $0x80] sm:$0xff]  ;;  %v569_v37 = vld [vmem:[%s2702_s1 + $0x88] sm:$0xff] }
  0x27   :  { %1640 = vmatprep.subr.bf16.mxu1 %v2079_v5 }
  0x28   :  { %1595 = vmatpush3.bf16.msra.mxu0 %v2085_v6 }
  0x29   :  { %1641 = vmatpush3.bf16.msra.mxu1 %v2091_v7  ;;  %1596 = vmatprep.subr.bf16.mxu0 %v2097_v8 }
  0x2a   :  { %1642 = vmatprep.subr.bf16.mxu1 %v2103_v9 }
  0x2b   :  { %440 = vmatmul.mubr.bf16.gmra.mrb[4].mxu0 %v1910_v38  ;;  %v1950_v38 = vld [vmem:[%s2702_s1 + $0x60] ss:$16 sps:$4 sm:$0xff]  }
  0x2c   :  { %512 = vmatmul.mubr.bf16.gmra.mrb[4].mxu1 %v1911_v39  ;;  %1597 = vmatpush3.bf16.msra.mxu0 %v2109_v10  ;;  %v1951_v39 = vld [vmem:[%s2702_s1 + $0x68] ss:$16 sps:$4 sm:$0xff]  }
  0x2d   :  { %1643 = vmatpush3.bf16.msra.mxu1 %v2115_v11  ;;  %447 = vmatprep.mubr.bf16.mxu0 %v1912_v40  ;;  %v1457_v40 = vcombine.high %v568_v36, %v568_v36 }
  0x2e   :  { %519 = vmatprep.mubr.bf16.mxu1 %v1914_v41  ;;  %1598 = vmatprep.subr.bf16.mxu0 %v2121_v12  ;;  %v1459_v41 = vcombine.high %v569_v37, %v569_v37 }
  0x2f   :  { %1644 = vmatprep.subr.bf16.mxu1 %v2127_v13 }
  0x30   :  { %1599 = vmatpush3.bf16.msra.mxu0 %v2133_v14 }
  0x31   :  { %1645 = vmatpush3.bf16.msra.mxu1 %v2139_v15  ;;  %1600 = vmatprep.subr.bf16.mxu0 %v2145_v16 }
  0x32   :  { %1646 = vmatprep.subr.bf16.mxu1 %v2151_v17 }
  0x33   :  { %448 = vmatmul.mubr.bf16.gmra.mrb[8].mxu0 %v1916_v42  ;;  %v1456_v42 = vcombine.low %v568_v36, %v568_v36 }
  0x34   :  { %520 = vmatmul.mubr.bf16.gmra.mrb[8].mxu1 %v1917_v43  ;;  %1601 = vmatpush3.bf16.msra.mxu0 %v2157_v18  ;;  %v1458_v43 = vcombine.low %v569_v37, %v569_v37 }
  0x35   :  { %455 = vmatprep.mubr.bf16.mxu0 %v1918_v44  ;;  %527 = vmatprep.mubr.bf16.mxu1 %v1920_v45  ;;  %v1958_v44 = vld [vmem:[%s2703_s2 + $0x4] ss:$16 sps:$4 sm:$0xff]   ;;  %v1961_v45 = vld [vmem:[%s2703_s2 + $0xc] ss:$16 sps:$4 sm:$0xff]  }
  0x36   :  { %1647 = vmatpush3.bf16.msra.mxu1 %v2163_v19  ;;  %1602 = vmatprep.subr.bf16.mxu0 %v2169_v20 }
  0x37   :  { %1648 = vmatprep.subr.bf16.mxu1 %v2175_v21 }
  0x38   :  { %1603 = vmatpush3.bf16.msra.mxu0 %v2181_v22 }
  0x39   :  { %1604 = vmatprep.subr.bf16.mxu0 %v2193_v24 }
  0x3a   :  { %1649 = vmatpush3.bf16.msra.mxu1 %v2187_v23 }
  0x3b   :  { %456 = vmatmul.mubr.bf16.gmra.mrb[12].mxu0 %v1922_v48  ;;  %1650 = vmatprep.subr.bf16.mxu1 %v2199_v25  ;;  %v1962_v48 = vld [vmem:[%s2703_s2 + $0x24] ss:$16 sps:$4 sm:$0xff]  }
  0x3c   :  { %528 = vmatmul.mubr.bf16.gmra.mrb[12].mxu1 %v1923_v49  ;;  %463 = vmatprep.mubr.bf16.mxu0 %v1405_v50  ;;  %v1967_v49 = vld [vmem:[%s2703_s2 + $0x28] ss:$16 sps:$4 sm:$0xff]   ;;  %v2006_v50 = vld [vmem:[%s2704_s3 + $0x60] ss:$16 sps:$4 sm:$0xff]  }
  0x3d   :  { %535 = vmatprep.mubr.bf16.mxu1 %v1407_v51  ;;  %1605 = vmatpush3.bf16.msra.mxu0 %v2205_v26  ;;  %v2007_v51 = vld [vmem:[%s2704_s3 + $0x68] ss:$16 sps:$4 sm:$0xff]  }
  0x3e   :  { %1651 = vmatpush3.bf16.msra.mxu1 %v2211_v27  ;;  %1606 = vmatprep.subr.bf16.mxu0 %v2217_v28 }
  0x3f   :  { %1652 = vmatprep.subr.bf16.mxu1 %v2223_v29 }
  0x41   :  { %1607 = vmatpush3.bf16.msra.mxu0 %v2229_v30 }
  0x42   :  { %1653 = vmatpush3.bf16.msra.mxu1 %v2235_v31  ;;  %1684 = vmatprep.subr.bf16.mxu0 %v2050_v0 }
  0x43   :  { %464 = vmatmul.mubr.bf16.gmra.mrb[16].mxu0 %v1404_v52  ;;  %1730 = vmatprep.subr.bf16.mxu1 %v2055_v1 }
  0x44   :  { %536 = vmatmul.mubr.bf16.gmra.mrb[16].mxu1 %v1406_v53  ;;  %696 = vmatprep.mubr.bf16.mxu0 %v1930_v54 }
  0x45   :  { %768 = vmatprep.mubr.bf16.mxu1 %v1933_v55 }
  0x4b   :  { %697 = vmatmul.mubr.bf16.vlgmr.msra.gmra.mrb[20].mxu0 %v1928_v56 }
  0x4c   :  { %769 = vmatmul.mubr.bf16.vlgmr.msra.gmra.mrb[20].mxu1 %v1931_v57  ;;  %1685 = vmatpush3.bf16.msra.mxu0 %v2061_v2 }
  0x4d   :  { %1731 = vmatpush3.bf16.msra.mxu1 %v2067_v3  ;;  %1686 = vmatprep.subr.bf16.mxu0 %v2073_v4 }
  0x4e   :  { %704 = vmatprep.mubr.bf16.mxu0 %v1934_v58  ;;  %776 = vmatprep.mubr.bf16.mxu1 %v1936_v59  ;;  %v2554_v58 = vld [vmem:[%s2705_s5] ss:$0 sm:$0xff] }
  0x4f   :  { %1732 = vmatprep.subr.bf16.mxu1 %v2079_v5 }
  0x50   :  { %1687 = vmatpush3.bf16.msra.mxu0 %v2085_v6 }
  0x51   :  { %1733 = vmatpush3.bf16.msra.mxu1 %v2091_v7  ;;  %1688 = vmatprep.subr.bf16.mxu0 %v2097_v8 }
  0x52   :  { %1734 = vmatprep.subr.bf16.mxu1 %v2103_v9 }
  0x53   :  { %705 = vmatmul.mubr.bf16.gmra.mrb[24].mxu0 %v1938_v60 }
  0x54   :  { %777 = vmatmul.mubr.bf16.gmra.mrb[24].mxu1 %v1939_v61  ;;  %1689 = vmatpush3.bf16.msra.mxu0 %v2109_v10 }
  0x55   :  { %1735 = vmatpush3.bf16.msra.mxu1 %v2115_v11  ;;  %712 = vmatprep.mubr.bf16.mxu0 %v1940_v62 }
  0x56   :  { %784 = vmatprep.mubr.bf16.mxu1 %v1942_v63  ;;  %1690 = vmatprep.subr.bf16.mxu0 %v2121_v12 }
  0x57   :  { %1736 = vmatprep.subr.bf16.mxu1 %v2127_v13 }
  0x58   :  { %1691 = vmatpush3.bf16.msra.mxu0 %v2133_v14 }
  0x59   :  { %1737 = vmatpush3.bf16.msra.mxu1 %v2139_v15  ;;  %1692 = vmatprep.subr.bf16.mxu0 %v2145_v16 }
  0x5a   :  { %1738 = vmatprep.subr.bf16.mxu1 %v2151_v17 }
  0x5b   :  { %713 = vmatmul.mubr.bf16.gmra.mrb[28].mxu0 %v1944_v32 }
  0x5c   :  { %785 = vmatmul.mubr.bf16.gmra.mrb[28].mxu1 %v1945_v33  ;;  %1693 = vmatpush3.bf16.msra.mxu0 %v2157_v18 }
  0x5d   :  { %720 = vmatprep.mubr.bf16.mxu0 %v1946_v34  ;;  %792 = vmatprep.mubr.bf16.mxu1 %v1948_v35 }
  0x5e   :  { %1739 = vmatpush3.bf16.msra.mxu1 %v2163_v19  ;;  %1694 = vmatprep.subr.bf16.mxu0 %v2169_v20 }
  0x5f   :  { %1740 = vmatprep.subr.bf16.mxu1 %v2175_v21 }
  0x60   :  { %1695 = vmatpush3.bf16.msra.mxu0 %v2181_v22 }
  0x61   :  { %1696 = vmatprep.subr.bf16.mxu0 %v2193_v24 }
  0x62   :  { %1741 = vmatpush3.bf16.msra.mxu1 %v2187_v23 }
  0x63   :  { %721 = vmatmul.mubr.bf16.gmra.mrb[32].mxu0 %v1950_v38  ;;  %1742 = vmatprep.subr.bf16.mxu1 %v2199_v25 }
  0x64   :  { %793 = vmatmul.mubr.bf16.gmra.mrb[32].mxu1 %v1951_v39  ;;  %728 = vmatprep.mubr.bf16.mxu0 %v1457_v40 }
  0x65   :  { %800 = vmatprep.mubr.bf16.mxu1 %v1459_v41  ;;  %1697 = vmatpush3.bf16.msra.mxu0 %v2205_v26 }
  0x66   :  { %1743 = vmatpush3.bf16.msra.mxu1 %v2211_v27  ;;  %1698 = vmatprep.subr.bf16.mxu0 %v2217_v28 }
  0x67   :  { %1744 = vmatprep.subr.bf16.mxu1 %v2223_v29 }
  0x69   :  { %1699 = vmatpush3.bf16.msra.mxu0 %v2229_v30 }
  0x6a   :  { %1745 = vmatpush3.bf16.msra.mxu1 %v2235_v31  ;;  %1776 = vmatprep.subr.bf16.mxu0 %v2050_v0  ;;  %v1964_v0 = vld [vmem:[%s2703_s2 + $0x2c] ss:$16 sps:$4 sm:$0xff]  }
  0x6b   :  { %729 = vmatmul.mubr.bf16.gmra.mrb[36].mxu0 %v1456_v42  ;;  %1822 = vmatprep.subr.bf16.mxu1 %v2055_v1  ;;  %v1966_v1 = vld [vmem:[%s2703_s2 + $0x20] ss:$16 sps:$4 sm:$0xff]  }
  0x6c   :  { %801 = vmatmul.mubr.bf16.gmra.mrb[36].mxu1 %v1458_v43  ;;  %970 = vmatprep.mubr.bf16.mxu0 %v1958_v44 }
  0x6d   :  { %1042 = vmatprep.mubr.bf16.mxu1 %v1961_v45 }
  0x73   :  { %971 = vmatmul.mubr.bf16.vlgmr.msra.gmra.mrb[40].mxu0 %v1956_v46 }
  0x74   :  { %1043 = vmatmul.mubr.bf16.vlgmr.msra.gmra.mrb[40].mxu1 %v1959_v47  ;;  %1777 = vmatpush3.bf16.msra.mxu0 %v2061_v2  ;;  %v1968_v2 = vld [vmem:[%s2703_s2 + $0x44] ss:$16 sps:$4 sm:$0xff]  }
  0x75   :  { %1823 = vmatpush3.bf16.msra.mxu1 %v2067_v3  ;;  %1778 = vmatprep.subr.bf16.mxu0 %v2073_v4  ;;  %v1970_v3 = vld [vmem:[%s2703_s2 + $0x4c] ss:$16 sps:$4 sm:$0xff]   ;;  %v1972_v4 = vld [vmem:[%s2703_s2 + $0x40] ss:$16 sps:$4 sm:$0xff]  }
  0x76   :  { %978 = vmatprep.mubr.bf16.mxu0 %v1962_v48  ;;  %1050 = vmatprep.mubr.bf16.mxu1 %v1964_v0 }
  0x77   :  { %1824 = vmatprep.subr.bf16.mxu1 %v2079_v5  ;;  %v1973_v5 = vld [vmem:[%s2703_s2 + $0x48] ss:$16 sps:$4 sm:$0xff]  }
  0x78   :  { %1779 = vmatpush3.bf16.msra.mxu0 %v2085_v6  ;;  %v1974_v6 = vld [vmem:[%s2703_s2 + $0x64] ss:$16 sps:$4 sm:$0xff]  }
  0x79   :  { %1825 = vmatpush3.bf16.msra.mxu1 %v2091_v7  ;;  %1780 = vmatprep.subr.bf16.mxu0 %v2097_v8  ;;  %v1976_v7 = vld [vmem:[%s2703_s2 + $0x6c] ss:$16 sps:$4 sm:$0xff]   ;;  %v842_v8 = vld [vmem:[%s2703_s2 + $0x80] sm:$0xff] }
  0x7a   :  { %1826 = vmatprep.subr.bf16.mxu1 %v2103_v9  ;;  %v843_v9 = vld [vmem:[%s2703_s2 + $0x88] sm:$0xff] }
  0x7b   :  { %979 = vmatmul.mubr.bf16.gmra.mrb[44].mxu0 %v1966_v1 }
  0x7c   :  { %1051 = vmatmul.mubr.bf16.gmra.mrb[44].mxu1 %v1967_v49  ;;  %1781 = vmatpush3.bf16.msra.mxu0 %v2109_v10  ;;  %v1978_v10 = vld [vmem:[%s2703_s2 + $0x60] ss:$16 sps:$4 sm:$0xff]  }
  0x7d   :  { %1827 = vmatpush3.bf16.msra.mxu1 %v2115_v11  ;;  %986 = vmatprep.mubr.bf16.mxu0 %v1968_v2  ;;  %v1979_v11 = vld [vmem:[%s2703_s2 + $0x68] ss:$16 sps:$4 sm:$0xff]  }
  0x7e   :  { %1058 = vmatprep.mubr.bf16.mxu1 %v1970_v3  ;;  %1782 = vmatprep.subr.bf16.mxu0 %v2121_v12  ;;  %v1477_v12 = vcombine.high %v842_v8, %v842_v8 }
  0x7f   :  { %1828 = vmatprep.subr.bf16.mxu1 %v2127_v13  ;;  %v1479_v13 = vcombine.high %v843_v9, %v843_v9 }
  0x80   :  { %1783 = vmatpush3.bf16.msra.mxu0 %v2133_v14  ;;  %v1476_v14 = vcombine.low %v842_v8, %v842_v8 }
  0x81   :  { %1829 = vmatpush3.bf16.msra.mxu1 %v2139_v15  ;;  %1784 = vmatprep.subr.bf16.mxu0 %v2145_v16  ;;  %v1478_v15 = vcombine.low %v843_v9, %v843_v9  ;;  %v1986_v16 = vld [vmem:[%s2704_s3 + $0x4] ss:$16 sps:$4 sm:$0xff]  }
  0x82   :  { %1830 = vmatprep.subr.bf16.mxu1 %v2151_v17  ;;  %v1989_v17 = vld [vmem:[%s2704_s3 + $0xc] ss:$16 sps:$4 sm:$0xff]  }
  0x83   :  { %987 = vmatmul.mubr.bf16.gmra.mrb[48].mxu0 %v1972_v4 }
  0x84   :  { %1059 = vmatmul.mubr.bf16.gmra.mrb[48].mxu1 %v1973_v5  ;;  %1785 = vmatpush3.bf16.msra.mxu0 %v2157_v18  ;;  %v1984_v18 = vld [vmem:[%s2704_s3] ss:$16 sps:$4 sm:$0xff]  }
  0x85   :  { %994 = vmatprep.mubr.bf16.mxu0 %v1974_v6  ;;  %1066 = vmatprep.mubr.bf16.mxu1 %v1976_v7 }
  0x86   :  { %1831 = vmatpush3.bf16.msra.mxu1 %v2163_v19  ;;  %1786 = vmatprep.subr.bf16.mxu0 %v2169_v20  ;;  %v1987_v19 = vld [vmem:[%s2704_s3 + $0x8] ss:$16 sps:$4 sm:$0xff]   ;;  %v1990_v20 = vld [vmem:[%s2704_s3 + $0x24] ss:$16 sps:$4 sm:$0xff]  }
  0x87   :  { %1832 = vmatprep.subr.bf16.mxu1 %v2175_v21  ;;  %v1992_v21 = vld [vmem:[%s2704_s3 + $0x2c] ss:$16 sps:$4 sm:$0xff]  }
  0x88   :  { %1787 = vmatpush3.bf16.msra.mxu0 %v2181_v22  ;;  %v1994_v22 = vld [vmem:[%s2704_s3 + $0x20] ss:$16 sps:$4 sm:$0xff]  }
  0x89   :  { %1788 = vmatprep.subr.bf16.mxu0 %v2193_v24  ;;  %v1996_v24 = vld [vmem:[%s2704_s3 + $0x44] ss:$16 sps:$4 sm:$0xff]  }
  0x8a   :  { %1833 = vmatpush3.bf16.msra.mxu1 %v2187_v23  ;;  %v1995_v23 = vld [vmem:[%s2704_s3 + $0x28] ss:$16 sps:$4 sm:$0xff]  }
  0x8b   :  { %995 = vmatmul.mubr.bf16.gmra.mrb[52].mxu0 %v1978_v10  ;;  %1834 = vmatprep.subr.bf16.mxu1 %v2199_v25  ;;  %v1998_v25 = vld [vmem:[%s2704_s3 + $0x4c] ss:$16 sps:$4 sm:$0xff]  }
  0x8c   :  { %1067 = vmatmul.mubr.bf16.gmra.mrb[52].mxu1 %v1979_v11  ;;  %1002 = vmatprep.mubr.bf16.mxu0 %v1477_v12 }
  0x8d   :  { %1074 = vmatprep.mubr.bf16.mxu1 %v1479_v13  ;;  %1789 = vmatpush3.bf16.msra.mxu0 %v2205_v26  ;;  %v2000_v26 = vld [vmem:[%s2704_s3 + $0x40] ss:$16 sps:$4 sm:$0xff]  }
  0x8e   :  { %1835 = vmatpush3.bf16.msra.mxu1 %v2211_v27  ;;  %1790 = vmatprep.subr.bf16.mxu0 %v2217_v28  ;;  %v2001_v27 = vld [vmem:[%s2704_s3 + $0x48] ss:$16 sps:$4 sm:$0xff]   ;;  %v2002_v28 = vld [vmem:[%s2704_s3 + $0x64] ss:$16 sps:$4 sm:$0xff]  }
  0x8f   :  { %1836 = vmatprep.subr.bf16.mxu1 %v2223_v29  ;;  %v2004_v29 = vld [vmem:[%s2704_s3 + $0x6c] ss:$16 sps:$4 sm:$0xff]  }
  0x91   :  { %1791 = vmatpush3.bf16.msra.mxu0 %v2229_v30  ;;  %v1107_v30 = vld [vmem:[%s2704_s3 + $0x80] sm:$0xff] }
  0x92   :  { %1837 = vmatpush3.bf16.msra.mxu1 %v2235_v31  ;;  %v1108_v31 = vld [vmem:[%s2704_s3 + $0x88] sm:$0xff]  ;;  %v1497_v52 = vcombine.high %v1107_v30, %v1107_v30  ;;  %v1496_v54 = vcombine.low %v1107_v30, %v1107_v30 }
  0x93   :  { %1003 = vmatmul.mubr.bf16.gmra.mrb[56].mxu0 %v1476_v14  ;;  %v1499_v53 = vcombine.high %v1108_v31, %v1108_v31  ;;  %v1498_v55 = vcombine.low %v1108_v31, %v1108_v31 }
  0x94   :  { %1075 = vmatmul.mubr.bf16.gmra.mrb[56].mxu1 %v1478_v15  ;;  %1235 = vmatprep.mubr.bf16.mxu0 %v1986_v16 }
  0x95   :  { %1307 = vmatprep.mubr.bf16.mxu1 %v1989_v17 }
  0x9b   :  { %1236 = vmatmul.mubr.bf16.vlgmr.msra.gmra.mrb[60].mxu0 %v1984_v18 }
  0x9c   :  { %1308 = vmatmul.mubr.bf16.vlgmr.msra.gmra.mrb[60].mxu1 %v1987_v19  ;;  %1243 = vmatprep.mubr.bf16.mxu0 %v1990_v20 }
  0x9d   :  { %1315 = vmatprep.mubr.bf16.mxu1 %v1992_v21 }
  0xa3   :  { %1244 = vmatmul.mubr.bf16.gmra.mrb[64].mxu0 %v1994_v22 }
  0xa4   :  { %1316 = vmatmul.mubr.bf16.gmra.mrb[64].mxu1 %v1995_v23  ;;  %1251 = vmatprep.mubr.bf16.mxu0 %v1996_v24 }
  0xa5   :  { %1323 = vmatprep.mubr.bf16.mxu1 %v1998_v25 }
  0xab   :  { %1252 = vmatmul.mubr.bf16.gmra.mrb[68].mxu0 %v2000_v26 }
  0xac   :  { %1324 = vmatmul.mubr.bf16.gmra.mrb[68].mxu1 %v2001_v27  ;;  %1259 = vmatprep.mubr.bf16.mxu0 %v2002_v28 }
  0xad   :  { %1331 = vmatprep.mubr.bf16.mxu1 %v2004_v29 }
  0xb3   :  { %1260 = vmatmul.mubr.bf16.gmra.mrb[72].mxu0 %v2006_v50 }
  0xb4   :  { %1332 = vmatmul.mubr.bf16.gmra.mrb[72].mxu1 %v2007_v51  ;;  %1267 = vmatprep.mubr.bf16.mxu0 %v1497_v52 }
  0xb5   :  { %1339 = vmatprep.mubr.bf16.mxu1 %v1499_v53 }
  0xbb   :  { %1268 = vmatmul.mubr.bf16.gmra.mrb[76].mxu0 %v1496_v54 }
  0xbc   :  { %1340 = vmatmul.mubr.bf16.gmra.mrb[76].mxu1 %v1498_v55 }
  0xf6   :  { %v1516_v56 = vpop.f32.mrb[0].mxu0 }
  0xf7   :  { %v1562_v57 = vpop.f32.mrb[0].mxu1  ;;  %v1517_v59 = vpop.f32.mrb[1].mxu0 }
  0xf8   :  { %v1518_v60 = vadd.f32 %v1517_v59, %v1516_v56  ;;  %v1563_v61 = vpop.f32.mrb[1].mxu1  ;;  %v1519_v62 = vpop.f32.mrb[2].mxu0 }
  0xf9   :  { %v1564_v63 = vadd.f32 %v1563_v61, %v1562_v57  ;;  %v1565_v32 = vpop.f32.mrb[2].mxu1  ;;  %v1520_v33 = vpop.f32.mrb[3].mxu0 }
  0xfa   :  { %v434_v34 = vadd.f32 %v1518_v60, %v2554_v58  ;;  %v1521_v35 = vadd.f32 %v1520_v33, %v1519_v62  ;;  %v1566_v36 = vpop.f32.mrb[3].mxu1 }
  0xfb   :  { %v1567_v37 = vadd.f32 %v1566_v36, %v1565_v32 }
  0xfc   :  { %v2557_v38 = vadd.f32 %v1564_v63, %v434_v34  ;;  %v437_v39 = vadd.f32 %v1521_v35, %v2554_v58 }
  0xfe   :  { %v2560_v40 = vadd.f32 %v1567_v37, %v437_v39  ;;  %v1522_v41 = vpop.f32.mrb[4].mxu0 }
  0xff   :  { %v1568_v42 = vpop.f32.mrb[4].mxu1  ;;  %v1523_v43 = vpop.f32.mrb[5].mxu0 }
 0x100   :  { %v1524_v44 = vadd.f32 %v1523_v43, %v1522_v41  ;;  %v1569_v45 = vpop.f32.mrb[5].mxu1  ;;  %v1525_v46 = vpop.f32.mrb[6].mxu0 }
 0x101   :  { %v1570_v47 = vadd.f32 %v1569_v45, %v1568_v42  ;;  %v1571_v48 = vpop.f32.mrb[6].mxu1  ;;  %v1526_v0 = vpop.f32.mrb[7].mxu0 }
 0x102   :  { %v442_v1 = vadd.f32 %v1524_v44, %v2554_v58  ;;  %v1527_v49 = vadd.f32 %v1526_v0, %v1525_v46  ;;  %v1572_v2 = vpop.f32.mrb[7].mxu1 }
 0x103   :  { %v1573_v3 = vadd.f32 %v1572_v2, %v1571_v48 }
 0x104   :  { %v2563_v4 = vadd.f32 %v1570_v47, %v442_v1  ;;  %v445_v5 = vadd.f32 %v1527_v49, %v2554_v58 }
 0x106   :  { %v2566_v6 = vadd.f32 %v1573_v3, %v445_v5  ;;  %v1528_v7 = vpop.f32.mrb[8].mxu0 }
 0x107   :  { %v1574_v8 = vpop.f32.mrb[8].mxu1  ;;  %v1529_v9 = vpop.f32.mrb[9].mxu0 }
 0x108   :  { %v1530_v10 = vadd.f32 %v1529_v9, %v1528_v7  ;;  %v1575_v11 = vpop.f32.mrb[9].mxu1  ;;  %v1531_v12 = vpop.f32.mrb[10].mxu0  ;;  %v543_v7 = vmax.f32 %v2557_v38, 0.0 }
 0x109   :  { %v1576_v13 = vadd.f32 %v1575_v11, %v1574_v8  ;;  %v1577_v14 = vpop.f32.mrb[10].mxu1  ;;  %v1532_v15 = vpop.f32.mrb[11].mxu0 }
 0x10a   :  { %v450_v16 = vadd.f32 %v1530_v10, %v2554_v58  ;;  %v1533_v17 = vadd.f32 %v1532_v15, %v1531_v12  ;;  %v1578_v18 = vpop.f32.mrb[11].mxu1 }
 0x10b   :  { %v1579_v19 = vadd.f32 %v1578_v18, %v1577_v14 }
 0x10c   :  { %v2569_v20 = vadd.f32 %v1576_v13, %v450_v16  ;;  %v453_v21 = vadd.f32 %v1533_v17, %v2554_v58  ;;  %v544_v13 = vmax.f32 %v2560_v40, 0.0  ;;  %v545_v40 = vmax.f32 %v2563_v4, 0.0 }
 0x10e   :  { %v2572_v22 = vadd.f32 %v1579_v19, %v453_v21  ;;  %v1534_v23 = vpop.f32.mrb[12].mxu0 }
 0x10f   :  { %v1580_v24 = vpop.f32.mrb[12].mxu1  ;;  %v1535_v25 = vpop.f32.mrb[13].mxu0 }
 0x110   :  { %v1536_v26 = vadd.f32 %v1535_v25, %v1534_v23  ;;  %v1581_v27 = vpop.f32.mrb[13].mxu1  ;;  %v1537_v28 = vpop.f32.mrb[14].mxu0 }
 0x111   :  { %v1582_v29 = vadd.f32 %v1581_v27, %v1580_v24  ;;  %v1583_v30 = vpop.f32.mrb[14].mxu1  ;;  %v1538_v31 = vpop.f32.mrb[15].mxu0 }
 0x112   :  { %v458_v50 = vadd.f32 %v1536_v26, %v2554_v58  ;;  %v1539_v51 = vadd.f32 %v1538_v31, %v1537_v28  ;;  %v1584_v52 = vpop.f32.mrb[15].mxu1 }
 0x113   :  { %v1585_v53 = vadd.f32 %v1584_v52, %v1583_v30 }
 0x114   :  { %v2575_v54 = vadd.f32 %v1582_v29, %v458_v50  ;;  %v461_v55 = vadd.f32 %v1539_v51, %v2554_v58 }
 0x116   :  { %v2578_v56 = vadd.f32 %v1585_v53, %v461_v55  ;;  %v1540_v57 = vpop.f32.mrb[16].mxu0  ;;  %v546_v53 = vmax.f32 %v2566_v6, 0.0  ;;  %v547_v6 = vmax.f32 %v2569_v20, 0.0 }
 0x117   :  { %v1586_v59 = vpop.f32.mrb[16].mxu1  ;;  %v1541_v60 = vpop.f32.mrb[17].mxu0 }
 0x118   :  { %v1542_v61 = vadd.f32 %v1541_v60, %v1540_v57  ;;  %v1587_v62 = vpop.f32.mrb[17].mxu1  ;;  %v1543_v63 = vpop.f32.mrb[18].mxu0 }
 0x119   :  { %v1588_v32 = vadd.f32 %v1587_v62, %v1586_v59  ;;  %v1589_v33 = vpop.f32.mrb[18].mxu1  ;;  %v1544_v34 = vpop.f32.mrb[19].mxu0 }
 0x11a   :  { %v466_v35 = vadd.f32 %v1542_v61, %v2554_v58  ;;  %v1590_v36 = vpop.f32.mrb[19].mxu1 }
 0x11c   :  { %v2581_v37 = vadd.f32 %v1588_v32, %v466_v35 }
 0x11e   :  { %v1608_v39 = vpop.f32.mrb[20].mxu0 }
 0x11f   :  { %v1654_v41 = vpop.f32.mrb[20].mxu1  ;;  %v1609_v42 = vpop.f32.mrb[21].mxu0 }
 0x120   :  { %v1610_v43 = vadd.f32 %v1609_v42, %v1608_v39  ;;  %v1655_v44 = vpop.f32.mrb[21].mxu1  ;;  %v1611_v45 = vpop.f32.mrb[22].mxu0 }
 0x121   :  { %v1656_v46 = vadd.f32 %v1655_v44, %v1654_v41  ;;  %v1657_v47 = vpop.f32.mrb[22].mxu1  ;;  %v1612_v48 = vpop.f32.mrb[23].mxu0 }
 0x122   :  { %v699_v0 = vadd.f32 %v1610_v43, %v2554_v58  ;;  %v1613_v1 = vadd.f32 %v1612_v48, %v1611_v45  ;;  %v1658_v49 = vpop.f32.mrb[23].mxu1 }
 0x123   :  { %v1659_v2 = vadd.f32 %v1658_v49, %v1657_v47  ;;  %v548_v47 = vmax.f32 %v2572_v22, 0.0  ;;  %v549_v22 = vmax.f32 %v2575_v54, 0.0 }
 0x124   :  { %v771_v3 = vadd.f32 %v1656_v46, %v699_v0  ;;  %v702_v5 = vadd.f32 %v1613_v1, %v2554_v58 }
 0x126   :  { %v808_v8 = vmax.f32 %v771_v3, 0.0  ;;  %v774_v9 = vadd.f32 %v1659_v2, %v702_v5  ;;  %v1614_v10 = vpop.f32.mrb[24].mxu0 }
 0x127   :  { %v1660_v11 = vpop.f32.mrb[24].mxu1  ;;  %v1615_v12 = vpop.f32.mrb[25].mxu0 }
 0x128   :  { %v2587_v14 = vmax.f32 %v543_v7, %v808_v8  ;;  %v809_v15 = vmax.f32 %v774_v9, 0.0  ;;  %v1616_v16 = vadd.f32 %v1615_v12, %v1614_v10  ;;  %v1661_v17 = vpop.f32.mrb[25].mxu1  ;;  %v1617_v18 = vpop.f32.mrb[26].mxu0 }
 0x129   :  { %v1662_v19 = vadd.f32 %v1661_v17, %v1660_v11  ;;  %v1663_v21 = vpop.f32.mrb[26].mxu1  ;;  %v1618_v23 = vpop.f32.mrb[27].mxu0 }
 0x12a   :  { %v2589_v24 = vmax.f32 %v544_v13, %v809_v15  ;;  %v707_v38 = vadd.f32 %v1616_v16, %v2554_v58  ;;  %v1619_v25 = vadd.f32 %v1618_v23, %v1617_v18  ;;  %v1664_v26 = vpop.f32.mrb[27].mxu1 }
 0x12b   :  { %v1665_v27 = vadd.f32 %v1664_v26, %v1663_v21  ;;  %v550_v21 = vmax.f32 %v2578_v56, 0.0 }
 0x12c   :  { %v779_v28 = vadd.f32 %v1662_v19, %v707_v38  ;;  %v710_v29 = vadd.f32 %v1619_v25, %v2554_v58 }
 0x12e   :  { %v810_v30 = vmax.f32 %v779_v28, 0.0  ;;  %v782_v31 = vadd.f32 %v1665_v27, %v710_v29  ;;  %v1620_v50 = vpop.f32.mrb[28].mxu0 }
 0x12f   :  { %v1666_v51 = vpop.f32.mrb[28].mxu1  ;;  %v1621_v52 = vpop.f32.mrb[29].mxu0 }
 0x130   :  { %v2595_v55 = vmax.f32 %v545_v40, %v810_v30  ;;  %v811_v57 = vmax.f32 %v782_v31, 0.0  ;;  %v1622_v59 = vadd.f32 %v1621_v52, %v1620_v50  ;;  %v1667_v60 = vpop.f32.mrb[29].mxu1  ;;  %v1623_v61 = vpop.f32.mrb[30].mxu0 }
 0x131   :  { %v1668_v62 = vadd.f32 %v1667_v60, %v1666_v51  ;;  %v1669_v63 = vpop.f32.mrb[30].mxu1  ;;  %v1624_v32 = vpop.f32.mrb[31].mxu0  ;;  %v551_v51 = vmax.f32 %v2581_v37, 0.0 }
 0x132   :  { %v2597_v33 = vmax.f32 %v546_v53, %v811_v57  ;;  %v715_v4 = vadd.f32 %v1622_v59, %v2554_v58  ;;  %v1625_v34 = vadd.f32 %v1624_v32, %v1623_v61  ;;  %v1670_v35 = vpop.f32.mrb[31].mxu1 }
 0x133   :  { %v1671_v36 = vadd.f32 %v1670_v35, %v1669_v63 }
 0x134   :  { %v787_v39 = vadd.f32 %v1668_v62, %v715_v4  ;;  %v718_v41 = vadd.f32 %v1625_v34, %v2554_v58 }
 0x136   :  { %v812_v42 = vmax.f32 %v787_v39, 0.0  ;;  %v790_v43 = vadd.f32 %v1671_v36, %v718_v41  ;;  %v1626_v44 = vpop.f32.mrb[32].mxu0 }
 0x137   :  { %v1672_v45 = vpop.f32.mrb[32].mxu1  ;;  %v1627_v46 = vpop.f32.mrb[33].mxu0 }
 0x138   :  { %v2603_v48 = vmax.f32 %v547_v6, %v812_v42  ;;  %v813_v0 = vmax.f32 %v790_v43, 0.0  ;;  %v1628_v1 = vadd.f32 %v1627_v46, %v1626_v44  ;;  %v1673_v49 = vpop.f32.mrb[33].mxu1  ;;  %v1629_v2 = vpop.f32.mrb[34].mxu0 }
 0x139   :  { %v1674_v3 = vadd.f32 %v1673_v49, %v1672_v45  ;;  %v1675_v5 = vpop.f32.mrb[34].mxu1  ;;  %v1630_v7 = vpop.f32.mrb[35].mxu0 }
 0x13a   :  { %v2605_v8 = vmax.f32 %v548_v47, %v813_v0  ;;  %v723_v20 = vadd.f32 %v1628_v1, %v2554_v58  ;;  %v1631_v9 = vadd.f32 %v1630_v7, %v1629_v2  ;;  %v1676_v10 = vpop.f32.mrb[35].mxu1 }
 0x13b   :  { %v1677_v11 = vadd.f32 %v1676_v10, %v1675_v5 }
 0x13c   :  { %v795_v12 = vadd.f32 %v1674_v3, %v723_v20  ;;  %v726_v13 = vadd.f32 %v1631_v9, %v2554_v58 }
 0x13e   :  { %v814_v15 = vmax.f32 %v795_v12, 0.0  ;;  %v798_v16 = vadd.f32 %v1677_v11, %v726_v13  ;;  %v1632_v17 = vpop.f32.mrb[36].mxu0 }
 0x13f   :  { %v1678_v18 = vpop.f32.mrb[36].mxu1  ;;  %v1633_v19 = vpop.f32.mrb[37].mxu0 }
 0x140   :  { %v2611_v23 = vmax.f32 %v549_v22, %v814_v15  ;;  %v815_v38 = vmax.f32 %v798_v16, 0.0  ;;  %v1634_v25 = vadd.f32 %v1633_v19, %v1632_v17  ;;  %v1679_v26 = vpop.f32.mrb[37].mxu1  ;;  %v1635_v27 = vpop.f32.mrb[38].mxu0 }
 0x141   :  { %v1680_v28 = vadd.f32 %v1679_v26, %v1678_v18  ;;  %v1681_v29 = vpop.f32.mrb[38].mxu1  ;;  %v1636_v40 = vpop.f32.mrb[39].mxu0 }
 0x142   :  { %v2613_v30 = vmax.f32 %v550_v21, %v815_v38  ;;  %v731_v54 = vadd.f32 %v1634_v25, %v2554_v58  ;;  %v1682_v31 = vpop.f32.mrb[39].mxu1 }
 0x144   :  { %v803_v50 = vadd.f32 %v1680_v28, %v731_v54 }
 0x146   :  { %v816_v52 = vmax.f32 %v803_v50, 0.0  ;;  %v1700_v53 = vpop.f32.mrb[40].mxu0 }
 0x147   :  { %v1746_v56 = vpop.f32.mrb[40].mxu1  ;;  %v1701_v57 = vpop.f32.mrb[41].mxu0 }
 0x148   :  { %v2617_v59 = vmax.f32 %v551_v51, %v816_v52  ;;  %v1702_v60 = vadd.f32 %v1701_v57, %v1700_v53  ;;  %v1747_v61 = vpop.f32.mrb[41].mxu1  ;;  %v1703_v62 = vpop.f32.mrb[42].mxu0 }
 0x149   :  { %v1748_v63 = vadd.f32 %v1747_v61, %v1746_v56  ;;  %v1749_v32 = vpop.f32.mrb[42].mxu1  ;;  %v1704_v4 = vpop.f32.mrb[43].mxu0 }
 0x14a   :  { %v973_v34 = vadd.f32 %v1702_v60, %v2554_v58  ;;  %v1705_v35 = vadd.f32 %v1704_v4, %v1703_v62  ;;  %v1750_v36 = vpop.f32.mrb[43].mxu1 }
 0x14b   :  { %v1751_v39 = vadd.f32 %v1750_v36, %v1749_v32 }
 0x14c   :  { %v2620_v41 = vadd.f32 %v1748_v63, %v973_v34  ;;  %v976_v37 = vadd.f32 %v1705_v35, %v2554_v58 }
 0x14e   :  { %v2623_v6 = vadd.f32 %v1751_v39, %v976_v37  ;;  %v1706_v42 = vpop.f32.mrb[44].mxu0 }
 0x14f   :  { %v1752_v43 = vpop.f32.mrb[44].mxu1  ;;  %v1707_v44 = vpop.f32.mrb[45].mxu0 }
 0x150   :  { %v1708_v45 = vadd.f32 %v1707_v44, %v1706_v42  ;;  %v1753_v46 = vpop.f32.mrb[45].mxu1  ;;  %v1709_v47 = vpop.f32.mrb[46].mxu0 }
 0x151   :  { %v1754_v0 = vadd.f32 %v1753_v46, %v1752_v43  ;;  %v1755_v1 = vpop.f32.mrb[46].mxu1  ;;  %v1710_v49 = vpop.f32.mrb[47].mxu0 }
 0x152   :  { %v981_v2 = vadd.f32 %v1708_v45, %v2554_v58  ;;  %v1711_v3 = vadd.f32 %v1710_v49, %v1709_v47  ;;  %v1756_v5 = vpop.f32.mrb[47].mxu1 }
 0x153   :  { %v1757_v7 = vadd.f32 %v1756_v5, %v1755_v1 }
 0x154   :  { %v2626_v20 = vadd.f32 %v1754_v0, %v981_v2  ;;  %v984_v9 = vadd.f32 %v1711_v3, %v2554_v58 }
 0x156   :  { %v2629_v10 = vadd.f32 %v1757_v7, %v984_v9  ;;  %v1712_v11 = vpop.f32.mrb[48].mxu0 }
 0x157   :  { %v1758_v12 = vpop.f32.mrb[48].mxu1  ;;  %v1713_v13 = vpop.f32.mrb[49].mxu0 }
 0x158   :  { %v1714_v22 = vadd.f32 %v1713_v13, %v1712_v11  ;;  %v1759_v15 = vpop.f32.mrb[49].mxu1  ;;  %v1715_v16 = vpop.f32.mrb[50].mxu0 }
 0x159   :  { %v1760_v17 = vadd.f32 %v1759_v15, %v1758_v12  ;;  %v1761_v18 = vpop.f32.mrb[50].mxu1  ;;  %v1716_v19 = vpop.f32.mrb[51].mxu0 }
 0x15a   :  { %v989_v21 = vadd.f32 %v1714_v22, %v2554_v58  ;;  %v1717_v38 = vadd.f32 %v1716_v19, %v1715_v16  ;;  %v1762_v25 = vpop.f32.mrb[51].mxu1 }
 0x15b   :  { %v1763_v26 = vadd.f32 %v1762_v25, %v1761_v18 }
 0x15c   :  { %v2632_v27 = vadd.f32 %v1760_v17, %v989_v21  ;;  %v992_v28 = vadd.f32 %v1717_v38, %v2554_v58  ;;  %v1082_v21 = vmax.f32 %v2620_v41, 0.0 }
 0x15e   :  { %v2635_v29 = vadd.f32 %v1763_v26, %v992_v28  ;;  %v1718_v40 = vpop.f32.mrb[52].mxu0 }
 0x15f   :  { %v1764_v54 = vpop.f32.mrb[52].mxu1  ;;  %v1719_v31 = vpop.f32.mrb[53].mxu0 }
 0x160   :  { %v1720_v50 = vadd.f32 %v1719_v31, %v1718_v40  ;;  %v1765_v51 = vpop.f32.mrb[53].mxu1  ;;  %v1721_v52 = vpop.f32.mrb[54].mxu0 }
 0x161   :  { %v1766_v53 = vadd.f32 %v1765_v51, %v1764_v54  ;;  %v1767_v56 = vpop.f32.mrb[54].mxu1  ;;  %v1722_v57 = vpop.f32.mrb[55].mxu0  ;;  %v1083_v54 = vmax.f32 %v2623_v6, 0.0 }
 0x162   :  { %v997_v60 = vadd.f32 %v1720_v50, %v2554_v58  ;;  %v1723_v61 = vadd.f32 %v1722_v57, %v1721_v52  ;;  %v1768_v62 = vpop.f32.mrb[55].mxu1 }
 0x163   :  { %v1769_v63 = vadd.f32 %v1768_v62, %v1767_v56 }
 0x164   :  { %v2638_v32 = vadd.f32 %v1766_v53, %v997_v60  ;;  %v1000_v4 = vadd.f32 %v1723_v61, %v2554_v58 }
 0x166   :  { %v2641_v34 = vadd.f32 %v1769_v63, %v1000_v4  ;;  %v1724_v35 = vpop.f32.mrb[56].mxu0 }
 0x167   :  { %v1770_v36 = vpop.f32.mrb[56].mxu1  ;;  %v1725_v39 = vpop.f32.mrb[57].mxu0 }
 0x168   :  { %v1726_v37 = vadd.f32 %v1725_v39, %v1724_v35  ;;  %v1771_v42 = vpop.f32.mrb[57].mxu1  ;;  %v1727_v43 = vpop.f32.mrb[58].mxu0 }
 0x169   :  { %v1772_v44 = vadd.f32 %v1771_v42, %v1770_v36  ;;  %v1773_v45 = vpop.f32.mrb[58].mxu1  ;;  %v1728_v46 = vpop.f32.mrb[59].mxu0 }
 0x16a   :  { %v1005_v47 = vadd.f32 %v1726_v37, %v2554_v58  ;;  %v1774_v0 = vpop.f32.mrb[59].mxu1  ;;  %v1084_v37 = vmax.f32 %v2626_v20, 0.0  ;;  %v1085_v46 = vmax.f32 %v2629_v10, 0.0 }
 0x16c   :  { %v2644_v1 = vadd.f32 %v1772_v44, %v1005_v47 }
 0x16e   :  { %v1792_v49 = vpop.f32.mrb[60].mxu0 }
 0x16f   :  { %v1838_v2 = vpop.f32.mrb[60].mxu1  ;;  %v1793_v3 = vpop.f32.mrb[61].mxu0 }
 0x170   :  { %v1794_v5 = vadd.f32 %v1793_v3, %v1792_v49  ;;  %v1839_v7 = vpop.f32.mrb[61].mxu1  ;;  %v1795_v9 = vpop.f32.mrb[62].mxu0 }
 0x171   :  { %v1840_v11 = vadd.f32 %v1839_v7, %v1838_v2  ;;  %v1841_v12 = vpop.f32.mrb[62].mxu1  ;;  %v1796_v13 = vpop.f32.mrb[63].mxu0 }
 0x172   :  { %v1238_v22 = vadd.f32 %v1794_v5, %v2554_v58  ;;  %v1797_v15 = vadd.f32 %v1796_v13, %v1795_v9  ;;  %v1842_v16 = vpop.f32.mrb[63].mxu1 }
 0x173   :  { %v1843_v17 = vadd.f32 %v1842_v16, %v1841_v12 }
 0x174   :  { %v1310_v18 = vadd.f32 %v1840_v11, %v1238_v22  ;;  %v1241_v19 = vadd.f32 %v1797_v15, %v2554_v58 }
 0x176   :  { %v1347_v38 = vmax.f32 %v1310_v18, 0.0  ;;  %v1313_v25 = vadd.f32 %v1843_v17, %v1241_v19  ;;  %v1798_v26 = vpop.f32.mrb[64].mxu0  ;;  %v1086_v17 = vmax.f32 %v2632_v27, 0.0 }
 0x177   :  { %v1844_v28 = vpop.f32.mrb[64].mxu1  ;;  %v1799_v40 = vpop.f32.mrb[65].mxu0 }
 0x178   :  { %v1356_v31 = vmax.f32 %v1082_v21, %v1347_v38  ;;  %v1348_v50 = vmax.f32 %v1313_v25, 0.0  ;;  %v1800_v51 = vadd.f32 %v1799_v40, %v1798_v26  ;;  %v1845_v52 = vpop.f32.mrb[65].mxu1  ;;  %v1801_v53 = vpop.f32.mrb[66].mxu0  ;;  %v1087_v25 = vmax.f32 %v2635_v29, 0.0 }
 0x179   :  { %v1846_v56 = vadd.f32 %v1845_v52, %v1844_v28  ;;  %v1847_v57 = vpop.f32.mrb[66].mxu1  ;;  %v1802_v60 = vpop.f32.mrb[67].mxu0 }
 0x17a   :  { %v1365_v61 = vmax.f32 %v2587_v14, %v1356_v31  ;;  %v1357_v62 = vmax.f32 %v1083_v54, %v1348_v50  ;;  %v1246_v41 = vadd.f32 %v1800_v51, %v2554_v58  ;;  %v1803_v63 = vadd.f32 %v1802_v60, %v1801_v53  ;;  %v1848_v4 = vpop.f32.mrb[67].mxu1 }
 0x17b   :  { %v1849_v35 = vadd.f32 %v1848_v4, %v1847_v57 }
 0x17c   :  { %1374 = vst [vmem:[%s2706_s6] sm:$0xff] %v1365_v61  ;;  %v1366_v6 = vmax.f32 %v2589_v24, %v1357_v62  ;;  %v1318_v36 = vadd.f32 %v1846_v56, %v1246_v41  ;;  %v1249_v39 = vadd.f32 %v1803_v63, %v2554_v58  ;;  %v1088_v41 = vmax.f32 %v2638_v32, 0.0 }
 0x17e   :  { %1375 = vst [vmem:[%s2706_s6 + $0x8] sm:$0xff] %v1366_v6  ;;  %v1349_v14 = vmax.f32 %v1318_v36, 0.0  ;;  %v1321_v42 = vadd.f32 %v1849_v35, %v1249_v39  ;;  %v1804_v43 = vpop.f32.mrb[68].mxu0  ;;  %v1089_v36 = vmax.f32 %v2641_v34, 0.0 }
 0x17f   :  { %v1850_v44 = vpop.f32.mrb[68].mxu1  ;;  %v1805_v45 = vpop.f32.mrb[69].mxu0 }
 0x180   :  { %v1358_v47 = vmax.f32 %v1084_v37, %v1349_v14  ;;  %v1350_v0 = vmax.f32 %v1321_v42, 0.0  ;;  %v1806_v49 = vadd.f32 %v1805_v45, %v1804_v43  ;;  %v1851_v24 = vpop.f32.mrb[69].mxu1  ;;  %v1807_v2 = vpop.f32.mrb[70].mxu0 }
 0x181   :  { %v1852_v3 = vadd.f32 %v1851_v24, %v1850_v44  ;;  %v1853_v5 = vpop.f32.mrb[70].mxu1  ;;  %v1808_v7 = vpop.f32.mrb[71].mxu0  ;;  %v1090_v24 = vmax.f32 %v2644_v1, 0.0 }
 0x182   :  { %v1367_v20 = vmax.f32 %v2595_v55, %v1358_v47  ;;  %v1359_v9 = vmax.f32 %v1085_v46, %v1350_v0  ;;  %v1254_v11 = vadd.f32 %v1806_v49, %v2554_v58  ;;  %v1809_v12 = vadd.f32 %v1808_v7, %v1807_v2  ;;  %v1854_v13 = vpop.f32.mrb[71].mxu1 }
 0x183   :  { %v1855_v22 = vadd.f32 %v1854_v13, %v1853_v5 }
 0x184   :  { %1376 = vst [vmem:[%s2706_s6 + $0x10] sm:$0xff] %v1367_v20  ;;  %v1368_v10 = vmax.f32 %v2597_v33, %v1359_v9  ;;  %v1326_v15 = vadd.f32 %v1852_v3, %v1254_v11  ;;  %v1257_v16 = vadd.f32 %v1809_v12, %v2554_v58 }
 0x186   :  { %1377 = vst [vmem:[%s2706_s6 + $0x18] sm:$0xff] %v1368_v10  ;;  %v1351_v55 = vmax.f32 %v1326_v15, 0.0  ;;  %v1329_v18 = vadd.f32 %v1855_v22, %v1257_v16  ;;  %v1810_v19 = vpop.f32.mrb[72].mxu0 }
 0x187   :  { %v1856_v21 = vpop.f32.mrb[72].mxu1  ;;  %v1811_v38 = vpop.f32.mrb[73].mxu0 }
 0x188   :  { %v1360_v26 = vmax.f32 %v1086_v17, %v1351_v55  ;;  %v1352_v28 = vmax.f32 %v1329_v18, 0.0  ;;  %v1812_v40 = vadd.f32 %v1811_v38, %v1810_v19  ;;  %v1857_v33 = vpop.f32.mrb[73].mxu1  ;;  %v1813_v54 = vpop.f32.mrb[74].mxu0 }
 0x189   :  { %v1858_v31 = vadd.f32 %v1857_v33, %v1856_v21  ;;  %v1859_v50 = vpop.f32.mrb[74].mxu1  ;;  %v1814_v51 = vpop.f32.mrb[75].mxu0 }
 0x18a   :  { %v1369_v27 = vmax.f32 %v2603_v48, %v1360_v26  ;;  %v1361_v52 = vmax.f32 %v1087_v25, %v1352_v28  ;;  %v1262_v53 = vadd.f32 %v1812_v40, %v2554_v58  ;;  %v1815_v56 = vadd.f32 %v1814_v51, %v1813_v54  ;;  %v1860_v57 = vpop.f32.mrb[75].mxu1 }
 0x18b   :  { %v1861_v60 = vadd.f32 %v1860_v57, %v1859_v50 }
 0x18c   :  { %1378 = vst [vmem:[%s2706_s6 + $0x20] sm:$0xff] %v1369_v27  ;;  %v1370_v29 = vmax.f32 %v2605_v8, %v1361_v52  ;;  %v1334_v61 = vadd.f32 %v1858_v31, %v1262_v53  ;;  %v1265_v62 = vadd.f32 %v1815_v56, %v2554_v58 }
 0x18e   :  { %1379 = vst [vmem:[%s2706_s6 + $0x28] sm:$0xff] %v1370_v29  ;;  %v1353_v48 = vmax.f32 %v1334_v61, 0.0  ;;  %v1337_v63 = vadd.f32 %v1861_v60, %v1265_v62  ;;  %v1816_v4 = vpop.f32.mrb[76].mxu0 }
 0x18f   :  { %v1862_v35 = vpop.f32.mrb[76].mxu1  ;;  %v1817_v6 = vpop.f32.mrb[77].mxu0 }
 0x190   :  { %v1362_v39 = vmax.f32 %v1088_v41, %v1353_v48  ;;  %v1354_v37 = vmax.f32 %v1337_v63, 0.0  ;;  %v1818_v14 = vadd.f32 %v1817_v6, %v1816_v4  ;;  %v1863_v8 = vpop.f32.mrb[77].mxu1  ;;  %v1819_v42 = vpop.f32.mrb[78].mxu0 }
 0x191   :  { %v1864_v43 = vadd.f32 %v1863_v8, %v1862_v35  ;;  %v1865_v44 = vpop.f32.mrb[78].mxu1  ;;  %v1820_v45 = vpop.f32.mrb[79].mxu0 }
 0x192   :  { %v1371_v32 = vmax.f32 %v2611_v23, %v1362_v39  ;;  %v1363_v46 = vmax.f32 %v1089_v36, %v1354_v37  ;;  %v1270_v47 = vadd.f32 %v1818_v14, %v2554_v58  ;;  %v1866_v0 = vpop.f32.mrb[79].mxu1 }
 0x194   :  { %1380 = vst [vmem:[%s2706_s6 + $0x30] sm:$0xff] %v1371_v32  ;;  %v1372_v34 = vmax.f32 %v2613_v30, %v1363_v46  ;;  %v1342_v49 = vadd.f32 %v1864_v43, %v1270_v47 }
 0x196   :  { %1381 = vst [vmem:[%s2706_s6 + $0x38] sm:$0xff] %v1372_v34  ;;  %v1355_v2 = vmax.f32 %v1342_v49, 0.0 }
 0x198   :  { %v1364_v3 = vmax.f32 %v1090_v24, %v1355_v2 }
 0x19a   :  { %v1373_v23 = vmax.f32 %v2617_v59, %v1364_v3 }
 0x19c   :  { %1382 = vst [vmem:[%s2706_s6 + $0x40] sm:$0xff] %v1373_v23 }

// kernel: cnn_forward.6
= control target key start
LH: loop header
LB: loop body
LE: loop exit
PB: predicated region body
PF: predicated region fallthrough
CT: control target
= control target key end

     0   :  { %s1309_s4 = inlined_call_operand.vmem [shape: bf16[512,128], index: 4, kind: input, shape index: {}]   ;;  %s1310_s0 = inlined_call_operand.vmem [shape: bf16[8,512], index: 0, kind: input, shape index: {}]   ;;  %s1311_s1 = inlined_call_operand.vmem [shape: bf16[8,512], index: 1, kind: input, shape index: {}]   ;;  %s1312_s2 = inlined_call_operand.vmem [shape: bf16[8,512], index: 2, kind: input, shape index: {}]   ;;  %s1313_s3 = inlined_call_operand.vmem [shape: bf16[8,512], index: 3, kind: input, shape index: {}]   ;;  %s1314_s5 = inlined_call_operand.vmem [shape: f32[1,128], index: 5, kind: input, shape index: {}]   ;;  %s1315_s6 = inlined_call_operand.vmem [shape: f32[8,128], index: 6, kind: output, shape index: {}]  }
   0x1   :  { %v994_v0 = vld [vmem:[%s1309_s4 + $0x40] sm:$0xff]   ;;  %v1017_v4 = vld [vmem:[%s1309_s4 + $0x48] sm:$0xff]   ;;  %v1041_v8 = vld [vmem:[%s1309_s4 + $0x50] sm:$0xff]  }
   0x2   :  { %v999_v1 = vld [vmem:[%s1309_s4 + $0xc0] sm:$0xff]   ;;  %732 = vmatprep.subr.bf16.mxu0 %v994_v0  ;;  %v1023_v5 = vld [vmem:[%s1309_s4 + $0xc8] sm:$0xff]   ;;  %v1047_v9 = vld [vmem:[%s1309_s4 + $0xd0] sm:$0xff]  }
   0x3   :  { %v1005_v2 = vld [vmem:[%s1309_s4] sm:$0xff]   ;;  %754 = vmatprep.subr.bf16.mxu1 %v999_v1  ;;  %v1029_v6 = vld [vmem:[%s1309_s4 + $0x8] sm:$0xff]   ;;  %v1053_v10 = vld [vmem:[%s1309_s4 + $0x10] sm:$0xff]  }
   0x4   :  { %v1011_v3 = vld [vmem:[%s1309_s4 + $0x80] sm:$0xff]   ;;  %733 = vmatpush3.bf16.msra.mxu0 %v1005_v2  ;;  %v1035_v7 = vld [vmem:[%s1309_s4 + $0x88] sm:$0xff]   ;;  %v1059_v11 = vld [vmem:[%s1309_s4 + $0x90] sm:$0xff]  }
   0x5   :  { %755 = vmatpush3.bf16.msra.mxu1 %v1011_v3  ;;  %734 = vmatprep.subr.bf16.mxu0 %v1017_v4  ;;  %v1065_v12 = vld [vmem:[%s1309_s4 + $0x58] sm:$0xff]   ;;  %v1089_v16 = vld [vmem:[%s1309_s4 + $0x60] sm:$0xff]   ;;  %v1113_v20 = vld [vmem:[%s1309_s4 + $0x68] sm:$0xff]  }
   0x6   :  { %756 = vmatprep.subr.bf16.mxu1 %v1023_v5  ;;  %v1071_v13 = vld [vmem:[%s1309_s4 + $0xd8] sm:$0xff]   ;;  %v1095_v17 = vld [vmem:[%s1309_s4 + $0xe0] sm:$0xff]   ;;  %v1119_v21 = vld [vmem:[%s1309_s4 + $0xe8] sm:$0xff]  }
   0x7   :  { %v1077_v14 = vld [vmem:[%s1309_s4 + $0x18] sm:$0xff]   ;;  %v1101_v18 = vld [vmem:[%s1309_s4 + $0x20] sm:$0xff]   ;;  %v1125_v22 = vld [vmem:[%s1309_s4 + $0x28] sm:$0xff]  }
   0x8   :  { %735 = vmatpush3.bf16.msra.mxu0 %v1029_v6  ;;  %v1083_v15 = vld [vmem:[%s1309_s4 + $0x98] sm:$0xff]   ;;  %v1107_v19 = vld [vmem:[%s1309_s4 + $0xa0] sm:$0xff]   ;;  %v1131_v23 = vld [vmem:[%s1309_s4 + $0xa8] sm:$0xff]  }
   0x9   :  { %757 = vmatpush3.bf16.msra.mxu1 %v1035_v7  ;;  %736 = vmatprep.subr.bf16.mxu0 %v1041_v8  ;;  %v1137_v24 = vld [vmem:[%s1309_s4 + $0x70] sm:$0xff]   ;;  %v1161_v28 = vld [vmem:[%s1309_s4 + $0x78] sm:$0xff]   ;;  %v89_v32 = vld [vmem:[%s1310_s0] sm:$0xff] }
   0xa   :  { %758 = vmatprep.subr.bf16.mxu1 %v1047_v9  ;;  %v1143_v25 = vld [vmem:[%s1309_s4 + $0xf0] sm:$0xff]   ;;  %v1167_v29 = vld [vmem:[%s1309_s4 + $0xf8] sm:$0xff]   ;;  %v90_v33 = vld [vmem:[%s1310_s0 + $0x8] sm:$0xff]  ;;  %v684_v35 = vcombine.low %v89_v32, %v89_v32  ;;  %v685_v36 = vcombine.high %v89_v32, %v89_v32 }
   0xb   :  { %v1149_v26 = vld [vmem:[%s1309_s4 + $0x30] sm:$0xff]   ;;  %v1173_v30 = vld [vmem:[%s1309_s4 + $0x38] sm:$0xff]   ;;  %v384_v34 = vld [vmem:[%s1311_s1] sm:$0xff]  ;;  %v686_v37 = vcombine.low %v90_v33, %v90_v33  ;;  %v687_v38 = vcombine.high %v90_v33, %v90_v33 }
   0xc   :  { %737 = vmatpush3.bf16.msra.mxu0 %v1053_v10  ;;  %v1155_v27 = vld [vmem:[%s1309_s4 + $0xb0] sm:$0xff]   ;;  %v1179_v31 = vld [vmem:[%s1309_s4 + $0xb8] sm:$0xff]   ;;  %v385_v39 = vld [vmem:[%s1311_s1 + $0x8] sm:$0xff]  ;;  %335 = vmatprep.mubr.bf16.mxu0 %v685_v36  ;;  %v721_v40 = vcombine.high %v384_v34, %v384_v34  ;;  %v720_v42 = vcombine.low %v384_v34, %v384_v34 }
   0xd   :  { %759 = vmatpush3.bf16.msra.mxu1 %v1059_v11  ;;  %738 = vmatprep.subr.bf16.mxu0 %v1065_v12  ;;  %v723_v41 = vcombine.high %v385_v39, %v385_v39  ;;  %v722_v43 = vcombine.low %v385_v39, %v385_v39  ;;  %v482_v44 = vld [vmem:[%s1312_s2] sm:$0xff]  ;;  %v483_v45 = vld [vmem:[%s1312_s2 + $0x8] sm:$0xff] }
   0xe   :  { %760 = vmatprep.subr.bf16.mxu1 %v1071_v13  ;;  %375 = vmatprep.mubr.bf16.mxu1 %v687_v38  ;;  %v725_v46 = vcombine.high %v482_v44, %v482_v44  ;;  %v727_v47 = vcombine.high %v483_v45, %v483_v45  ;;  %v724_v48 = vcombine.low %v482_v44, %v482_v44  ;;  %v579_v50 = vld [vmem:[%s1313_s3] sm:$0xff]  ;;  %v580_v51 = vld [vmem:[%s1313_s3 + $0x8] sm:$0xff] }
   0xf   :  { %v726_v49 = vcombine.low %v483_v45, %v483_v45  ;;  %v729_v52 = vcombine.high %v579_v50, %v579_v50  ;;  %v731_v53 = vcombine.high %v580_v51, %v580_v51  ;;  %v728_v54 = vcombine.low %v579_v50, %v579_v50  ;;  %v683_v58 = vld [vmem:[%s1314_s5] ss:$0 sm:$0xff] }
  0x10   :  { %739 = vmatpush3.bf16.msra.mxu0 %v1077_v14  ;;  %v730_v55 = vcombine.low %v580_v51, %v580_v51 }
  0x11   :  { %761 = vmatpush3.bf16.msra.mxu1 %v1083_v15  ;;  %740 = vmatprep.subr.bf16.mxu0 %v1089_v16 }
  0x12   :  { %762 = vmatprep.subr.bf16.mxu1 %v1095_v17 }
  0x14   :  { %741 = vmatpush3.bf16.msra.mxu0 %v1101_v18 }
  0x15   :  { %763 = vmatpush3.bf16.msra.mxu1 %v1107_v19  ;;  %742 = vmatprep.subr.bf16.mxu0 %v1113_v20 }
  0x16   :  { %764 = vmatprep.subr.bf16.mxu1 %v1119_v21 }
  0x18   :  { %743 = vmatpush3.bf16.msra.mxu0 %v1125_v22 }
  0x19   :  { %765 = vmatpush3.bf16.msra.mxu1 %v1131_v23  ;;  %744 = vmatprep.subr.bf16.mxu0 %v1137_v24 }
  0x1a   :  { %766 = vmatprep.subr.bf16.mxu1 %v1143_v25 }
  0x1c   :  { %745 = vmatpush3.bf16.msra.mxu0 %v1149_v26 }
  0x1d   :  { %767 = vmatpush3.bf16.msra.mxu1 %v1155_v27  ;;  %746 = vmatprep.subr.bf16.mxu0 %v1161_v28 }
  0x1e   :  { %768 = vmatprep.subr.bf16.mxu1 %v1167_v29 }
  0x20   :  { %747 = vmatpush3.bf16.msra.mxu0 %v1173_v30 }
  0x21   :  { %769 = vmatpush3.bf16.msra.mxu1 %v1179_v31  ;;  %776 = vmatprep.subr.bf16.mxu0 %v994_v0 }
  0x22   :  { %798 = vmatprep.subr.bf16.mxu1 %v999_v1 }
  0x23   :  { %336 = vmatmul.mubr.bf16.vlgmr.msra.gmra.mrb[0].mxu0 %v684_v35 }
  0x24   :  { %376 = vmatmul.mubr.bf16.vlgmr.msra.gmra.mrb[0].mxu1 %v686_v37  ;;  %777 = vmatpush3.bf16.msra.mxu0 %v1005_v2 }
  0x25   :  { %799 = vmatpush3.bf16.msra.mxu1 %v1011_v3  ;;  %778 = vmatprep.subr.bf16.mxu0 %v1017_v4 }
  0x26   :  { %800 = vmatprep.subr.bf16.mxu1 %v1023_v5  ;;  %432 = vmatprep.mubr.bf16.mxu0 %v721_v40 }
  0x27   :  { %472 = vmatprep.mubr.bf16.mxu1 %v723_v41 }
  0x28   :  { %779 = vmatpush3.bf16.msra.mxu0 %v1029_v6 }
  0x29   :  { %801 = vmatpush3.bf16.msra.mxu1 %v1035_v7  ;;  %780 = vmatprep.subr.bf16.mxu0 %v1041_v8 }
  0x2a   :  { %802 = vmatprep.subr.bf16.mxu1 %v1047_v9 }
  0x2c   :  { %781 = vmatpush3.bf16.msra.mxu0 %v1053_v10 }
  0x2d   :  { %803 = vmatpush3.bf16.msra.mxu1 %v1059_v11  ;;  %782 = vmatprep.subr.bf16.mxu0 %v1065_v12 }
  0x2e   :  { %804 = vmatprep.subr.bf16.mxu1 %v1071_v13 }
  0x30   :  { %783 = vmatpush3.bf16.msra.mxu0 %v1077_v14 }
  0x31   :  { %805 = vmatpush3.bf16.msra.mxu1 %v1083_v15  ;;  %784 = vmatprep.subr.bf16.mxu0 %v1089_v16 }
  0x32   :  { %806 = vmatprep.subr.bf16.mxu1 %v1095_v17 }
  0x34   :  { %785 = vmatpush3.bf16.msra.mxu0 %v1101_v18 }
  0x35   :  { %807 = vmatpush3.bf16.msra.mxu1 %v1107_v19  ;;  %786 = vmatprep.subr.bf16.mxu0 %v1113_v20 }
  0x36   :  { %808 = vmatprep.subr.bf16.mxu1 %v1119_v21 }
  0x38   :  { %787 = vmatpush3.bf16.msra.mxu0 %v1125_v22 }
  0x39   :  { %809 = vmatpush3.bf16.msra.mxu1 %v1131_v23  ;;  %788 = vmatprep.subr.bf16.mxu0 %v1137_v24 }
  0x3a   :  { %810 = vmatprep.subr.bf16.mxu1 %v1143_v25 }
  0x3c   :  { %789 = vmatpush3.bf16.msra.mxu0 %v1149_v26 }
  0x3d   :  { %811 = vmatpush3.bf16.msra.mxu1 %v1155_v27  ;;  %790 = vmatprep.subr.bf16.mxu0 %v1161_v28 }
  0x3e   :  { %812 = vmatprep.subr.bf16.mxu1 %v1167_v29 }
  0x40   :  { %791 = vmatpush3.bf16.msra.mxu0 %v1173_v30 }
  0x41   :  { %813 = vmatpush3.bf16.msra.mxu1 %v1179_v31  ;;  %820 = vmatprep.subr.bf16.mxu0 %v994_v0 }
  0x42   :  { %842 = vmatprep.subr.bf16.mxu1 %v999_v1 }
  0x43   :  { %433 = vmatmul.mubr.bf16.vlgmr.msra.gmra.mrb[4].mxu0 %v720_v42 }
  0x44   :  { %473 = vmatmul.mubr.bf16.vlgmr.msra.gmra.mrb[4].mxu1 %v722_v43  ;;  %821 = vmatpush3.bf16.msra.mxu0 %v1005_v2 }
  0x45   :  { %843 = vmatpush3.bf16.msra.mxu1 %v1011_v3  ;;  %822 = vmatprep.subr.bf16.mxu0 %v1017_v4 }
  0x46   :  { %844 = vmatprep.subr.bf16.mxu1 %v1023_v5  ;;  %530 = vmatprep.mubr.bf16.mxu0 %v725_v46 }
  0x47   :  { %570 = vmatprep.mubr.bf16.mxu1 %v727_v47 }
  0x48   :  { %823 = vmatpush3.bf16.msra.mxu0 %v1029_v6 }
  0x49   :  { %845 = vmatpush3.bf16.msra.mxu1 %v1035_v7  ;;  %824 = vmatprep.subr.bf16.mxu0 %v1041_v8 }
  0x4a   :  { %846 = vmatprep.subr.bf16.mxu1 %v1047_v9 }
  0x4c   :  { %825 = vmatpush3.bf16.msra.mxu0 %v1053_v10 }
  0x4d   :  { %847 = vmatpush3.bf16.msra.mxu1 %v1059_v11  ;;  %826 = vmatprep.subr.bf16.mxu0 %v1065_v12 }
  0x4e   :  { %848 = vmatprep.subr.bf16.mxu1 %v1071_v13 }
  0x50   :  { %827 = vmatpush3.bf16.msra.mxu0 %v1077_v14 }
  0x51   :  { %849 = vmatpush3.bf16.msra.mxu1 %v1083_v15  ;;  %828 = vmatprep.subr.bf16.mxu0 %v1089_v16 }
  0x52   :  { %850 = vmatprep.subr.bf16.mxu1 %v1095_v17 }
  0x54   :  { %829 = vmatpush3.bf16.msra.mxu0 %v1101_v18 }
  0x55   :  { %851 = vmatpush3.bf16.msra.mxu1 %v1107_v19  ;;  %830 = vmatprep.subr.bf16.mxu0 %v1113_v20 }
  0x56   :  { %852 = vmatprep.subr.bf16.mxu1 %v1119_v21 }
  0x58   :  { %831 = vmatpush3.bf16.msra.mxu0 %v1125_v22 }
  0x59   :  { %853 = vmatpush3.bf16.msra.mxu1 %v1131_v23  ;;  %832 = vmatprep.subr.bf16.mxu0 %v1137_v24 }
  0x5a   :  { %854 = vmatprep.subr.bf16.mxu1 %v1143_v25 }
  0x5c   :  { %833 = vmatpush3.bf16.msra.mxu0 %v1149_v26 }
  0x5d   :  { %855 = vmatpush3.bf16.msra.mxu1 %v1155_v27  ;;  %834 = vmatprep.subr.bf16.mxu0 %v1161_v28 }
  0x5e   :  { %856 = vmatprep.subr.bf16.mxu1 %v1167_v29 }
  0x60   :  { %835 = vmatpush3.bf16.msra.mxu0 %v1173_v30 }
  0x61   :  { %857 = vmatpush3.bf16.msra.mxu1 %v1179_v31  ;;  %864 = vmatprep.subr.bf16.mxu0 %v994_v0 }
  0x62   :  { %886 = vmatprep.subr.bf16.mxu1 %v999_v1 }
  0x63   :  { %531 = vmatmul.mubr.bf16.vlgmr.msra.gmra.mrb[8].mxu0 %v724_v48 }
  0x64   :  { %571 = vmatmul.mubr.bf16.vlgmr.msra.gmra.mrb[8].mxu1 %v726_v49  ;;  %865 = vmatpush3.bf16.msra.mxu0 %v1005_v2 }
  0x65   :  { %887 = vmatpush3.bf16.msra.mxu1 %v1011_v3  ;;  %866 = vmatprep.subr.bf16.mxu0 %v1017_v4 }
  0x66   :  { %888 = vmatprep.subr.bf16.mxu1 %v1023_v5  ;;  %627 = vmatprep.mubr.bf16.mxu0 %v729_v52 }
  0x67   :  { %667 = vmatprep.mubr.bf16.mxu1 %v731_v53 }
  0x68   :  { %867 = vmatpush3.bf16.msra.mxu0 %v1029_v6 }
  0x69   :  { %889 = vmatpush3.bf16.msra.mxu1 %v1035_v7  ;;  %868 = vmatprep.subr.bf16.mxu0 %v1041_v8 }
  0x6a   :  { %890 = vmatprep.subr.bf16.mxu1 %v1047_v9 }
  0x6c   :  { %869 = vmatpush3.bf16.msra.mxu0 %v1053_v10 }
  0x6d   :  { %891 = vmatpush3.bf16.msra.mxu1 %v1059_v11  ;;  %870 = vmatprep.subr.bf16.mxu0 %v1065_v12 }
  0x6e   :  { %892 = vmatprep.subr.bf16.mxu1 %v1071_v13 }
  0x70   :  { %871 = vmatpush3.bf16.msra.mxu0 %v1077_v14 }
  0x71   :  { %893 = vmatpush3.bf16.msra.mxu1 %v1083_v15  ;;  %872 = vmatprep.subr.bf16.mxu0 %v1089_v16 }
  0x72   :  { %894 = vmatprep.subr.bf16.mxu1 %v1095_v17 }
  0x74   :  { %873 = vmatpush3.bf16.msra.mxu0 %v1101_v18 }
  0x75   :  { %895 = vmatpush3.bf16.msra.mxu1 %v1107_v19  ;;  %874 = vmatprep.subr.bf16.mxu0 %v1113_v20 }
  0x76   :  { %896 = vmatprep.subr.bf16.mxu1 %v1119_v21 }
  0x78   :  { %875 = vmatpush3.bf16.msra.mxu0 %v1125_v22 }
  0x79   :  { %897 = vmatpush3.bf16.msra.mxu1 %v1131_v23  ;;  %876 = vmatprep.subr.bf16.mxu0 %v1137_v24 }
  0x7a   :  { %898 = vmatprep.subr.bf16.mxu1 %v1143_v25 }
  0x7c   :  { %877 = vmatpush3.bf16.msra.mxu0 %v1149_v26 }
  0x7d   :  { %899 = vmatpush3.bf16.msra.mxu1 %v1155_v27  ;;  %878 = vmatprep.subr.bf16.mxu0 %v1161_v28 }
  0x7e   :  { %900 = vmatprep.subr.bf16.mxu1 %v1167_v29 }
  0x80   :  { %879 = vmatpush3.bf16.msra.mxu0 %v1173_v30 }
  0x81   :  { %901 = vmatpush3.bf16.msra.mxu1 %v1179_v31 }
  0x83   :  { %628 = vmatmul.mubr.bf16.vlgmr.msra.gmra.mrb[12].mxu0 %v728_v54 }
  0x84   :  { %668 = vmatmul.mubr.bf16.vlgmr.msra.gmra.mrb[12].mxu1 %v730_v55 }
  0xf6   :  { %v748_v56 = vpop.f32.mrb[0].mxu0 }
  0xf7   :  { %v770_v57 = vpop.f32.mrb[0].mxu1  ;;  %v749_v59 = vpop.f32.mrb[1].mxu0 }
  0xf8   :  { %v771_v60 = vpop.f32.mrb[1].mxu1  ;;  %v750_v61 = vadd.f32 %v749_v59, %v748_v56  ;;  %v751_v63 = vpop.f32.mrb[2].mxu0 }
  0xf9   :  { %v772_v62 = vadd.f32 %v771_v60, %v770_v57  ;;  %v773_v0 = vpop.f32.mrb[2].mxu1  ;;  %v752_v1 = vpop.f32.mrb[3].mxu0 }
  0xfa   :  { %v774_v2 = vpop.f32.mrb[3].mxu1  ;;  %v338_v3 = vadd.f32 %v750_v61, %v683_v58 }
  0xfc   :  { %v378_v4 = vadd.f32 %v772_v62, %v338_v3 }
  0xfe   :  { %v383_v17 = vmax.f32 %v378_v4, 0.0 }
 0x116   :  { %v792_v5 = vpop.f32.mrb[4].mxu0 }
 0x117   :  { %v814_v6 = vpop.f32.mrb[4].mxu1  ;;  %v793_v7 = vpop.f32.mrb[5].mxu0 }
 0x118   :  { %v815_v8 = vpop.f32.mrb[5].mxu1  ;;  %v794_v9 = vadd.f32 %v793_v7, %v792_v5  ;;  %v795_v11 = vpop.f32.mrb[6].mxu0 }
 0x119   :  { %v816_v10 = vadd.f32 %v815_v8, %v814_v6  ;;  %v817_v12 = vpop.f32.mrb[6].mxu1  ;;  %v796_v13 = vpop.f32.mrb[7].mxu0 }
 0x11a   :  { %v818_v14 = vpop.f32.mrb[7].mxu1  ;;  %v435_v15 = vadd.f32 %v794_v9, %v683_v58 }
 0x11c   :  { %v475_v16 = vadd.f32 %v816_v10, %v435_v15 }
 0x11e   :  { %v480_v18 = vmax.f32 %v475_v16, 0.0 }
 0x120   :  { %v481_v19 = vmax.f32 %v383_v17, %v480_v18 }
 0x136   :  { %v836_v20 = vpop.f32.mrb[8].mxu0 }
 0x137   :  { %v858_v21 = vpop.f32.mrb[8].mxu1  ;;  %v837_v22 = vpop.f32.mrb[9].mxu0 }
 0x138   :  { %v859_v23 = vpop.f32.mrb[9].mxu1  ;;  %v838_v24 = vadd.f32 %v837_v22, %v836_v20  ;;  %v839_v26 = vpop.f32.mrb[10].mxu0 }
 0x139   :  { %v860_v25 = vadd.f32 %v859_v23, %v858_v21  ;;  %v861_v27 = vpop.f32.mrb[10].mxu1  ;;  %v840_v28 = vpop.f32.mrb[11].mxu0 }
 0x13a   :  { %v862_v29 = vpop.f32.mrb[11].mxu1  ;;  %v533_v30 = vadd.f32 %v838_v24, %v683_v58 }
 0x13c   :  { %v573_v31 = vadd.f32 %v860_v25, %v533_v30 }
 0x13e   :  { %v578_v44 = vmax.f32 %v573_v31, 0.0 }
 0x156   :  { %v880_v32 = vpop.f32.mrb[12].mxu0 }
 0x157   :  { %v902_v33 = vpop.f32.mrb[12].mxu1  ;;  %v881_v34 = vpop.f32.mrb[13].mxu0 }
 0x158   :  { %v903_v35 = vpop.f32.mrb[13].mxu1  ;;  %v882_v36 = vadd.f32 %v881_v34, %v880_v32  ;;  %v883_v38 = vpop.f32.mrb[14].mxu0 }
 0x159   :  { %v904_v37 = vadd.f32 %v903_v35, %v902_v33  ;;  %v905_v39 = vpop.f32.mrb[14].mxu1  ;;  %v884_v40 = vpop.f32.mrb[15].mxu0 }
 0x15a   :  { %v906_v41 = vpop.f32.mrb[15].mxu1  ;;  %v630_v42 = vadd.f32 %v882_v36, %v683_v58 }
 0x15c   :  { %v670_v43 = vadd.f32 %v904_v37, %v630_v42 }
 0x15e   :  { %v675_v45 = vmax.f32 %v670_v43, 0.0 }
 0x160   :  { %v676_v46 = vmax.f32 %v578_v44, %v675_v45 }
 0x162   :  { %v677_v47 = vmax.f32 %v481_v19, %v676_v46 }
 0x164   :  { %678 = vst [vmem:[%s1315_s6] sm:$0xff] %v677_v47 }

// kernel: cnn_forward.7
= control target key start
LH: loop header
LB: loop body
LE: loop exit
PB: predicated region body
PF: predicated region fallthrough
CT: control target
= control target key end

     0   :  { %vm1444_vm0 = vmmov 0   ;;  %s1885_s1 = inlined_call_operand.vmem [shape: bf16[512,256], index: 1, kind: input, shape index: {}]   ;;  %s1886_s0 = inlined_call_operand.vmem [shape: bf16[8,512], index: 0, kind: input, shape index: {}]   ;;  %s1887_s3 = inlined_call_operand.vmem [shape: bf16[256,128], index: 3, kind: input, shape index: {}]   ;;  %s1888_s5 = inlined_call_operand.vmem [shape: bf16[128,128], index: 5, kind: input, shape index: {}]   ;;  %s1889_s2 = inlined_call_operand.vmem [shape: f32[1,256], index: 2, kind: input, shape index: {}]   ;;  %s1890_s7 = inlined_call_operand.vmem [shape: bf16[128,128], index: 7, kind: input, shape index: {}]   ;;  %s1891_s4 = inlined_call_operand.vmem [shape: f32[1,128], index: 4, kind: input, shape index: {}]   ;;  %s1892_s9 = inlined_call_operand.vmem [shape: bf16[128,128], index: 9, kind: input, shape index: {}]   ;;  %s1893_s6 = inlined_call_operand.vmem [shape: f32[1,128], index: 6, kind: input, shape index: {}]   ;;  %s1894_s8 = inlined_call_operand.vmem [shape: f32[1,128], index: 8, kind: input, shape index: {}]   ;;  %s1895_s10 = inlined_call_operand.vmem [shape: f32[1,128], index: 10, kind: input, shape index: {}]   ;;  %s1896_s11 = inlined_call_operand.vmem [shape: f32[8,128], index: 11, kind: output, shape index: {}]  }
   0x1   :  { %v1299_v0 = vld [vmem:[%s1885_s1 + $0x4] ss:$8 sps:$4 sm:$0xff]   ;;  %v1301_v1 = vld [vmem:[%s1885_s1] ss:$8 sps:$4 sm:$0xff]   ;;  %v1302_v2 = vld [vmem:[%s1885_s1 + $0x14] ss:$8 sps:$4 sm:$0xff]  }
   0x2   :  { %451 = vmatprep.subr.bf16.mxu0 %v1299_v0  ;;  %v1304_v3 = vld [vmem:[%s1885_s1 + $0x10] ss:$8 sps:$4 sm:$0xff]   ;;  %v1305_v4 = vld [vmem:[%s1885_s1 + $0x24] ss:$8 sps:$4 sm:$0xff]   ;;  %v1307_v5 = vld [vmem:[%s1885_s1 + $0x20] ss:$8 sps:$4 sm:$0xff]  }
   0x3   :  { %452 = vmatpush1.bf16.msra.mxu0 %v1301_v1  ;;  %v1308_v6 = vld [vmem:[%s1885_s1 + $0x34] ss:$8 sps:$4 sm:$0xff]   ;;  %v1310_v7 = vld [vmem:[%s1885_s1 + $0x30] ss:$8 sps:$4 sm:$0xff]   ;;  %v1311_v8 = vld [vmem:[%s1885_s1 + $0x44] ss:$8 sps:$4 sm:$0xff]  }
   0x4   :  { %453 = vmatprep.subr.bf16.mxu0 %v1302_v2  ;;  %v1313_v9 = vld [vmem:[%s1885_s1 + $0x40] ss:$8 sps:$4 sm:$0xff]   ;;  %v1314_v10 = vld [vmem:[%s1885_s1 + $0x54] ss:$8 sps:$4 sm:$0xff]   ;;  %v1316_v11 = vld [vmem:[%s1885_s1 + $0x50] ss:$8 sps:$4 sm:$0xff]  }
   0x5   :  { %v1317_v12 = vld [vmem:[%s1885_s1 + $0x64] ss:$8 sps:$4 sm:$0xff]   ;;  %v1319_v15 = vld [vmem:[%s1885_s1 + $0x60] ss:$8 sps:$4 sm:$0xff]   ;;  %v1320_v16 = vld [vmem:[%s1885_s1 + $0x74] ss:$8 sps:$4 sm:$0xff]  }
   0x6   :  { %v1547_v13 = vld [vmem:[%s1886_s0] sm:$0xff]  ;;  %v1322_v17 = vld [vmem:[%s1885_s1 + $0x70] ss:$8 sps:$4 sm:$0xff]   ;;  %v1326_v20 = vld [vmem:[%s1885_s1 + $0x94] ss:$8 sps:$4 sm:$0xff]  }
   0x7   :  { %454 = vmatpush1.bf16.msra.mxu0 %v1304_v3  ;;  %v1071_v14 = vcombine.high %v1547_v13, %v1547_v13  ;;  %v1323_v18 = vld [vmem:[%s1885_s1 + $0x84] ss:$8 sps:$4 sm:$0xff]   ;;  %v1325_v19 = vld [vmem:[%s1885_s1 + $0x80] ss:$8 sps:$4 sm:$0xff]   ;;  %v1328_v21 = vld [vmem:[%s1885_s1 + $0x90] ss:$8 sps:$4 sm:$0xff]   ;;  %v1070_v47 = vcombine.low %v1547_v13, %v1547_v13 }
   0x8   :  { %455 = vmatprep.subr.bf16.mxu0 %v1305_v4  ;;  %v1329_v22 = vld [vmem:[%s1885_s1 + $0xa4] ss:$8 sps:$4 sm:$0xff]   ;;  %v1331_v23 = vld [vmem:[%s1885_s1 + $0xa0] ss:$8 sps:$4 sm:$0xff]   ;;  %v1332_v24 = vld [vmem:[%s1885_s1 + $0xb4] ss:$8 sps:$4 sm:$0xff]  }
   0x9   :  { %483 = vmatprep.mubr.bf16.mxu0 %v1071_v14  ;;  %v1334_v25 = vld [vmem:[%s1885_s1 + $0xb0] ss:$8 sps:$4 sm:$0xff]   ;;  %v1335_v26 = vld [vmem:[%s1885_s1 + $0xc4] ss:$8 sps:$4 sm:$0xff]   ;;  %v1337_v28 = vld [vmem:[%s1885_s1 + $0xc0] ss:$8 sps:$4 sm:$0xff]  }
   0xa   :  { %v1399_v27 = vld [vmem:[%s1887_s3 + $0x40] sm:$0xff]   ;;  %v1338_v30 = vld [vmem:[%s1885_s1 + $0xd4] ss:$8 sps:$4 sm:$0xff]   ;;  %v1401_v31 = vld [vmem:[%s1887_s3 + $0x48] sm:$0xff]  }
   0xb   :  { %456 = vmatpush1.bf16.msra.mxu0 %v1307_v5  ;;  %v1400_v29 = vld [vmem:[%s1887_s3] sm:$0xff]   ;;  %1182 = vmatprep.subr.bf16.mxu1 %v1399_v27  ;;  %v1402_v32 = vld [vmem:[%s1887_s3 + $0x8] sm:$0xff]   ;;  %v1403_v33 = vld [vmem:[%s1887_s3 + $0x50] sm:$0xff]  }
   0xc   :  { %457 = vmatprep.subr.bf16.mxu0 %v1308_v6  ;;  %1183 = vmatpush3.bf16.msra.mxu1 %v1400_v29  ;;  %v1340_v34 = vld [vmem:[%s1885_s1 + $0xd0] ss:$8 sps:$4 sm:$0xff]   ;;  %v1341_v35 = vld [vmem:[%s1885_s1 + $0xe4] ss:$8 sps:$4 sm:$0xff]   ;;  %v1343_v38 = vld [vmem:[%s1885_s1 + $0xe0] ss:$8 sps:$4 sm:$0xff]  }
   0xd   :  { %1184 = vmatprep.subr.bf16.mxu1 %v1401_v31  ;;  %v1404_v36 = vld [vmem:[%s1887_s3 + $0x10] sm:$0xff]   ;;  %v1405_v37 = vld [vmem:[%s1887_s3 + $0x58] sm:$0xff]   ;;  %v1407_v41 = vld [vmem:[%s1887_s3 + $0x60] sm:$0xff]  }
   0xe   :  { %v1344_v39 = vld [vmem:[%s1885_s1 + $0xf4] ss:$8 sps:$4 sm:$0xff]   ;;  %v1346_v42 = vld [vmem:[%s1885_s1 + $0xf0] ss:$8 sps:$4 sm:$0xff]   ;;  %v1408_v43 = vld [vmem:[%s1887_s3 + $0x20] sm:$0xff]  }
   0xf   :  { %458 = vmatpush1.bf16.msra.mxu0 %v1310_v7  ;;  %v1406_v40 = vld [vmem:[%s1887_s3 + $0x18] sm:$0xff]   ;;  %v1641_v44 = vld [vmem:[%s1886_s0 + $0x8] sm:$0xff] }
  0x10   :  { %459 = vmatprep.subr.bf16.mxu0 %v1311_v8  ;;  %1185 = vmatpush3.bf16.msra.mxu1 %v1402_v32  ;;  %v1352_v45 = vld [vmem:[%s1885_s1 + $0x104] ss:$8 sps:$4 sm:$0xff]   ;;  %v1350_v48 = vld [vmem:[%s1885_s1 + $0x100] ss:$8 sps:$4 sm:$0xff]   ;;  %v1073_v49 = vcombine.high %v1641_v44, %v1641_v44  ;;  %v1355_v50 = vld [vmem:[%s1885_s1 + $0x114] ss:$8 sps:$4 sm:$0xff]  }
  0x11   :  { %1186 = vmatprep.subr.bf16.mxu1 %v1403_v33  ;;  %v1409_v46 = vld [vmem:[%s1887_s3 + $0x68] sm:$0xff]   ;;  %v1353_v52 = vld [vmem:[%s1885_s1 + $0x110] ss:$8 sps:$4 sm:$0xff]   ;;  %v1361_v55 = vld [vmem:[%s1885_s1 + $0x134] ss:$8 sps:$4 sm:$0xff]  }
  0x12   :  { %v1410_v51 = vld [vmem:[%s1887_s3 + $0x28] sm:$0xff]   ;;  %v1359_v56 = vld [vmem:[%s1885_s1 + $0x130] ss:$8 sps:$4 sm:$0xff]   ;;  %v1367_v59 = vld [vmem:[%s1885_s1 + $0x154] ss:$8 sps:$4 sm:$0xff]  }
  0x13   :  { %460 = vmatpush1.bf16.msra.mxu0 %v1313_v9  ;;  %v1358_v53 = vld [vmem:[%s1885_s1 + $0x124] ss:$8 sps:$4 sm:$0xff]   ;;  %v1356_v54 = vld [vmem:[%s1885_s1 + $0x120] ss:$8 sps:$4 sm:$0xff]   ;;  %v1365_v60 = vld [vmem:[%s1885_s1 + $0x150] ss:$8 sps:$4 sm:$0xff]  }
  0x14   :  { %461 = vmatprep.subr.bf16.mxu0 %v1314_v10  ;;  %1187 = vmatpush3.bf16.msra.mxu1 %v1404_v36  ;;  %v1364_v57 = vld [vmem:[%s1885_s1 + $0x144] ss:$8 sps:$4 sm:$0xff]   ;;  %v1362_v58 = vld [vmem:[%s1885_s1 + $0x140] ss:$8 sps:$4 sm:$0xff]   ;;  %v1373_v63 = vld [vmem:[%s1885_s1 + $0x174] ss:$8 sps:$4 sm:$0xff]  }
  0x15   :  { %1188 = vmatprep.subr.bf16.mxu1 %v1405_v37  ;;  %v1370_v61 = vld [vmem:[%s1885_s1 + $0x164] ss:$8 sps:$4 sm:$0xff]   ;;  %v1368_v62 = vld [vmem:[%s1885_s1 + $0x160] ss:$8 sps:$4 sm:$0xff]   ;;  %v1371_v0 = vld [vmem:[%s1885_s1 + $0x170] ss:$8 sps:$4 sm:$0xff]  }
  0x16   :  { %v1376_v1 = vld [vmem:[%s1885_s1 + $0x184] ss:$8 sps:$4 sm:$0xff]   ;;  %v1374_v2 = vld [vmem:[%s1885_s1 + $0x180] ss:$8 sps:$4 sm:$0xff]   ;;  %v1379_v3 = vld [vmem:[%s1885_s1 + $0x194] ss:$8 sps:$4 sm:$0xff]  }
  0x17   :  { %462 = vmatpush1.bf16.msra.mxu0 %v1316_v11  ;;  %v1377_v4 = vld [vmem:[%s1885_s1 + $0x190] ss:$8 sps:$4 sm:$0xff]   ;;  %v1382_v5 = vld [vmem:[%s1885_s1 + $0x1a4] ss:$8 sps:$4 sm:$0xff]   ;;  %v1380_v6 = vld [vmem:[%s1885_s1 + $0x1a0] ss:$8 sps:$4 sm:$0xff]  }
  0x18   :  { %463 = vmatprep.subr.bf16.mxu0 %v1317_v12  ;;  %1189 = vmatpush3.bf16.msra.mxu1 %v1406_v40  ;;  %v1385_v7 = vld [vmem:[%s1885_s1 + $0x1b4] ss:$8 sps:$4 sm:$0xff]   ;;  %v1383_v8 = vld [vmem:[%s1885_s1 + $0x1b0] ss:$8 sps:$4 sm:$0xff]   ;;  %v1388_v9 = vld [vmem:[%s1885_s1 + $0x1c4] ss:$8 sps:$4 sm:$0xff]  }
  0x19   :  { %1190 = vmatprep.subr.bf16.mxu1 %v1407_v41  ;;  %v1386_v10 = vld [vmem:[%s1885_s1 + $0x1c0] ss:$8 sps:$4 sm:$0xff]   ;;  %v1391_v11 = vld [vmem:[%s1885_s1 + $0x1d4] ss:$8 sps:$4 sm:$0xff]   ;;  %v1389_v12 = vld [vmem:[%s1885_s1 + $0x1d0] ss:$8 sps:$4 sm:$0xff]  }
  0x1a   :  { %v1394_v13 = vld [vmem:[%s1885_s1 + $0x1e4] ss:$8 sps:$4 sm:$0xff]   ;;  %v1392_v14 = vld [vmem:[%s1885_s1 + $0x1e0] ss:$8 sps:$4 sm:$0xff]  }
  0x1b   :  { %464 = vmatpush1.bf16.msra.mxu0 %v1319_v15  ;;  %v1397_v15 = vld [vmem:[%s1885_s1 + $0x1f4] ss:$8 sps:$4 sm:$0xff]   ;;  %v1416_v41 = vld [vmem:[%s1888_s5 + $0x8] sm:$0xff]  }
  0x1c   :  { %465 = vmatprep.subr.bf16.mxu0 %v1320_v16  ;;  %1191 = vmatpush3.bf16.msra.mxu1 %v1408_v43  ;;  %v1395_v16 = vld [vmem:[%s1885_s1 + $0x1f0] ss:$8 sps:$4 sm:$0xff]  }
  0x1d   :  { %1192 = vmatprep.subr.bf16.mxu1 %v1409_v46  ;;  %v1418_v43 = vld [vmem:[%s1888_s5 + $0x18] sm:$0xff]   ;;  %v1421_v46 = vld [vmem:[%s1888_s5 + $0x30] sm:$0xff]  }
  0x1f   :  { %466 = vmatpush1.bf16.msra.mxu0 %v1322_v17  ;;  %v1072_v17 = vcombine.low %v1641_v44, %v1641_v44  ;;  %v1419_v44 = vld [vmem:[%s1888_s5 + $0x20] sm:$0xff]  }
  0x20   :  { %467 = vmatprep.subr.bf16.mxu0 %v1323_v18  ;;  %1193 = vmatpush3.bf16.msra.mxu1 %v1410_v51  ;;  %v1411_v18 = vld [vmem:[%s1887_s3 + $0x70] sm:$0xff]  }
  0x21   :  { %1194 = vmatprep.subr.bf16.mxu1 %v1411_v18 }
  0x23   :  { %468 = vmatpush1.bf16.msra.mxu0 %v1325_v19  ;;  %v1412_v19 = vld [vmem:[%s1887_s3 + $0x30] sm:$0xff]  }
  0x24   :  { %469 = vmatprep.subr.bf16.mxu0 %v1326_v20  ;;  %1195 = vmatpush3.bf16.msra.mxu1 %v1412_v19  ;;  %v1413_v20 = vld [vmem:[%s1887_s3 + $0x78] sm:$0xff]  }
  0x25   :  { %1196 = vmatprep.subr.bf16.mxu1 %v1413_v20 }
  0x27   :  { %470 = vmatpush1.bf16.msra.mxu0 %v1328_v21  ;;  %v1414_v21 = vld [vmem:[%s1887_s3 + $0x38] sm:$0xff]  }
  0x28   :  { %471 = vmatprep.subr.bf16.mxu0 %v1329_v22  ;;  %1197 = vmatpush3.bf16.msra.mxu1 %v1414_v21  ;;  %v1443_v22 = vmov 0.0  }
  0x29   :  { %1231 = vmatprep.subr.bf16.mxu1 %v1443_v22 }
  0x2b   :  { %472 = vmatpush1.bf16.msra.mxu0 %v1331_v23  ;;  %v107_v23 = vlaneseq }
  0x2c   :  { %473 = vmatprep.subr.bf16.mxu0 %v1332_v24 }
  0x2d   :  { %v108_v24 = vshrl.u32 %v107_v23, 7 }
  0x2f   :  { %474 = vmatpush1.bf16.msra.mxu0 %v1334_v25  ;;  %v109_v25 = vsub.s32 0, %v108_v24  ;;  %v113_v27 = vsub.s32 1, %v108_v24 }
  0x30   :  { %475 = vmatprep.subr.bf16.mxu0 %v1335_v26  ;;  %v105_v26 = vld [vmem:[%s1889_s2] sm:$0x3] }
  0x31   :  { %v114_v29 = vrot.slane %v105_v26, %v113_v27  ;;  %v1052_v27 = vand.u32 127, %v107_v23 }
  0x33   :  { %476 = vmatpush1.bf16.msra.mxu0 %v1337_v28  ;;  %v110_v28 = vrot.slane %v105_v26, %v109_v25  ;;  %vm1053_vm1 = vcmp.lt.s32.totalorder %v1052_v27, 10 }
  0x34   :  { %477 = vmatprep.subr.bf16.mxu0 %v1338_v30 }
  0x37   :  { %478 = vmatpush1.bf16.msra.mxu0 %v1340_v34 }
  0x38   :  { %479 = vmatprep.subr.bf16.mxu0 %v1341_v35 }
  0x3b   :  { %480 = vmatpush1.bf16.msra.mxu0 %v1343_v38 }
  0x3c   :  { %481 = vmatprep.subr.bf16.mxu0 %v1344_v39  ;;  %v1415_v39 = vld [vmem:[%s1888_s5] sm:$0xff]  }
  0x3f   :  { %482 = vmatpush1.bf16.msra.mxu0 %v1346_v42  ;;  %v1417_v42 = vld [vmem:[%s1888_s5 + $0x10] sm:$0xff]  }
  0x40   :  { %492 = vmatprep.subr.bf16.mxu0 %v1352_v45  ;;  %v1420_v45 = vld [vmem:[%s1888_s5 + $0x28] sm:$0xff]  }
  0x42   :  { %484 = vmatmul.mubr.bf16.vlgmr.msra.gmra.mrb[0].mxu0 %v1070_v47  ;;  %v1422_v47 = vld [vmem:[%s1888_s5 + $0x38] sm:$0xff]  }
  0x43   :  { %493 = vmatpush1.bf16.msra.mxu0 %v1350_v48  ;;  %524 = vmatprep.mubr.bf16.mxu0 %v1073_v49  ;;  %v1138_v49 = vld [vmem:[%s1891_s4] ss:$0 sm:$0xff] }
  0x44   :  { %494 = vmatprep.subr.bf16.mxu0 %v1355_v50 }
  0x47   :  { %495 = vmatpush1.bf16.msra.mxu0 %v1353_v52 }
  0x48   :  { %496 = vmatprep.subr.bf16.mxu0 %v1358_v53 }
  0x4b   :  { %497 = vmatpush1.bf16.msra.mxu0 %v1356_v54 }
  0x4c   :  { %498 = vmatprep.subr.bf16.mxu0 %v1361_v55 }
  0x4f   :  { %499 = vmatpush1.bf16.msra.mxu0 %v1359_v56  ;;  %v1423_v56 = vld [vmem:[%s1890_s7] sm:$0xff]  }
  0x50   :  { %500 = vmatprep.subr.bf16.mxu0 %v1364_v57 }
  0x53   :  { %501 = vmatpush1.bf16.msra.mxu0 %v1362_v58  ;;  %v1424_v58 = vld [vmem:[%s1890_s7 + $0x8] sm:$0xff]  }
  0x54   :  { %502 = vmatprep.subr.bf16.mxu0 %v1367_v59  ;;  %v1425_v59 = vld [vmem:[%s1890_s7 + $0x10] sm:$0xff]  }
  0x57   :  { %503 = vmatpush1.bf16.msra.mxu0 %v1365_v60  ;;  %v1426_v60 = vld [vmem:[%s1890_s7 + $0x18] sm:$0xff]  }
  0x58   :  { %504 = vmatprep.subr.bf16.mxu0 %v1370_v61  ;;  %v1427_v61 = vld [vmem:[%s1890_s7 + $0x20] sm:$0xff]  }
  0x5b   :  { %505 = vmatpush1.bf16.msra.mxu0 %v1368_v62  ;;  %v1428_v62 = vld [vmem:[%s1890_s7 + $0x28] sm:$0xff]  }
  0x5c   :  { %506 = vmatprep.subr.bf16.mxu0 %v1373_v63  ;;  %v1429_v63 = vld [vmem:[%s1890_s7 + $0x30] sm:$0xff]  }
  0x5f   :  { %507 = vmatpush1.bf16.msra.mxu0 %v1371_v0  ;;  %v1430_v0 = vld [vmem:[%s1890_s7 + $0x38] sm:$0xff]  }
  0x60   :  { %508 = vmatprep.subr.bf16.mxu0 %v1376_v1  ;;  %v1155_v1 = vld [vmem:[%s1893_s6] ss:$0 sm:$0xff] }
  0x63   :  { %509 = vmatpush1.bf16.msra.mxu0 %v1374_v2 }
  0x64   :  { %510 = vmatprep.subr.bf16.mxu0 %v1379_v3 }
  0x67   :  { %511 = vmatpush1.bf16.msra.mxu0 %v1377_v4 }
  0x68   :  { %512 = vmatprep.subr.bf16.mxu0 %v1382_v5 }
  0x6b   :  { %513 = vmatpush1.bf16.msra.mxu0 %v1380_v6 }
  0x6c   :  { %514 = vmatprep.subr.bf16.mxu0 %v1385_v7 }
  0x6f   :  { %515 = vmatpush1.bf16.msra.mxu0 %v1383_v8  ;;  %v1431_v8 = vld [vmem:[%s1892_s9] sm:$0xff]  }
  0x70   :  { %516 = vmatprep.subr.bf16.mxu0 %v1388_v9 }
  0x73   :  { %517 = vmatpush1.bf16.msra.mxu0 %v1386_v10  ;;  %v1432_v10 = vld [vmem:[%s1892_s9 + $0x8] sm:$0xff]  }
  0x74   :  { %518 = vmatprep.subr.bf16.mxu0 %v1391_v11  ;;  %v1433_v11 = vld [vmem:[%s1892_s9 + $0x10] sm:$0xff]  }
  0x77   :  { %519 = vmatpush1.bf16.msra.mxu0 %v1389_v12  ;;  %v1434_v12 = vld [vmem:[%s1892_s9 + $0x18] sm:$0xff]  }
  0x78   :  { %520 = vmatprep.subr.bf16.mxu0 %v1394_v13  ;;  %v1435_v13 = vld [vmem:[%s1892_s9 + $0x20] sm:$0xff]  }
  0x7b   :  { %521 = vmatpush1.bf16.msra.mxu0 %v1392_v14  ;;  %v1436_v14 = vld [vmem:[%s1892_s9 + $0x28] sm:$0xff]  }
  0x7c   :  { %522 = vmatprep.subr.bf16.mxu0 %v1397_v15  ;;  %v1437_v15 = vld [vmem:[%s1892_s9 + $0x30] sm:$0xff]  }
  0x7f   :  { %523 = vmatpush1.bf16.msra.mxu0 %v1395_v16  ;;  %v1438_v16 = vld [vmem:[%s1892_s9 + $0x38] sm:$0xff]  }
  0x82   :  { %525 = vmatmul.mubr.bf16.vlgmr.msra.gmra.mrb[0].mxu0 %v1072_v17  ;;  %v1164_v17 = vld [vmem:[%s1894_s8] ss:$0 sm:$0xff] }
 0x155   :  { %v526_v30 = vpop.f32.mrb[0].mxu0 }
 0x156   :  { %v1291_v31 = vadd.f32 %v526_v30, %v110_v28  ;;  %v528_v32 = vpop.f32.mrb[1].mxu0 }
 0x157   :  { %v1292_v33 = vadd.f32 %v528_v32, %v114_v29  ;;  %v530_v34 = vpop.f32.mrb[2].mxu0 }
 0x158   :  { %v533_v35 = vmax.f32 %v1291_v31, 0.0  ;;  %v531_v36 = vpop.f32.mrb[3].mxu0 }
 0x159   :  { %v534_v37 = vmax.f32 %v1292_v33, 0.0 }
 0x15a   :  { %v535_v40 = vpack.c.bf16 %v533_v35, %v533_v35 }
 0x15b   :  { %v536_v38 = vpack.c.bf16 %v534_v37, %v534_v37 }
 0x15d   :  { %704 = vmatprep.mubr.bf16.mxu1 %v536_v38 }
 0x15e   :  { %705 = vmatmul.mubr.bf16.vlgmr.msra.gmra.mrb[0].mxu1 %v535_v40 }
 0x15f   :  { %1232 = vmatpush3.bf16.msra.mxu1 %v1415_v39  ;;  %1247 = vmatprep.mubr.msk.bf16.mxu1 %vm1444_vm0, %v1443_v22 }
 0x160   :  { %1233 = vmatprep.subr.bf16.mxu1 %v1443_v22 }
 0x163   :  { %1234 = vmatpush3.bf16.msra.mxu1 %v1416_v41 }
 0x164   :  { %1235 = vmatprep.subr.bf16.mxu1 %v1443_v22 }
 0x167   :  { %1236 = vmatpush3.bf16.msra.mxu1 %v1417_v42 }
 0x168   :  { %1237 = vmatprep.subr.bf16.mxu1 %v1443_v22 }
 0x16b   :  { %1238 = vmatpush3.bf16.msra.mxu1 %v1418_v43 }
 0x16c   :  { %1239 = vmatprep.subr.bf16.mxu1 %v1443_v22 }
 0x16f   :  { %1240 = vmatpush3.bf16.msra.mxu1 %v1419_v44 }
 0x170   :  { %1241 = vmatprep.subr.bf16.mxu1 %v1443_v22 }
 0x173   :  { %1242 = vmatpush3.bf16.msra.mxu1 %v1420_v45 }
 0x174   :  { %1243 = vmatprep.subr.bf16.mxu1 %v1443_v22 }
 0x177   :  { %1244 = vmatpush3.bf16.msra.mxu1 %v1421_v46 }
 0x178   :  { %1245 = vmatprep.subr.bf16.mxu1 %v1443_v22 }
 0x17b   :  { %1246 = vmatpush3.bf16.msra.mxu1 %v1422_v47 }
 0x17c   :  { %1251 = vmatprep.subr.bf16.mxu1 %v1443_v22 }
 0x231   :  { %v1198_v48 = vpop.f32.mrb[0].mxu1 }
 0x232   :  { %v1199_v50 = vpop.f32.mrb[1].mxu1 }
 0x233   :  { %v1200_v51 = vadd.f32 %v1199_v50, %v1198_v48  ;;  %v1201_v52 = vpop.f32.mrb[2].mxu1 }
 0x234   :  { %v1202_v53 = vpop.f32.mrb[3].mxu1 }
 0x235   :  { %v707_v54 = vadd.f32 %v1200_v51, %v1138_v49 }
 0x237   :  { %v712_v55 = vmax.f32 %v707_v54, 0.0 }
 0x239   :  { %v713_v57 = vpack.c.bf16 %v712_v55, %v712_v55 }
 0x23b   :  { %1248 = vmatmul.mubr.bf16.vlgmr.msra.gmra.mrb[4].mxu1 %v713_v57 }
 0x23c   :  { %1252 = vmatpush3.bf16.msra.mxu1 %v1423_v56  ;;  %1267 = vmatprep.mubr.msk.bf16.mxu1 %vm1444_vm0, %v1443_v22 }
 0x23d   :  { %1253 = vmatprep.subr.bf16.mxu1 %v1443_v22 }
 0x240   :  { %1254 = vmatpush3.bf16.msra.mxu1 %v1424_v58 }
 0x241   :  { %1255 = vmatprep.subr.bf16.mxu1 %v1443_v22 }
 0x244   :  { %1256 = vmatpush3.bf16.msra.mxu1 %v1425_v59 }
 0x245   :  { %1257 = vmatprep.subr.bf16.mxu1 %v1443_v22 }
 0x248   :  { %1258 = vmatpush3.bf16.msra.mxu1 %v1426_v60 }
 0x249   :  { %1259 = vmatprep.subr.bf16.mxu1 %v1443_v22 }
 0x24c   :  { %1260 = vmatpush3.bf16.msra.mxu1 %v1427_v61 }
 0x24d   :  { %1261 = vmatprep.subr.bf16.mxu1 %v1443_v22 }
 0x250   :  { %1262 = vmatpush3.bf16.msra.mxu1 %v1428_v62 }
 0x251   :  { %1263 = vmatprep.subr.bf16.mxu1 %v1443_v22 }
 0x254   :  { %1264 = vmatpush3.bf16.msra.mxu1 %v1429_v63 }
 0x255   :  { %1265 = vmatprep.subr.bf16.mxu1 %v1443_v22 }
 0x258   :  { %1266 = vmatpush3.bf16.msra.mxu1 %v1430_v0 }
 0x259   :  { %1271 = vmatprep.subr.bf16.mxu1 %v1443_v22 }
 0x30e   :  { %v819_v2 = vpop.f32.mrb[4].mxu1 }
 0x30f   :  { %v820_v3 = vadd.f32 %v1155_v1, %v819_v2  ;;  %v1249_v4 = vpop.f32.mrb[5].mxu1 }
 0x310   :  { %v822_v5 = vpop.f32.mrb[6].mxu1 }
 0x311   :  { %v825_v6 = vmax.f32 %v820_v3, 0.0  ;;  %v1250_v7 = vpop.f32.mrb[7].mxu1 }
 0x313   :  { %v826_v9 = vpack.c.bf16 %v825_v6, %v825_v6 }
 0x315   :  { %1268 = vmatmul.mubr.bf16.vlgmr.msra.gmra.mrb[8].mxu1 %v826_v9 }
 0x316   :  { %1272 = vmatpush3.bf16.msra.mxu1 %v1431_v8  ;;  %1287 = vmatprep.mubr.msk.bf16.mxu1 %vm1444_vm0, %v1443_v22 }
 0x317   :  { %1273 = vmatprep.subr.bf16.mxu1 %v1443_v22 }
 0x31a   :  { %1274 = vmatpush3.bf16.msra.mxu1 %v1432_v10 }
 0x31b   :  { %1275 = vmatprep.subr.bf16.mxu1 %v1443_v22 }
 0x31e   :  { %1276 = vmatpush3.bf16.msra.mxu1 %v1433_v11 }
 0x31f   :  { %1277 = vmatprep.subr.bf16.mxu1 %v1443_v22 }
 0x322   :  { %1278 = vmatpush3.bf16.msra.mxu1 %v1434_v12 }
 0x323   :  { %1279 = vmatprep.subr.bf16.mxu1 %v1443_v22 }
 0x326   :  { %1280 = vmatpush3.bf16.msra.mxu1 %v1435_v13 }
 0x327   :  { %1281 = vmatprep.subr.bf16.mxu1 %v1443_v22 }
 0x32a   :  { %1282 = vmatpush3.bf16.msra.mxu1 %v1436_v14 }
 0x32b   :  { %1283 = vmatprep.subr.bf16.mxu1 %v1443_v22 }
 0x32e   :  { %1284 = vmatpush3.bf16.msra.mxu1 %v1437_v15 }
 0x32f   :  { %1285 = vmatprep.subr.bf16.mxu1 %v1443_v22  ;;  %v1173_v22 = vld [vmem:[%s1895_s10] ss:$0 sm:$0xff] }
 0x332   :  { %1286 = vmatpush3.bf16.msra.mxu1 %v1438_v16 }
 0x3e8   :  { %v932_v18 = vpop.f32.mrb[8].mxu1 }
 0x3e9   :  { %v933_v19 = vadd.f32 %v1164_v17, %v932_v18  ;;  %v1269_v20 = vpop.f32.mrb[9].mxu1 }
 0x3ea   :  { %v935_v21 = vpop.f32.mrb[10].mxu1 }
 0x3eb   :  { %v938_v24 = vmax.f32 %v933_v19, 0.0  ;;  %v1270_v25 = vpop.f32.mrb[11].mxu1 }
 0x3ed   :  { %v939_v26 = vpack.c.bf16 %v938_v24, %v938_v24 }
 0x3ef   :  { %1288 = vmatmul.mubr.bf16.vlgmr.msra.gmra.mrb[12].mxu1 %v939_v26 }
 0x4c2   :  { %v1045_v28 = vpop.f32.mrb[12].mxu1 }
 0x4c3   :  { %v1046_v29 = vadd.f32 %v1173_v22, %v1045_v28  ;;  %v1289_v30 = vpop.f32.mrb[13].mxu1 }
 0x4c4   :  { %v1048_v31 = vpop.f32.mrb[14].mxu1 }
 0x4c5   :  { %v1290_v32 = vpop.f32.mrb[15].mxu1  ;;  %v1054_v33 = vsel %vm1053_vm1, %v1046_v29, -1e+30 }
 0x4c6   :  { %1055 = vmax.xlane.f32.xlu0 %v1054_v33 }
 0x553   :  { %v1056_v34 = vpop.xlane.xlu0 %1055 }
 0x554   :  { %v1057_v35 = vsub.f32 %v1054_v33, %v1056_v34 }
 0x556   :  { %v1058_v36 = vmul.f32 1.442695, %v1057_v35 }
 0x558   :  { %1439 = vpow2.f32 %v1058_v36 }
 0x562   :  { %v1440_v37 = vpop.eup %1439 }
 0x563   :  { %1060 = vadd.xlane.f32.xlu0 %v1440_v37 }
 0x5f0   :  { %v1061_v38 = vpop.xlane.xlu0 %1060 }
 0x5f1   :  { %1441 = vlog2.f32 %v1061_v38 }
 0x5fb   :  { %v1442_v23 = vpop.eup %1441 }
 0x5fc   :  { %v1063_v39 = vmul.f32 0.6931472, %v1442_v23 }
 0x5fe   :  { %v1064_v40 = vsub.f32 %v1057_v35, %v1063_v39 }
 0x600   :  { %1065 = vst [vmem:[%s1896_s11] sm:$0xff] %v1064_v40 }

</bundles_post_ra>
